<compile_context>
chip_gen: v7x
topology: tpu7x:2x2x1
jax: 0.10.0
libtpu: 0.0.40
codegen_flags: <defaults>
</compile_context>

<pallas_src>
import functools

import jax
import jax.numpy as jnp
from jax.experimental import pallas as pl
from jax.experimental.pallas import tpu as pltpu

KSIZE = 7
PAD = KSIZE // 2


def _round_up(v, m):
    return (v + m - 1) // m * m


def _largest_divisor_leq(n, k):
    k = max(1, min(n, k))
    for d in range(k, 0, -1):
        if n % d == 0:
            return d
    return 1


def _sigmoid(v):
    return 1.0 / (1.0 + jnp.exp(-v))


def spatial_attn_kernel(x_ref, w1t_ref, b1_ref, w2t_ref, b2_ref, convw_ref,
                        att_ref, sw_ref,
                        pooled_scr, cw_scr, avg_scr, max_scr,
                        *, H, W, CK):
    # x_ref block: (Bt, C, H*W), lane-dense (HW in lanes, C in sublanes).
    Bt, C, HW = x_ref.shape
    _, HP, WP = avg_scr.shape
    n_chunks = C // CK
    inv_hw = 1.0 / HW
    inv_c = 1.0 / C

    # ---- phase 1: global average pool over HW, streamed over C chunks ------
    for ci in range(n_chunks):
        c0 = ci * CK
        xc = x_ref[:, c0:c0 + CK, :].astype(jnp.float32)        # (Bt, CK, HW)
        pooled_scr[:, c0:c0 + CK] = jnp.sum(xc, axis=2) * inv_hw

    # ---- channel MLP (tiny; MXU latency amortised over Bt rows) ------------
    pooled = pooled_scr[...]                                    # (Bt, C)
    h = jnp.maximum(
        jnp.dot(pooled, w1t_ref[...], preferred_element_type=jnp.float32)
        + b1_ref[...], 0.0)                                     # (Bt, hidden)
    cw = _sigmoid(
        jnp.dot(h, w2t_ref[...], preferred_element_type=jnp.float32)
        + b2_ref[...])                                          # (Bt, C)
    cw_scr[...] = cw

    # ---- phase 2: x_channel streamed into att_ref; channel mean / max ------
    avg_acc = jnp.zeros((Bt, HW), jnp.float32)
    max_acc = jnp.full((Bt, HW), -jnp.inf, jnp.float32)
    for ci in range(n_chunks):
        c0 = ci * CK
        xc = x_ref[:, c0:c0 + CK, :].astype(jnp.float32)        # (Bt, CK, HW)
        cwc = cw_scr[:, c0:c0 + CK]                             # (Bt, CK)
        xch = xc * cwc[:, :, None]
        att_ref[:, c0:c0 + CK, :] = xch.astype(att_ref.dtype)   # staged output
        avg_acc = avg_acc + jnp.sum(xch, axis=1)
        max_acc = jnp.maximum(max_acc, jnp.max(xch, axis=1))
    avg_acc = avg_acc * inv_c                                   # channel mean

    # ---- phase 3: 7x7 'same' conv (2 -> 1 channels, no bias) ---------------
    # Park the pooled planes at (row PAD, lane 0) inside a zeroed read-region:
    # rows [0, H+6) x lanes [0, WP).  Re-zeroed per step (parallel-core safe).
    H2 = H + 2 * PAD
    zero_region = jnp.zeros((Bt, H2, WP), jnp.float32)
    avg_scr[:, 0:H2, :] = zero_region                           # aligned, full-lane vst
    max_scr[:, 0:H2, :] = zero_region
    avg_scr[:, PAD:PAD + H, 0:W] = avg_acc.reshape(Bt, H, W)    # lane offset 0
    max_scr[:, PAD:PAD + H, 0:W] = max_acc.reshape(Bt, H, W)

    BSUB = min(Bt, 4)          # bound conv vreg footprint for large blocks
    for b0 in range(0, Bt, BSUB):
        bc = min(BSUB, Bt - b0)
        acc = jnp.zeros((bc, H, WP), jnp.float32)
        for ky in range(KSIZE):
            # one sublane-shifted slab per plane per ky (hoisted out of kx)
            a_slab = avg_scr[b0:b0 + bc, ky:ky + H, :]          # (bc, H, WP)
            m_slab = max_scr[b0:b0 + bc, ky:ky + H, :]
            for kx in range(KSIZE):
                shift = (PAD - kx) % WP      # lane shift realising dx = kx-PAD
                a = a_slab if shift == 0 else pltpu.roll(a_slab, shift, 2)
                m = m_slab if shift == 0 else pltpu.roll(m_slab, shift, 2)
                w_a = convw_ref[ky * KSIZE + kx]                # SMEM scalars
                w_m = convw_ref[KSIZE * KSIZE + ky * KSIZE + kx]
                acc = acc + w_a * a + w_m * m
        sp = _sigmoid(acc[:, :, 0:W]).reshape(bc, 1, HW)        # (bc, 1, HW)
        sw_ref[b0:b0 + bc, :, :] = sp.astype(sw_ref.dtype)

    # ---- phase 4: rescale attended output in place by spatial weights ------
    sw_b = sw_ref[...].astype(jnp.float32)                      # (Bt, 1, HW)
    for ci in range(n_chunks):
        c0 = ci * CK
        cur = att_ref[:, c0:c0 + CK, :].astype(jnp.float32)
        att_ref[:, c0:c0 + CK, :] = (cur * sw_b).astype(att_ref.dtype)


def spatial_attention_module(x, w1, b1, w2, b2, conv_w, *, block_b=None):
    """x: (B, C, H, W). w1: (hid, C), b1: (hid,), w2: (C, hid), b2: (C,),
    conv_w: (1, 2, 7, 7). Returns (attended_features, spatial_weights)."""
    B, C, H, W = x.shape
    HW = H * W
    hidden = w1.shape[0]
    HP = _round_up(H + 2 * PAD, 8)      # sublane-aligned padded plane height
    WP = _round_up(W + 2 * PAD, 128)    # lane-aligned padded plane width
    itemsize = jnp.dtype(x.dtype).itemsize

    try:
        vmem_cap = int(pltpu.get_tpu_info().vmem_capacity_bytes)
    except Exception:
        vmem_cap = 64 * 1024 * 1024     # conservative (v7x per-core VMEM)

    # Per batch element: double-buffered x-in / att-out / sw-out blocks plus
    # the (single-buffered) conv + pooled scratch.
    per_b_io = (2 * C * HW + HW) * itemsize
    per_b_scr = 2 * HP * WP * 4 + 2 * C * 4
    budget = int(vmem_cap * 0.7)
    cap_vmem = max(1, budget // (2 * per_b_io + per_b_scr))

    if block_b is None:
        upper = min(B, cap_vmem, 16)
        if B >= 2:
            upper = min(upper, B // 2)  # >=2 grid steps: v7x dual TC + overlap
        block_b = _largest_divisor_leq(B, max(1, upper))
    assert B % block_b == 0
    n_blocks = B // block_b
    # TODO(synk): for B == 1 on v7x, add a second parallel grid axis over HW
    # (or C) so both TensorCores get work.

    # Channel streaming chunk: ~64 KiB of x per chunk bounds the vreg footprint.
    ck_target = max(1, (64 * 1024) // max(1, block_b * HW * 4))
    CK = _largest_divisor_leq(C, min(C, ck_target))

    # Parameter glue (PyTorch Linear computes y = x @ W.T + b).
    w1_t = jnp.asarray(w1.T, jnp.float32)                       # (C, hidden)
    w2_t = jnp.asarray(w2.T, jnp.float32)                       # (hidden, C)
    b1_r = jnp.asarray(b1.reshape(1, hidden), jnp.float32)
    b2_r = jnp.asarray(b2.reshape(1, C), jnp.float32)
    convw_flat = jnp.asarray(conv_w[0].reshape(-1), jnp.float32)  # (2*7*7,)

    x_flat = x.reshape(B, C, HW)                                # lane-dense view
    # TODO(synk): optionally emit bf16 x/att blocks (half HBM traffic) when the
    # caller tolerates reduced output precision.

    out_shapes = (
        jax.ShapeDtypeStruct((B, C, HW), x.dtype),              # attended (flat)
        jax.ShapeDtypeStruct((B, 1, HW), x.dtype),              # spatial weights
    )

    param_bytes = (2 * C * hidden + hidden + C) * 4
    need = (2 * block_b * per_b_io + block_b * per_b_scr
            + param_bytes + (4 << 20))
    vmem_limit = int(min(vmem_cap, max(32 * 1024 * 1024, need)))

    kernel = functools.partial(spatial_attn_kernel, H=H, W=W, CK=CK)

    att_flat, sw_flat = pl.pallas_call(
        kernel,
        out_shape=out_shapes,
        grid=(n_blocks,),
        in_specs=[
            pl.BlockSpec((block_b, C, HW), lambda i: (i, 0, 0)),
            pl.BlockSpec((C, hidden), lambda i: (0, 0)),
            pl.BlockSpec((1, hidden), lambda i: (0, 0)),
            pl.BlockSpec((hidden, C), lambda i: (0, 0)),
            pl.BlockSpec((1, C), lambda i: (0, 0)),
            pl.BlockSpec(memory_space=pltpu.MemorySpace.SMEM),  # conv taps
        ],
        out_specs=(
            pl.BlockSpec((block_b, C, HW), lambda i: (i, 0, 0)),
            pl.BlockSpec((block_b, 1, HW), lambda i: (i, 0, 0)),
        ),
        scratch_shapes=[
            pltpu.VMEM((block_b, C), jnp.float32),              # pooled sums
            pltpu.VMEM((block_b, C), jnp.float32),              # channel weights
            pltpu.VMEM((block_b, HP, WP), jnp.float32),         # padded avg plane
            pltpu.VMEM((block_b, HP, WP), jnp.float32),         # padded max plane
        ],
        compiler_params=pltpu.CompilerParams(
            dimension_semantics=("parallel",),
            vmem_limit_bytes=vmem_limit),
    )(x_flat, w1_t, b1_r, w2_t, b2_r, convw_flat)

    return att_flat.reshape(B, C, H, W), sw_flat.reshape(B, 1, H, W)


def reference_forward(x, w1, b1, w2, b2, conv_w):
    """Pure-JAX reference mirroring the PyTorch module."""
    pooled = jnp.mean(x, axis=(2, 3))                           # (B, C)
    h = jax.nn.relu(pooled @ w1.T + b1)
    cw = jax.nn.sigmoid(h @ w2.T + b2)                          # (B, C)
    x_ch = x * cw[:, :, None, None]
    avg = jnp.mean(x_ch, axis=1, keepdims=True)
    mx = jnp.max(x_ch, axis=1, keepdims=True)
    sp_in = jnp.concatenate([avg, mx], axis=1)                  # (B, 2, H, W)
    conv_out = jax.lax.conv_general_dilated(
        sp_in, conv_w, window_strides=(1, 1),
        padding=[(PAD, PAD), (PAD, PAD)],
        dimension_numbers=("NCHW", "OIHW", "NCHW"))
    sw = jax.nn.sigmoid(conv_out)
    return x_ch * sw, sw


if __name__ == "__main__":
    B, C, H, W = 2, 32, 16, 16
    reduction_ratio = 16
    hidden = C // reduction_ratio

    key = jax.random.PRNGKey(0)
    kx, k1, k2, k3, k4, k5 = jax.random.split(key, 6)
    x = jax.random.normal(kx, (B, C, H, W), jnp.float32)
    w1 = 0.1 * jax.random.normal(k1, (hidden, C), jnp.float32)
    b1 = 0.1 * jax.random.normal(k2, (hidden,), jnp.float32)
    w2 = 0.1 * jax.random.normal(k3, (C, hidden), jnp.float32)
    b2 = 0.1 * jax.random.normal(k4, (C,), jnp.float32)
    conv_w = 0.1 * jax.random.normal(k5, (1, 2, KSIZE, KSIZE), jnp.float32)

    attended, spatial_w = spatial_attention_module(x, w1, b1, w2, b2, conv_w)
    jax.block_until_ready((attended, spatial_w))

    ref_att, ref_sw = reference_forward(x, w1, b1, w2, b2, conv_w)
    assert attended.shape == (B, C, H, W) and spatial_w.shape == (B, 1, H, W)
    assert jnp.allclose(attended, ref_att, atol=1e-4, rtol=1e-4)
    assert jnp.allclose(spatial_w, ref_sw, atol=1e-4, rtol=1e-4)

    print("KERNEL_OK")
</pallas_src>

<mosaic_0001>
module attributes {stable_mosaic.version = 11 : i64} {
  func.func @spatial_attn_kernel(%arg0: i32, %arg1: memref<1x32x256xf32, #tpu.memory_space<vmem>>, %arg2: memref<32x2xf32, #tpu.memory_space<vmem>>, %arg3: memref<1x2xf32, #tpu.memory_space<vmem>>, %arg4: memref<2x32xf32, #tpu.memory_space<vmem>>, %arg5: memref<1x32xf32, #tpu.memory_space<vmem>>, %arg6: memref<98xf32, #tpu.memory_space<smem>>, %arg7: memref<1x32x256xf32, #tpu.memory_space<vmem>>, %arg8: memref<1x1x256xf32, #tpu.memory_space<vmem>>, %arg9: memref<1x32xf32, #tpu.memory_space<vmem>>, %arg10: memref<1x32xf32, #tpu.memory_space<vmem>>, %arg11: memref<1x24x128xf32, #tpu.memory_space<vmem>>, %arg12: memref<1x24x128xf32, #tpu.memory_space<vmem>>) attributes {dimension_semantics = [#tpu.dimension_semantics<parallel>], iteration_bounds = array<i64: 2>, scalar_prefetch = 0 : i64, scratch_operands = 4 : i64, tpu.core_type = #tpu.core_type<tc>, window_params = [{transform_indices = @transform_0, window_bounds = array<i64: 1, 32, 256>}, {pipeline_mode = #tpu.pipeline_mode<synchronous>, transform_indices = @transform_1, window_bounds = array<i64: 32, 2>}, {pipeline_mode = #tpu.pipeline_mode<synchronous>, transform_indices = @transform_2, window_bounds = array<i64: 1, 2>}, {pipeline_mode = #tpu.pipeline_mode<synchronous>, transform_indices = @transform_3, window_bounds = array<i64: 2, 32>}, {pipeline_mode = #tpu.pipeline_mode<synchronous>, transform_indices = @transform_4, window_bounds = array<i64: 1, 32>}, {transform_indices = @transform_5, window_bounds = array<i64: 98>}, {transform_indices = @transform_6, window_bounds = array<i64: 1, 32, 256>}, {transform_indices = @transform_7, window_bounds = array<i64: 1, 1, 256>}]} {
    %c0 = arith.constant 0 : index
    %c0_0 = arith.constant 0 : index
    %c0_1 = arith.constant 0 : index
    %0 = vector.load %arg1[%c0, %c0_0, %c0_1] : memref<1x32x256xf32, #tpu.memory_space<vmem>>, vector<1x32x256xf32>
    %cst = arith.constant dense<0.000000e+00> : vector<1x32xf32>
    %1 = vector.multi_reduction <add>, %0, %cst [2] : vector<1x32x256xf32> to vector<1x32xf32>
    %cst_2 = arith.constant 3.906250e-03 : f32
    %2 = vector.broadcast %cst_2 : f32 to vector<1x32xf32>
    %3 = arith.mulf %1, %2 : vector<1x32xf32>
    %c0_3 = arith.constant 0 : index
    %c0_4 = arith.constant 0 : index
    %4 = vector.load %arg9[%c0_3, %c0_4] : memref<1x32xf32, #tpu.memory_space<vmem>>, vector<1x32xf32>
    tpu.vector_store %arg9[%c0_3, %c0_4], %3 {strides = array<i32>} : memref<1x32xf32, #tpu.memory_space<vmem>>, vector<1x32xf32>,
    %c0_5 = arith.constant 0 : index
    %c0_6 = arith.constant 0 : index
    %5 = vector.load %arg9[%c0_5, %c0_6] : memref<1x32xf32, #tpu.memory_space<vmem>>, vector<1x32xf32>
    %c0_7 = arith.constant 0 : index
    %c0_8 = arith.constant 0 : index
    %6 = vector.load %arg2[%c0_7, %c0_8] : memref<32x2xf32, #tpu.memory_space<vmem>>, vector<32x2xf32>
    %cst_9 = arith.constant dense<0.000000e+00> : vector<1x2xf32>
    %7 = tpu.matmul %5, %6, %cst_9 {dimension_numbers = #tpu.dot_dimension_numbers<[1], [0], [0], [1], [0, 0, 1, 1], [], []>} : vector<1x32xf32>, vector<32x2xf32>, vector<1x2xf32> -> vector<1x2xf32>
    %c0_10 = arith.constant 0 : index
    %c0_11 = arith.constant 0 : index
    %8 = vector.load %arg3[%c0_10, %c0_11] : memref<1x2xf32, #tpu.memory_space<vmem>>, vector<1x2xf32>
    %9 = arith.addf %7, %8 : vector<1x2xf32>
    %cst_12 = arith.constant 0.000000e+00 : f32
    %10 = vector.broadcast %cst_12 : f32 to vector<1x2xf32>
    %11 = arith.maximumf %9, %10 : vector<1x2xf32>
    %c0_13 = arith.constant 0 : index
    %c0_14 = arith.constant 0 : index
    %12 = vector.load %arg4[%c0_13, %c0_14] : memref<2x32xf32, #tpu.memory_space<vmem>>, vector<2x32xf32>
    %cst_15 = arith.constant dense<0.000000e+00> : vector<1x32xf32>
    %13 = tpu.matmul %11, %12, %cst_15 {dimension_numbers = #tpu.dot_dimension_numbers<[1], [0], [0], [1], [0, 0, 1, 1], [], []>} : vector<1x2xf32>, vector<2x32xf32>, vector<1x32xf32> -> vector<1x32xf32>
    %c0_16 = arith.constant 0 : index
    %c0_17 = arith.constant 0 : index
    %14 = vector.load %arg5[%c0_16, %c0_17] : memref<1x32xf32, #tpu.memory_space<vmem>>, vector<1x32xf32>
    %15 = arith.addf %13, %14 : vector<1x32xf32>
    %cst_18 = arith.constant 0.000000e+00 : f32
    %16 = vector.broadcast %cst_18 : f32 to vector<1x32xf32>
    %17 = arith.subf %16, %15 : vector<1x32xf32>
    %18 = math.exp %17 : vector<1x32xf32>
    %cst_19 = arith.constant 1.000000e+00 : f32
    %19 = vector.broadcast %cst_19 : f32 to vector<1x32xf32>
    %20 = arith.addf %19, %18 : vector<1x32xf32>
    %cst_20 = arith.constant 1.000000e+00 : f32
    %21 = vector.broadcast %cst_20 : f32 to vector<1x32xf32>
    %22 = arith.divf %21, %20 : vector<1x32xf32>
    %c0_21 = arith.constant 0 : index
    %c0_22 = arith.constant 0 : index
    %23 = vector.load %arg10[%c0_21, %c0_22] : memref<1x32xf32, #tpu.memory_space<vmem>>, vector<1x32xf32>
    tpu.vector_store %arg10[%c0_21, %c0_22], %22 {strides = array<i32>} : memref<1x32xf32, #tpu.memory_space<vmem>>, vector<1x32xf32>,
    %cst_23 = arith.constant 0.000000e+00 : f32
    %24 = vector.broadcast %cst_23 : f32 to vector<1x256xf32>
    %cst_24 = arith.constant 0xFF800000 : f32
    %25 = vector.broadcast %cst_24 : f32 to vector<1x256xf32>
    %c0_25 = arith.constant 0 : index
    %c0_26 = arith.constant 0 : index
    %c0_27 = arith.constant 0 : index
    %26 = vector.load %arg1[%c0_25, %c0_26, %c0_27] : memref<1x32x256xf32, #tpu.memory_space<vmem>>, vector<1x32x256xf32>
    %c0_28 = arith.constant 0 : index
    %c0_29 = arith.constant 0 : index
    %27 = vector.load %arg10[%c0_28, %c0_29] : memref<1x32xf32, #tpu.memory_space<vmem>>, vector<1x32xf32>
    %28 = vector.shape_cast %27 : vector<1x32xf32> to vector<1x32x1xf32>
    %29 = vector.broadcast %28 : vector<1x32x1xf32> to vector<1x32x256xf32>
    %30 = arith.mulf %26, %29 : vector<1x32x256xf32>
    %c0_30 = arith.constant 0 : index
    %c0_31 = arith.constant 0 : index
    %c0_32 = arith.constant 0 : index
    %31 = vector.load %arg7[%c0_30, %c0_31, %c0_32] : memref<1x32x256xf32, #tpu.memory_space<vmem>>, vector<1x32x256xf32>
    tpu.vector_store %arg7[%c0_30, %c0_31, %c0_32], %30 {strides = array<i32>} : memref<1x32x256xf32, #tpu.memory_space<vmem>>, vector<1x32x256xf32>,
    %cst_33 = arith.constant dense<0.000000e+00> : vector<1x256xf32>
    %32 = vector.multi_reduction <add>, %30, %cst_33 [1] : vector<1x32x256xf32> to vector<1x256xf32>
    %33 = arith.addf %24, %32 : vector<1x256xf32>
    %cst_34 = arith.constant dense<0xFF800000> : vector<1x256xf32>
    %34 = vector.multi_reduction <maximumf>, %30, %cst_34 [1] : vector<1x32x256xf32> to vector<1x256xf32>
    %35 = arith.maximumf %25, %34 : vector<1x256xf32>
    %cst_35 = arith.constant 3.125000e-02 : f32
    %36 = vector.broadcast %cst_35 : f32 to vector<1x256xf32>
    %37 = arith.mulf %33, %36 : vector<1x256xf32>
    %cst_36 = arith.constant 0.000000e+00 : f32
    %38 = vector.broadcast %cst_36 : f32 to vector<1x22x128xf32>
    %c0_37 = arith.constant 0 : index
    %c0_38 = arith.constant 0 : index
    %c0_39 = arith.constant 0 : index
    %39 = vector.load %arg11[%c0_37, %c0_38, %c0_39] : memref<1x24x128xf32, #tpu.memory_space<vmem>>, vector<1x22x128xf32>
    tpu.vector_store %arg11[%c0_37, %c0_38, %c0_39], %38 {strides = array<i32>} : memref<1x24x128xf32, #tpu.memory_space<vmem>>, vector<1x22x128xf32>,
    %c0_40 = arith.constant 0 : index
    %c0_41 = arith.constant 0 : index
    %c0_42 = arith.constant 0 : index
    %40 = vector.load %arg12[%c0_40, %c0_41, %c0_42] : memref<1x24x128xf32, #tpu.memory_space<vmem>>, vector<1x22x128xf32>
    tpu.vector_store %arg12[%c0_40, %c0_41, %c0_42], %38 {strides = array<i32>} : memref<1x24x128xf32, #tpu.memory_space<vmem>>, vector<1x22x128xf32>,
    %41 = vector.shape_cast %37 : vector<1x256xf32> to vector<1x16x16xf32>
    %c0_43 = arith.constant 0 : index
    %c3 = arith.constant 3 : index
    %c0_44 = arith.constant 0 : index
    %42 = vector.load %arg11[%c0_43, %c3, %c0_44] : memref<1x24x128xf32, #tpu.memory_space<vmem>>, vector<1x16x16xf32>
    tpu.vector_store %arg11[%c0_43, %c3, %c0_44], %41 {strides = array<i32>} : memref<1x24x128xf32, #tpu.memory_space<vmem>>, vector<1x16x16xf32>,
    %43 = vector.shape_cast %35 : vector<1x256xf32> to vector<1x16x16xf32>
    %c0_45 = arith.constant 0 : index
    %c3_46 = arith.constant 3 : index
    %c0_47 = arith.constant 0 : index
    %44 = vector.load %arg12[%c0_45, %c3_46, %c0_47] : memref<1x24x128xf32, #tpu.memory_space<vmem>>, vector<1x16x16xf32>
    tpu.vector_store %arg12[%c0_45, %c3_46, %c0_47], %43 {strides = array<i32>} : memref<1x24x128xf32, #tpu.memory_space<vmem>>, vector<1x16x16xf32>,
    %cst_48 = arith.constant 0.000000e+00 : f32
    %45 = vector.broadcast %cst_48 : f32 to vector<1x16x128xf32>
    %c0_49 = arith.constant 0 : index
    %c0_50 = arith.constant 0 : index
    %c0_51 = arith.constant 0 : index
    %46 = vector.load %arg11[%c0_49, %c0_50, %c0_51] : memref<1x24x128xf32, #tpu.memory_space<vmem>>, vector<1x16x128xf32>
    %c0_52 = arith.constant 0 : index
    %c0_53 = arith.constant 0 : index
    %c0_54 = arith.constant 0 : index
    %47 = vector.load %arg12[%c0_52, %c0_53, %c0_54] : memref<1x24x128xf32, #tpu.memory_space<vmem>>, vector<1x16x128xf32>
    %c3_i32 = arith.constant 3 : i32
    %48 = tpu.dynamic_rotate %46 by %c3_i32 dim 2 : vector<1x16x128xf32>, i32 -> vector<1x16x128xf32>
    %c3_i32_55 = arith.constant 3 : i32
    %49 = tpu.dynamic_rotate %47 by %c3_i32_55 dim 2 : vector<1x16x128xf32>, i32 -> vector<1x16x128xf32>
    %c0_56 = arith.constant 0 : index
    %50 = memref.load %arg6[%c0_56] : memref<98xf32, #tpu.memory_space<smem>>
    %c49 = arith.constant 49 : index
    %51 = memref.load %arg6[%c49] : memref<98xf32, #tpu.memory_space<smem>>
    %52 = vector.broadcast %50 : f32 to vector<1x16x128xf32>
    %53 = arith.mulf %52, %48 : vector<1x16x128xf32>
    %54 = arith.addf %45, %53 : vector<1x16x128xf32>
    %55 = vector.broadcast %51 : f32 to vector<1x16x128xf32>
    %56 = arith.mulf %55, %49 : vector<1x16x128xf32>
    %57 = arith.addf %54, %56 : vector<1x16x128xf32>
    %c2_i32 = arith.constant 2 : i32
    %58 = tpu.dynamic_rotate %46 by %c2_i32 dim 2 : vector<1x16x128xf32>, i32 -> vector<1x16x128xf32>
    %c2_i32_57 = arith.constant 2 : i32
    %59 = tpu.dynamic_rotate %47 by %c2_i32_57 dim 2 : vector<1x16x128xf32>, i32 -> vector<1x16x128xf32>
    %c1 = arith.constant 1 : index
    %60 = memref.load %arg6[%c1] : memref<98xf32, #tpu.memory_space<smem>>
    %c50 = arith.constant 50 : index
    %61 = memref.load %arg6[%c50] : memref<98xf32, #tpu.memory_space<smem>>
    %62 = vector.broadcast %60 : f32 to vector<1x16x128xf32>
    %63 = arith.mulf %62, %58 : vector<1x16x128xf32>
    %64 = arith.addf %57, %63 : vector<1x16x128xf32>
    %65 = vector.broadcast %61 : f32 to vector<1x16x128xf32>
    %66 = arith.mulf %65, %59 : vector<1x16x128xf32>
    %67 = arith.addf %64, %66 : vector<1x16x128xf32>
    %c1_i32 = arith.constant 1 : i32
    %68 = tpu.dynamic_rotate %46 by %c1_i32 dim 2 : vector<1x16x128xf32>, i32 -> vector<1x16x128xf32>
    %c1_i32_58 = arith.constant 1 : i32
    %69 = tpu.dynamic_rotate %47 by %c1_i32_58 dim 2 : vector<1x16x128xf32>, i32 -> vector<1x16x128xf32>
    %c2 = arith.constant 2 : index
    %70 = memref.load %arg6[%c2] : memref<98xf32, #tpu.memory_space<smem>>
    %c51 = arith.constant 51 : index
    %71 = memref.load %arg6[%c51] : memref<98xf32, #tpu.memory_space<smem>>
    %72 = vector.broadcast %70 : f32 to vector<1x16x128xf32>
    %73 = arith.mulf %72, %68 : vector<1x16x128xf32>
    %74 = arith.addf %67, %73 : vector<1x16x128xf32>
    %75 = vector.broadcast %71 : f32 to vector<1x16x128xf32>
    %76 = arith.mulf %75, %69 : vector<1x16x128xf32>
    %77 = arith.addf %74, %76 : vector<1x16x128xf32>
    %c3_59 = arith.constant 3 : index
    %78 = memref.load %arg6[%c3_59] : memref<98xf32, #tpu.memory_space<smem>>
    %c52 = arith.constant 52 : index
    %79 = memref.load %arg6[%c52] : memref<98xf32, #tpu.memory_space<smem>>
    %80 = vector.broadcast %78 : f32 to vector<1x16x128xf32>
    %81 = arith.mulf %80, %46 : vector<1x16x128xf32>
    %82 = arith.addf %77, %81 : vector<1x16x128xf32>
    %83 = vector.broadcast %79 : f32 to vector<1x16x128xf32>
    %84 = arith.mulf %83, %47 : vector<1x16x128xf32>
    %85 = arith.addf %82, %84 : vector<1x16x128xf32>
    %c127_i32 = arith.constant 127 : i32
    %86 = tpu.dynamic_rotate %46 by %c127_i32 dim 2 : vector<1x16x128xf32>, i32 -> vector<1x16x128xf32>
    %c127_i32_60 = arith.constant 127 : i32
    %87 = tpu.dynamic_rotate %47 by %c127_i32_60 dim 2 : vector<1x16x128xf32>, i32 -> vector<1x16x128xf32>
    %c4 = arith.constant 4 : index
    %88 = memref.load %arg6[%c4] : memref<98xf32, #tpu.memory_space<smem>>
    %c53 = arith.constant 53 : index
    %89 = memref.load %arg6[%c53] : memref<98xf32, #tpu.memory_space<smem>>
    %90 = vector.broadcast %88 : f32 to vector<1x16x128xf32>
    %91 = arith.mulf %90, %86 : vector<1x16x128xf32>
    %92 = arith.addf %85, %91 : vector<1x16x128xf32>
    %93 = vector.broadcast %89 : f32 to vector<1x16x128xf32>
    %94 = arith.mulf %93, %87 : vector<1x16x128xf32>
    %95 = arith.addf %92, %94 : vector<1x16x128xf32>
    %c126_i32 = arith.constant 126 : i32
    %96 = tpu.dynamic_rotate %46 by %c126_i32 dim 2 : vector<1x16x128xf32>, i32 -> vector<1x16x128xf32>
    %c126_i32_61 = arith.constant 126 : i32
    %97 = tpu.dynamic_rotate %47 by %c126_i32_61 dim 2 : vector<1x16x128xf32>, i32 -> vector<1x16x128xf32>
    %c5 = arith.constant 5 : index
    %98 = memref.load %arg6[%c5] : memref<98xf32, #tpu.memory_space<smem>>
    %c54 = arith.constant 54 : index
    %99 = memref.load %arg6[%c54] : memref<98xf32, #tpu.memory_space<smem>>
    %100 = vector.broadcast %98 : f32 to vector<1x16x128xf32>
    %101 = arith.mulf %100, %96 : vector<1x16x128xf32>
    %102 = arith.addf %95, %101 : vector<1x16x128xf32>
    %103 = vector.broadcast %99 : f32 to vector<1x16x128xf32>
    %104 = arith.mulf %103, %97 : vector<1x16x128xf32>
    %105 = arith.addf %102, %104 : vector<1x16x128xf32>
    %c125_i32 = arith.constant 125 : i32
    %106 = tpu.dynamic_rotate %46 by %c125_i32 dim 2 : vector<1x16x128xf32>, i32 -> vector<1x16x128xf32>
    %c125_i32_62 = arith.constant 125 : i32
    %107 = tpu.dynamic_rotate %47 by %c125_i32_62 dim 2 : vector<1x16x128xf32>, i32 -> vector<1x16x128xf32>
    %c6 = arith.constant 6 : index
    %108 = memref.load %arg6[%c6] : memref<98xf32, #tpu.memory_space<smem>>
    %c55 = arith.constant 55 : index
    %109 = memref.load %arg6[%c55] : memref<98xf32, #tpu.memory_space<smem>>
    %110 = vector.broadcast %108 : f32 to vector<1x16x128xf32>
    %111 = arith.mulf %110, %106 : vector<1x16x128xf32>
    %112 = arith.addf %105, %111 : vector<1x16x128xf32>
    %113 = vector.broadcast %109 : f32 to vector<1x16x128xf32>
    %114 = arith.mulf %113, %107 : vector<1x16x128xf32>
    %115 = arith.addf %112, %114 : vector<1x16x128xf32>
    %c0_63 = arith.constant 0 : index
    %c1_64 = arith.constant 1 : index
    %c0_65 = arith.constant 0 : index
    %116 = vector.load %arg11[%c0_63, %c1_64, %c0_65] : memref<1x24x128xf32, #tpu.memory_space<vmem>>, vector<1x16x128xf32>
    %c0_66 = arith.constant 0 : index
    %c1_67 = arith.constant 1 : index
    %c0_68 = arith.constant 0 : index
    %117 = vector.load %arg12[%c0_66, %c1_67, %c0_68] : memref<1x24x128xf32, #tpu.memory_space<vmem>>, vector<1x16x128xf32>
    %c3_i32_69 = arith.constant 3 : i32
    %118 = tpu.dynamic_rotate %116 by %c3_i32_69 dim 2 : vector<1x16x128xf32>, i32 -> vector<1x16x128xf32>
    %c3_i32_70 = arith.constant 3 : i32
    %119 = tpu.dynamic_rotate %117 by %c3_i32_70 dim 2 : vector<1x16x128xf32>, i32 -> vector<1x16x128xf32>
    %c7 = arith.constant 7 : index
    %120 = memref.load %arg6[%c7] : memref<98xf32, #tpu.memory_space<smem>>
    %c56 = arith.constant 56 : index
    %121 = memref.load %arg6[%c56] : memref<98xf32, #tpu.memory_space<smem>>
    %122 = vector.broadcast %120 : f32 to vector<1x16x128xf32>
    %123 = arith.mulf %122, %118 : vector<1x16x128xf32>
    %124 = arith.addf %115, %123 : vector<1x16x128xf32>
    %125 = vector.broadcast %121 : f32 to vector<1x16x128xf32>
    %126 = arith.mulf %125, %119 : vector<1x16x128xf32>
    %127 = arith.addf %124, %126 : vector<1x16x128xf32>
    %c2_i32_71 = arith.constant 2 : i32
    %128 = tpu.dynamic_rotate %116 by %c2_i32_71 dim 2 : vector<1x16x128xf32>, i32 -> vector<1x16x128xf32>
    %c2_i32_72 = arith.constant 2 : i32
    %129 = tpu.dynamic_rotate %117 by %c2_i32_72 dim 2 : vector<1x16x128xf32>, i32 -> vector<1x16x128xf32>
    %c8 = arith.constant 8 : index
    %130 = memref.load %arg6[%c8] : memref<98xf32, #tpu.memory_space<smem>>
    %c57 = arith.constant 57 : index
    %131 = memref.load %arg6[%c57] : memref<98xf32, #tpu.memory_space<smem>>
    %132 = vector.broadcast %130 : f32 to vector<1x16x128xf32>
    %133 = arith.mulf %132, %128 : vector<1x16x128xf32>
    %134 = arith.addf %127, %133 : vector<1x16x128xf32>
    %135 = vector.broadcast %131 : f32 to vector<1x16x128xf32>
    %136 = arith.mulf %135, %129 : vector<1x16x128xf32>
    %137 = arith.addf %134, %136 : vector<1x16x128xf32>
    %c1_i32_73 = arith.constant 1 : i32
    %138 = tpu.dynamic_rotate %116 by %c1_i32_73 dim 2 : vector<1x16x128xf32>, i32 -> vector<1x16x128xf32>
    %c1_i32_74 = arith.constant 1 : i32
    %139 = tpu.dynamic_rotate %117 by %c1_i32_74 dim 2 : vector<1x16x128xf32>, i32 -> vector<1x16x128xf32>
    %c9 = arith.constant 9 : index
    %140 = memref.load %arg6[%c9] : memref<98xf32, #tpu.memory_space<smem>>
    %c58 = arith.constant 58 : index
    %141 = memref.load %arg6[%c58] : memref<98xf32, #tpu.memory_space<smem>>
    %142 = vector.broadcast %140 : f32 to vector<1x16x128xf32>
    %143 = arith.mulf %142, %138 : vector<1x16x128xf32>
    %144 = arith.addf %137, %143 : vector<1x16x128xf32>
    %145 = vector.broadcast %141 : f32 to vector<1x16x128xf32>
    %146 = arith.mulf %145, %139 : vector<1x16x128xf32>
    %147 = arith.addf %144, %146 : vector<1x16x128xf32>
    %c10 = arith.constant 10 : index
    %148 = memref.load %arg6[%c10] : memref<98xf32, #tpu.memory_space<smem>>
    %c59 = arith.constant 59 : index
    %149 = memref.load %arg6[%c59] : memref<98xf32, #tpu.memory_space<smem>>
    %150 = vector.broadcast %148 : f32 to vector<1x16x128xf32>
    %151 = arith.mulf %150, %116 : vector<1x16x128xf32>
    %152 = arith.addf %147, %151 : vector<1x16x128xf32>
    %153 = vector.broadcast %149 : f32 to vector<1x16x128xf32>
    %154 = arith.mulf %153, %117 : vector<1x16x128xf32>
    %155 = arith.addf %152, %154 : vector<1x16x128xf32>
    %c127_i32_75 = arith.constant 127 : i32
    %156 = tpu.dynamic_rotate %116 by %c127_i32_75 dim 2 : vector<1x16x128xf32>, i32 -> vector<1x16x128xf32>
    %c127_i32_76 = arith.constant 127 : i32
    %157 = tpu.dynamic_rotate %117 by %c127_i32_76 dim 2 : vector<1x16x128xf32>, i32 -> vector<1x16x128xf32>
    %c11 = arith.constant 11 : index
    %158 = memref.load %arg6[%c11] : memref<98xf32, #tpu.memory_space<smem>>
    %c60 = arith.constant 60 : index
    %159 = memref.load %arg6[%c60] : memref<98xf32, #tpu.memory_space<smem>>
    %160 = vector.broadcast %158 : f32 to vector<1x16x128xf32>
    %161 = arith.mulf %160, %156 : vector<1x16x128xf32>
    %162 = arith.addf %155, %161 : vector<1x16x128xf32>
    %163 = vector.broadcast %159 : f32 to vector<1x16x128xf32>
    %164 = arith.mulf %163, %157 : vector<1x16x128xf32>
    %165 = arith.addf %162, %164 : vector<1x16x128xf32>
    %c126_i32_77 = arith.constant 126 : i32
    %166 = tpu.dynamic_rotate %116 by %c126_i32_77 dim 2 : vector<1x16x128xf32>, i32 -> vector<1x16x128xf32>
    %c126_i32_78 = arith.constant 126 : i32
    %167 = tpu.dynamic_rotate %117 by %c126_i32_78 dim 2 : vector<1x16x128xf32>, i32 -> vector<1x16x128xf32>
    %c12 = arith.constant 12 : index
    %168 = memref.load %arg6[%c12] : memref<98xf32, #tpu.memory_space<smem>>
    %c61 = arith.constant 61 : index
    %169 = memref.load %arg6[%c61] : memref<98xf32, #tpu.memory_space<smem>>
    %170 = vector.broadcast %168 : f32 to vector<1x16x128xf32>
    %171 = arith.mulf %170, %166 : vector<1x16x128xf32>
    %172 = arith.addf %165, %171 : vector<1x16x128xf32>
    %173 = vector.broadcast %169 : f32 to vector<1x16x128xf32>
    %174 = arith.mulf %173, %167 : vector<1x16x128xf32>
    %175 = arith.addf %172, %174 : vector<1x16x128xf32>
    %c125_i32_79 = arith.constant 125 : i32
    %176 = tpu.dynamic_rotate %116 by %c125_i32_79 dim 2 : vector<1x16x128xf32>, i32 -> vector<1x16x128xf32>
    %c125_i32_80 = arith.constant 125 : i32
    %177 = tpu.dynamic_rotate %117 by %c125_i32_80 dim 2 : vector<1x16x128xf32>, i32 -> vector<1x16x128xf32>
    %c13 = arith.constant 13 : index
    %178 = memref.load %arg6[%c13] : memref<98xf32, #tpu.memory_space<smem>>
    %c62 = arith.constant 62 : index
    %179 = memref.load %arg6[%c62] : memref<98xf32, #tpu.memory_space<smem>>
    %180 = vector.broadcast %178 : f32 to vector<1x16x128xf32>
    %181 = arith.mulf %180, %176 : vector<1x16x128xf32>
    %182 = arith.addf %175, %181 : vector<1x16x128xf32>
    %183 = vector.broadcast %179 : f32 to vector<1x16x128xf32>
    %184 = arith.mulf %183, %177 : vector<1x16x128xf32>
    %185 = arith.addf %182, %184 : vector<1x16x128xf32>
    %c0_81 = arith.constant 0 : index
    %c2_82 = arith.constant 2 : index
    %c0_83 = arith.constant 0 : index
    %186 = vector.load %arg11[%c0_81, %c2_82, %c0_83] : memref<1x24x128xf32, #tpu.memory_space<vmem>>, vector<1x16x128xf32>
    %c0_84 = arith.constant 0 : index
    %c2_85 = arith.constant 2 : index
    %c0_86 = arith.constant 0 : index
    %187 = vector.load %arg12[%c0_84, %c2_85, %c0_86] : memref<1x24x128xf32, #tpu.memory_space<vmem>>, vector<1x16x128xf32>
    %c3_i32_87 = arith.constant 3 : i32
    %188 = tpu.dynamic_rotate %186 by %c3_i32_87 dim 2 : vector<1x16x128xf32>, i32 -> vector<1x16x128xf32>
    %c3_i32_88 = arith.constant 3 : i32
    %189 = tpu.dynamic_rotate %187 by %c3_i32_88 dim 2 : vector<1x16x128xf32>, i32 -> vector<1x16x128xf32>
    %c14 = arith.constant 14 : index
    %190 = memref.load %arg6[%c14] : memref<98xf32, #tpu.memory_space<smem>>
    %c63 = arith.constant 63 : index
    %191 = memref.load %arg6[%c63] : memref<98xf32, #tpu.memory_space<smem>>
    %192 = vector.broadcast %190 : f32 to vector<1x16x128xf32>
    %193 = arith.mulf %192, %188 : vector<1x16x128xf32>
    %194 = arith.addf %185, %193 : vector<1x16x128xf32>
    %195 = vector.broadcast %191 : f32 to vector<1x16x128xf32>
    %196 = arith.mulf %195, %189 : vector<1x16x128xf32>
    %197 = arith.addf %194, %196 : vector<1x16x128xf32>
    %c2_i32_89 = arith.constant 2 : i32
    %198 = tpu.dynamic_rotate %186 by %c2_i32_89 dim 2 : vector<1x16x128xf32>, i32 -> vector<1x16x128xf32>
    %c2_i32_90 = arith.constant 2 : i32
    %199 = tpu.dynamic_rotate %187 by %c2_i32_90 dim 2 : vector<1x16x128xf32>, i32 -> vector<1x16x128xf32>
    %c15 = arith.constant 15 : index
    %200 = memref.load %arg6[%c15] : memref<98xf32, #tpu.memory_space<smem>>
    %c64 = arith.constant 64 : index
    %201 = memref.load %arg6[%c64] : memref<98xf32, #tpu.memory_space<smem>>
    %202 = vector.broadcast %200 : f32 to vector<1x16x128xf32>
    %203 = arith.mulf %202, %198 : vector<1x16x128xf32>
    %204 = arith.addf %197, %203 : vector<1x16x128xf32>
    %205 = vector.broadcast %201 : f32 to vector<1x16x128xf32>
    %206 = arith.mulf %205, %199 : vector<1x16x128xf32>
    %207 = arith.addf %204, %206 : vector<1x16x128xf32>
    %c1_i32_91 = arith.constant 1 : i32
    %208 = tpu.dynamic_rotate %186 by %c1_i32_91 dim 2 : vector<1x16x128xf32>, i32 -> vector<1x16x128xf32>
    %c1_i32_92 = arith.constant 1 : i32
    %209 = tpu.dynamic_rotate %187 by %c1_i32_92 dim 2 : vector<1x16x128xf32>, i32 -> vector<1x16x128xf32>
    %c16 = arith.constant 16 : index
    %210 = memref.load %arg6[%c16] : memref<98xf32, #tpu.memory_space<smem>>
    %c65 = arith.constant 65 : index
    %211 = memref.load %arg6[%c65] : memref<98xf32, #tpu.memory_space<smem>>
    %212 = vector.broadcast %210 : f32 to vector<1x16x128xf32>
    %213 = arith.mulf %212, %208 : vector<1x16x128xf32>
    %214 = arith.addf %207, %213 : vector<1x16x128xf32>
    %215 = vector.broadcast %211 : f32 to vector<1x16x128xf32>
    %216 = arith.mulf %215, %209 : vector<1x16x128xf32>
    %217 = arith.addf %214, %216 : vector<1x16x128xf32>
    %c17 = arith.constant 17 : index
    %218 = memref.load %arg6[%c17] : memref<98xf32, #tpu.memory_space<smem>>
    %c66 = arith.constant 66 : index
    %219 = memref.load %arg6[%c66] : memref<98xf32, #tpu.memory_space<smem>>
    %220 = vector.broadcast %218 : f32 to vector<1x16x128xf32>
    %221 = arith.mulf %220, %186 : vector<1x16x128xf32>
    %222 = arith.addf %217, %221 : vector<1x16x128xf32>
    %223 = vector.broadcast %219 : f32 to vector<1x16x128xf32>
    %224 = arith.mulf %223, %187 : vector<1x16x128xf32>
    %225 = arith.addf %222, %224 : vector<1x16x128xf32>
    %c127_i32_93 = arith.constant 127 : i32
    %226 = tpu.dynamic_rotate %186 by %c127_i32_93 dim 2 : vector<1x16x128xf32>, i32 -> vector<1x16x128xf32>
    %c127_i32_94 = arith.constant 127 : i32
    %227 = tpu.dynamic_rotate %187 by %c127_i32_94 dim 2 : vector<1x16x128xf32>, i32 -> vector<1x16x128xf32>
    %c18 = arith.constant 18 : index
    %228 = memref.load %arg6[%c18] : memref<98xf32, #tpu.memory_space<smem>>
    %c67 = arith.constant 67 : index
    %229 = memref.load %arg6[%c67] : memref<98xf32, #tpu.memory_space<smem>>
    %230 = vector.broadcast %228 : f32 to vector<1x16x128xf32>
    %231 = arith.mulf %230, %226 : vector<1x16x128xf32>
    %232 = arith.addf %225, %231 : vector<1x16x128xf32>
    %233 = vector.broadcast %229 : f32 to vector<1x16x128xf32>
    %234 = arith.mulf %233, %227 : vector<1x16x128xf32>
    %235 = arith.addf %232, %234 : vector<1x16x128xf32>
    %c126_i32_95 = arith.constant 126 : i32
    %236 = tpu.dynamic_rotate %186 by %c126_i32_95 dim 2 : vector<1x16x128xf32>, i32 -> vector<1x16x128xf32>
    %c126_i32_96 = arith.constant 126 : i32
    %237 = tpu.dynamic_rotate %187 by %c126_i32_96 dim 2 : vector<1x16x128xf32>, i32 -> vector<1x16x128xf32>
    %c19 = arith.constant 19 : index
    %238 = memref.load %arg6[%c19] : memref<98xf32, #tpu.memory_space<smem>>
    %c68 = arith.constant 68 : index
    %239 = memref.load %arg6[%c68] : memref<98xf32, #tpu.memory_space<smem>>
    %240 = vector.broadcast %238 : f32 to vector<1x16x128xf32>
    %241 = arith.mulf %240, %236 : vector<1x16x128xf32>
    %242 = arith.addf %235, %241 : vector<1x16x128xf32>
    %243 = vector.broadcast %239 : f32 to vector<1x16x128xf32>
    %244 = arith.mulf %243, %237 : vector<1x16x128xf32>
    %245 = arith.addf %242, %244 : vector<1x16x128xf32>
    %c125_i32_97 = arith.constant 125 : i32
    %246 = tpu.dynamic_rotate %186 by %c125_i32_97 dim 2 : vector<1x16x128xf32>, i32 -> vector<1x16x128xf32>
    %c125_i32_98 = arith.constant 125 : i32
    %247 = tpu.dynamic_rotate %187 by %c125_i32_98 dim 2 : vector<1x16x128xf32>, i32 -> vector<1x16x128xf32>
    %c20 = arith.constant 20 : index
    %248 = memref.load %arg6[%c20] : memref<98xf32, #tpu.memory_space<smem>>
    %c69 = arith.constant 69 : index
    %249 = memref.load %arg6[%c69] : memref<98xf32, #tpu.memory_space<smem>>
    %250 = vector.broadcast %248 : f32 to vector<1x16x128xf32>
    %251 = arith.mulf %250, %246 : vector<1x16x128xf32>
    %252 = arith.addf %245, %251 : vector<1x16x128xf32>
    %253 = vector.broadcast %249 : f32 to vector<1x16x128xf32>
    %254 = arith.mulf %253, %247 : vector<1x16x128xf32>
    %255 = arith.addf %252, %254 : vector<1x16x128xf32>
    %c0_99 = arith.constant 0 : index
    %c3_100 = arith.constant 3 : index
    %c0_101 = arith.constant 0 : index
    %256 = vector.load %arg11[%c0_99, %c3_100, %c0_101] : memref<1x24x128xf32, #tpu.memory_space<vmem>>, vector<1x16x128xf32>
    %c0_102 = arith.constant 0 : index
    %c3_103 = arith.constant 3 : index
    %c0_104 = arith.constant 0 : index
    %257 = vector.load %arg12[%c0_102, %c3_103, %c0_104] : memref<1x24x128xf32, #tpu.memory_space<vmem>>, vector<1x16x128xf32>
    %c3_i32_105 = arith.constant 3 : i32
    %258 = tpu.dynamic_rotate %256 by %c3_i32_105 dim 2 : vector<1x16x128xf32>, i32 -> vector<1x16x128xf32>
    %c3_i32_106 = arith.constant 3 : i32
    %259 = tpu.dynamic_rotate %257 by %c3_i32_106 dim 2 : vector<1x16x128xf32>, i32 -> vector<1x16x128xf32>
    %c21 = arith.constant 21 : index
    %260 = memref.load %arg6[%c21] : memref<98xf32, #tpu.memory_space<smem>>
    %c70 = arith.constant 70 : index
    %261 = memref.load %arg6[%c70] : memref<98xf32, #tpu.memory_space<smem>>
    %262 = vector.broadcast %260 : f32 to vector<1x16x128xf32>
    %263 = arith.mulf %262, %258 : vector<1x16x128xf32>
    %264 = arith.addf %255, %263 : vector<1x16x128xf32>
    %265 = vector.broadcast %261 : f32 to vector<1x16x128xf32>
    %266 = arith.mulf %265, %259 : vector<1x16x128xf32>
    %267 = arith.addf %264, %266 : vector<1x16x128xf32>
    %c2_i32_107 = arith.constant 2 : i32
    %268 = tpu.dynamic_rotate %256 by %c2_i32_107 dim 2 : vector<1x16x128xf32>, i32 -> vector<1x16x128xf32>
    %c2_i32_108 = arith.constant 2 : i32
    %269 = tpu.dynamic_rotate %257 by %c2_i32_108 dim 2 : vector<1x16x128xf32>, i32 -> vector<1x16x128xf32>
    %c22 = arith.constant 22 : index
    %270 = memref.load %arg6[%c22] : memref<98xf32, #tpu.memory_space<smem>>
    %c71 = arith.constant 71 : index
    %271 = memref.load %arg6[%c71] : memref<98xf32, #tpu.memory_space<smem>>
    %272 = vector.broadcast %270 : f32 to vector<1x16x128xf32>
    %273 = arith.mulf %272, %268 : vector<1x16x128xf32>
    %274 = arith.addf %267, %273 : vector<1x16x128xf32>
    %275 = vector.broadcast %271 : f32 to vector<1x16x128xf32>
    %276 = arith.mulf %275, %269 : vector<1x16x128xf32>
    %277 = arith.addf %274, %276 : vector<1x16x128xf32>
    %c1_i32_109 = arith.constant 1 : i32
    %278 = tpu.dynamic_rotate %256 by %c1_i32_109 dim 2 : vector<1x16x128xf32>, i32 -> vector<1x16x128xf32>
    %c1_i32_110 = arith.constant 1 : i32
    %279 = tpu.dynamic_rotate %257 by %c1_i32_110 dim 2 : vector<1x16x128xf32>, i32 -> vector<1x16x128xf32>
    %c23 = arith.constant 23 : index
    %280 = memref.load %arg6[%c23] : memref<98xf32, #tpu.memory_space<smem>>
    %c72 = arith.constant 72 : index
    %281 = memref.load %arg6[%c72] : memref<98xf32, #tpu.memory_space<smem>>
    %282 = vector.broadcast %280 : f32 to vector<1x16x128xf32>
    %283 = arith.mulf %282, %278 : vector<1x16x128xf32>
    %284 = arith.addf %277, %283 : vector<1x16x128xf32>
    %285 = vector.broadcast %281 : f32 to vector<1x16x128xf32>
    %286 = arith.mulf %285, %279 : vector<1x16x128xf32>
    %287 = arith.addf %284, %286 : vector<1x16x128xf32>
    %c24 = arith.constant 24 : index
    %288 = memref.load %arg6[%c24] : memref<98xf32, #tpu.memory_space<smem>>
    %c73 = arith.constant 73 : index
    %289 = memref.load %arg6[%c73] : memref<98xf32, #tpu.memory_space<smem>>
    %290 = vector.broadcast %288 : f32 to vector<1x16x128xf32>
    %291 = arith.mulf %290, %256 : vector<1x16x128xf32>
    %292 = arith.addf %287, %291 : vector<1x16x128xf32>
    %293 = vector.broadcast %289 : f32 to vector<1x16x128xf32>
    %294 = arith.mulf %293, %257 : vector<1x16x128xf32>
    %295 = arith.addf %292, %294 : vector<1x16x128xf32>
    %c127_i32_111 = arith.constant 127 : i32
    %296 = tpu.dynamic_rotate %256 by %c127_i32_111 dim 2 : vector<1x16x128xf32>, i32 -> vector<1x16x128xf32>
    %c127_i32_112 = arith.constant 127 : i32
    %297 = tpu.dynamic_rotate %257 by %c127_i32_112 dim 2 : vector<1x16x128xf32>, i32 -> vector<1x16x128xf32>
    %c25 = arith.constant 25 : index
    %298 = memref.load %arg6[%c25] : memref<98xf32, #tpu.memory_space<smem>>
    %c74 = arith.constant 74 : index
    %299 = memref.load %arg6[%c74] : memref<98xf32, #tpu.memory_space<smem>>
    %300 = vector.broadcast %298 : f32 to vector<1x16x128xf32>
    %301 = arith.mulf %300, %296 : vector<1x16x128xf32>
    %302 = arith.addf %295, %301 : vector<1x16x128xf32>
    %303 = vector.broadcast %299 : f32 to vector<1x16x128xf32>
    %304 = arith.mulf %303, %297 : vector<1x16x128xf32>
    %305 = arith.addf %302, %304 : vector<1x16x128xf32>
    %c126_i32_113 = arith.constant 126 : i32
    %306 = tpu.dynamic_rotate %256 by %c126_i32_113 dim 2 : vector<1x16x128xf32>, i32 -> vector<1x16x128xf32>
    %c126_i32_114 = arith.constant 126 : i32
    %307 = tpu.dynamic_rotate %257 by %c126_i32_114 dim 2 : vector<1x16x128xf32>, i32 -> vector<1x16x128xf32>
    %c26 = arith.constant 26 : index
    %308 = memref.load %arg6[%c26] : memref<98xf32, #tpu.memory_space<smem>>
    %c75 = arith.constant 75 : index
    %309 = memref.load %arg6[%c75] : memref<98xf32, #tpu.memory_space<smem>>
    %310 = vector.broadcast %308 : f32 to vector<1x16x128xf32>
    %311 = arith.mulf %310, %306 : vector<1x16x128xf32>
    %312 = arith.addf %305, %311 : vector<1x16x128xf32>
    %313 = vector.broadcast %309 : f32 to vector<1x16x128xf32>
    %314 = arith.mulf %313, %307 : vector<1x16x128xf32>
    %315 = arith.addf %312, %314 : vector<1x16x128xf32>
    %c125_i32_115 = arith.constant 125 : i32
    %316 = tpu.dynamic_rotate %256 by %c125_i32_115 dim 2 : vector<1x16x128xf32>, i32 -> vector<1x16x128xf32>
    %c125_i32_116 = arith.constant 125 : i32
    %317 = tpu.dynamic_rotate %257 by %c125_i32_116 dim 2 : vector<1x16x128xf32>, i32 -> vector<1x16x128xf32>
    %c27 = arith.constant 27 : index
    %318 = memref.load %arg6[%c27] : memref<98xf32, #tpu.memory_space<smem>>
    %c76 = arith.constant 76 : index
    %319 = memref.load %arg6[%c76] : memref<98xf32, #tpu.memory_space<smem>>
    %320 = vector.broadcast %318 : f32 to vector<1x16x128xf32>
    %321 = arith.mulf %320, %316 : vector<1x16x128xf32>
    %322 = arith.addf %315, %321 : vector<1x16x128xf32>
    %323 = vector.broadcast %319 : f32 to vector<1x16x128xf32>
    %324 = arith.mulf %323, %317 : vector<1x16x128xf32>
    %325 = arith.addf %322, %324 : vector<1x16x128xf32>
    %c0_117 = arith.constant 0 : index
    %c4_118 = arith.constant 4 : index
    %c0_119 = arith.constant 0 : index
    %326 = vector.load %arg11[%c0_117, %c4_118, %c0_119] : memref<1x24x128xf32, #tpu.memory_space<vmem>>, vector<1x16x128xf32>
    %c0_120 = arith.constant 0 : index
    %c4_121 = arith.constant 4 : index
    %c0_122 = arith.constant 0 : index
    %327 = vector.load %arg12[%c0_120, %c4_121, %c0_122] : memref<1x24x128xf32, #tpu.memory_space<vmem>>, vector<1x16x128xf32>
    %c3_i32_123 = arith.constant 3 : i32
    %328 = tpu.dynamic_rotate %326 by %c3_i32_123 dim 2 : vector<1x16x128xf32>, i32 -> vector<1x16x128xf32>
    %c3_i32_124 = arith.constant 3 : i32
    %329 = tpu.dynamic_rotate %327 by %c3_i32_124 dim 2 : vector<1x16x128xf32>, i32 -> vector<1x16x128xf32>
    %c28 = arith.constant 28 : index
    %330 = memref.load %arg6[%c28] : memref<98xf32, #tpu.memory_space<smem>>
    %c77 = arith.constant 77 : index
    %331 = memref.load %arg6[%c77] : memref<98xf32, #tpu.memory_space<smem>>
    %332 = vector.broadcast %330 : f32 to vector<1x16x128xf32>
    %333 = arith.mulf %332, %328 : vector<1x16x128xf32>
    %334 = arith.addf %325, %333 : vector<1x16x128xf32>
    %335 = vector.broadcast %331 : f32 to vector<1x16x128xf32>
    %336 = arith.mulf %335, %329 : vector<1x16x128xf32>
    %337 = arith.addf %334, %336 : vector<1x16x128xf32>
    %c2_i32_125 = arith.constant 2 : i32
    %338 = tpu.dynamic_rotate %326 by %c2_i32_125 dim 2 : vector<1x16x128xf32>, i32 -> vector<1x16x128xf32>
    %c2_i32_126 = arith.constant 2 : i32
    %339 = tpu.dynamic_rotate %327 by %c2_i32_126 dim 2 : vector<1x16x128xf32>, i32 -> vector<1x16x128xf32>
    %c29 = arith.constant 29 : index
    %340 = memref.load %arg6[%c29] : memref<98xf32, #tpu.memory_space<smem>>
    %c78 = arith.constant 78 : index
    %341 = memref.load %arg6[%c78] : memref<98xf32, #tpu.memory_space<smem>>
    %342 = vector.broadcast %340 : f32 to vector<1x16x128xf32>
    %343 = arith.mulf %342, %338 : vector<1x16x128xf32>
    %344 = arith.addf %337, %343 : vector<1x16x128xf32>
    %345 = vector.broadcast %341 : f32 to vector<1x16x128xf32>
    %346 = arith.mulf %345, %339 : vector<1x16x128xf32>
    %347 = arith.addf %344, %346 : vector<1x16x128xf32>
    %c1_i32_127 = arith.constant 1 : i32
    %348 = tpu.dynamic_rotate %326 by %c1_i32_127 dim 2 : vector<1x16x128xf32>, i32 -> vector<1x16x128xf32>
    %c1_i32_128 = arith.constant 1 : i32
    %349 = tpu.dynamic_rotate %327 by %c1_i32_128 dim 2 : vector<1x16x128xf32>, i32 -> vector<1x16x128xf32>
    %c30 = arith.constant 30 : index
    %350 = memref.load %arg6[%c30] : memref<98xf32, #tpu.memory_space<smem>>
    %c79 = arith.constant 79 : index
    %351 = memref.load %arg6[%c79] : memref<98xf32, #tpu.memory_space<smem>>
    %352 = vector.broadcast %350 : f32 to vector<1x16x128xf32>
    %353 = arith.mulf %352, %348 : vector<1x16x128xf32>
    %354 = arith.addf %347, %353 : vector<1x16x128xf32>
    %355 = vector.broadcast %351 : f32 to vector<1x16x128xf32>
    %356 = arith.mulf %355, %349 : vector<1x16x128xf32>
    %357 = arith.addf %354, %356 : vector<1x16x128xf32>
    %c31 = arith.constant 31 : index
    %358 = memref.load %arg6[%c31] : memref<98xf32, #tpu.memory_space<smem>>
    %c80 = arith.constant 80 : index
    %359 = memref.load %arg6[%c80] : memref<98xf32, #tpu.memory_space<smem>>
    %360 = vector.broadcast %358 : f32 to vector<1x16x128xf32>
    %361 = arith.mulf %360, %326 : vector<1x16x128xf32>
    %362 = arith.addf %357, %361 : vector<1x16x128xf32>
    %363 = vector.broadcast %359 : f32 to vector<1x16x128xf32>
    %364 = arith.mulf %363, %327 : vector<1x16x128xf32>
    %365 = arith.addf %362, %364 : vector<1x16x128xf32>
    %c127_i32_129 = arith.constant 127 : i32
    %366 = tpu.dynamic_rotate %326 by %c127_i32_129 dim 2 : vector<1x16x128xf32>, i32 -> vector<1x16x128xf32>
    %c127_i32_130 = arith.constant 127 : i32
    %367 = tpu.dynamic_rotate %327 by %c127_i32_130 dim 2 : vector<1x16x128xf32>, i32 -> vector<1x16x128xf32>
    %c32 = arith.constant 32 : index
    %368 = memref.load %arg6[%c32] : memref<98xf32, #tpu.memory_space<smem>>
    %c81 = arith.constant 81 : index
    %369 = memref.load %arg6[%c81] : memref<98xf32, #tpu.memory_space<smem>>
    %370 = vector.broadcast %368 : f32 to vector<1x16x128xf32>
    %371 = arith.mulf %370, %366 : vector<1x16x128xf32>
    %372 = arith.addf %365, %371 : vector<1x16x128xf32>
    %373 = vector.broadcast %369 : f32 to vector<1x16x128xf32>
    %374 = arith.mulf %373, %367 : vector<1x16x128xf32>
    %375 = arith.addf %372, %374 : vector<1x16x128xf32>
    %c126_i32_131 = arith.constant 126 : i32
    %376 = tpu.dynamic_rotate %326 by %c126_i32_131 dim 2 : vector<1x16x128xf32>, i32 -> vector<1x16x128xf32>
    %c126_i32_132 = arith.constant 126 : i32
    %377 = tpu.dynamic_rotate %327 by %c126_i32_132 dim 2 : vector<1x16x128xf32>, i32 -> vector<1x16x128xf32>
    %c33 = arith.constant 33 : index
    %378 = memref.load %arg6[%c33] : memref<98xf32, #tpu.memory_space<smem>>
    %c82 = arith.constant 82 : index
    %379 = memref.load %arg6[%c82] : memref<98xf32, #tpu.memory_space<smem>>
    %380 = vector.broadcast %378 : f32 to vector<1x16x128xf32>
    %381 = arith.mulf %380, %376 : vector<1x16x128xf32>
    %382 = arith.addf %375, %381 : vector<1x16x128xf32>
    %383 = vector.broadcast %379 : f32 to vector<1x16x128xf32>
    %384 = arith.mulf %383, %377 : vector<1x16x128xf32>
    %385 = arith.addf %382, %384 : vector<1x16x128xf32>
    %c125_i32_133 = arith.constant 125 : i32
    %386 = tpu.dynamic_rotate %326 by %c125_i32_133 dim 2 : vector<1x16x128xf32>, i32 -> vector<1x16x128xf32>
    %c125_i32_134 = arith.constant 125 : i32
    %387 = tpu.dynamic_rotate %327 by %c125_i32_134 dim 2 : vector<1x16x128xf32>, i32 -> vector<1x16x128xf32>
    %c34 = arith.constant 34 : index
    %388 = memref.load %arg6[%c34] : memref<98xf32, #tpu.memory_space<smem>>
    %c83 = arith.constant 83 : index
    %389 = memref.load %arg6[%c83] : memref<98xf32, #tpu.memory_space<smem>>
    %390 = vector.broadcast %388 : f32 to vector<1x16x128xf32>
    %391 = arith.mulf %390, %386 : vector<1x16x128xf32>
    %392 = arith.addf %385, %391 : vector<1x16x128xf32>
    %393 = vector.broadcast %389 : f32 to vector<1x16x128xf32>
    %394 = arith.mulf %393, %387 : vector<1x16x128xf32>
    %395 = arith.addf %392, %394 : vector<1x16x128xf32>
    %c0_135 = arith.constant 0 : index
    %c5_136 = arith.constant 5 : index
    %c0_137 = arith.constant 0 : index
    %396 = vector.load %arg11[%c0_135, %c5_136, %c0_137] : memref<1x24x128xf32, #tpu.memory_space<vmem>>, vector<1x16x128xf32>
    %c0_138 = arith.constant 0 : index
    %c5_139 = arith.constant 5 : index
    %c0_140 = arith.constant 0 : index
    %397 = vector.load %arg12[%c0_138, %c5_139, %c0_140] : memref<1x24x128xf32, #tpu.memory_space<vmem>>, vector<1x16x128xf32>
    %c3_i32_141 = arith.constant 3 : i32
    %398 = tpu.dynamic_rotate %396 by %c3_i32_141 dim 2 : vector<1x16x128xf32>, i32 -> vector<1x16x128xf32>
    %c3_i32_142 = arith.constant 3 : i32
    %399 = tpu.dynamic_rotate %397 by %c3_i32_142 dim 2 : vector<1x16x128xf32>, i32 -> vector<1x16x128xf32>
    %c35 = arith.constant 35 : index
    %400 = memref.load %arg6[%c35] : memref<98xf32, #tpu.memory_space<smem>>
    %c84 = arith.constant 84 : index
    %401 = memref.load %arg6[%c84] : memref<98xf32, #tpu.memory_space<smem>>
    %402 = vector.broadcast %400 : f32 to vector<1x16x128xf32>
    %403 = arith.mulf %402, %398 : vector<1x16x128xf32>
    %404 = arith.addf %395, %403 : vector<1x16x128xf32>
    %405 = vector.broadcast %401 : f32 to vector<1x16x128xf32>
    %406 = arith.mulf %405, %399 : vector<1x16x128xf32>
    %407 = arith.addf %404, %406 : vector<1x16x128xf32>
    %c2_i32_143 = arith.constant 2 : i32
    %408 = tpu.dynamic_rotate %396 by %c2_i32_143 dim 2 : vector<1x16x128xf32>, i32 -> vector<1x16x128xf32>
    %c2_i32_144 = arith.constant 2 : i32
    %409 = tpu.dynamic_rotate %397 by %c2_i32_144 dim 2 : vector<1x16x128xf32>, i32 -> vector<1x16x128xf32>
    %c36 = arith.constant 36 : index
    %410 = memref.load %arg6[%c36] : memref<98xf32, #tpu.memory_space<smem>>
    %c85 = arith.constant 85 : index
    %411 = memref.load %arg6[%c85] : memref<98xf32, #tpu.memory_space<smem>>
    %412 = vector.broadcast %410 : f32 to vector<1x16x128xf32>
    %413 = arith.mulf %412, %408 : vector<1x16x128xf32>
    %414 = arith.addf %407, %413 : vector<1x16x128xf32>
    %415 = vector.broadcast %411 : f32 to vector<1x16x128xf32>
    %416 = arith.mulf %415, %409 : vector<1x16x128xf32>
    %417 = arith.addf %414, %416 : vector<1x16x128xf32>
    %c1_i32_145 = arith.constant 1 : i32
    %418 = tpu.dynamic_rotate %396 by %c1_i32_145 dim 2 : vector<1x16x128xf32>, i32 -> vector<1x16x128xf32>
    %c1_i32_146 = arith.constant 1 : i32
    %419 = tpu.dynamic_rotate %397 by %c1_i32_146 dim 2 : vector<1x16x128xf32>, i32 -> vector<1x16x128xf32>
    %c37 = arith.constant 37 : index
    %420 = memref.load %arg6[%c37] : memref<98xf32, #tpu.memory_space<smem>>
    %c86 = arith.constant 86 : index
    %421 = memref.load %arg6[%c86] : memref<98xf32, #tpu.memory_space<smem>>
    %422 = vector.broadcast %420 : f32 to vector<1x16x128xf32>
    %423 = arith.mulf %422, %418 : vector<1x16x128xf32>
    %424 = arith.addf %417, %423 : vector<1x16x128xf32>
    %425 = vector.broadcast %421 : f32 to vector<1x16x128xf32>
    %426 = arith.mulf %425, %419 : vector<1x16x128xf32>
    %427 = arith.addf %424, %426 : vector<1x16x128xf32>
    %c38 = arith.constant 38 : index
    %428 = memref.load %arg6[%c38] : memref<98xf32, #tpu.memory_space<smem>>
    %c87 = arith.constant 87 : index
    %429 = memref.load %arg6[%c87] : memref<98xf32, #tpu.memory_space<smem>>
    %430 = vector.broadcast %428 : f32 to vector<1x16x128xf32>
    %431 = arith.mulf %430, %396 : vector<1x16x128xf32>
    %432 = arith.addf %427, %431 : vector<1x16x128xf32>
    %433 = vector.broadcast %429 : f32 to vector<1x16x128xf32>
    %434 = arith.mulf %433, %397 : vector<1x16x128xf32>
    %435 = arith.addf %432, %434 : vector<1x16x128xf32>
    %c127_i32_147 = arith.constant 127 : i32
    %436 = tpu.dynamic_rotate %396 by %c127_i32_147 dim 2 : vector<1x16x128xf32>, i32 -> vector<1x16x128xf32>
    %c127_i32_148 = arith.constant 127 : i32
    %437 = tpu.dynamic_rotate %397 by %c127_i32_148 dim 2 : vector<1x16x128xf32>, i32 -> vector<1x16x128xf32>
    %c39 = arith.constant 39 : index
    %438 = memref.load %arg6[%c39] : memref<98xf32, #tpu.memory_space<smem>>
    %c88 = arith.constant 88 : index
    %439 = memref.load %arg6[%c88] : memref<98xf32, #tpu.memory_space<smem>>
    %440 = vector.broadcast %438 : f32 to vector<1x16x128xf32>
    %441 = arith.mulf %440, %436 : vector<1x16x128xf32>
    %442 = arith.addf %435, %441 : vector<1x16x128xf32>
    %443 = vector.broadcast %439 : f32 to vector<1x16x128xf32>
    %444 = arith.mulf %443, %437 : vector<1x16x128xf32>
    %445 = arith.addf %442, %444 : vector<1x16x128xf32>
    %c126_i32_149 = arith.constant 126 : i32
    %446 = tpu.dynamic_rotate %396 by %c126_i32_149 dim 2 : vector<1x16x128xf32>, i32 -> vector<1x16x128xf32>
    %c126_i32_150 = arith.constant 126 : i32
    %447 = tpu.dynamic_rotate %397 by %c126_i32_150 dim 2 : vector<1x16x128xf32>, i32 -> vector<1x16x128xf32>
    %c40 = arith.constant 40 : index
    %448 = memref.load %arg6[%c40] : memref<98xf32, #tpu.memory_space<smem>>
    %c89 = arith.constant 89 : index
    %449 = memref.load %arg6[%c89] : memref<98xf32, #tpu.memory_space<smem>>
    %450 = vector.broadcast %448 : f32 to vector<1x16x128xf32>
    %451 = arith.mulf %450, %446 : vector<1x16x128xf32>
    %452 = arith.addf %445, %451 : vector<1x16x128xf32>
    %453 = vector.broadcast %449 : f32 to vector<1x16x128xf32>
    %454 = arith.mulf %453, %447 : vector<1x16x128xf32>
    %455 = arith.addf %452, %454 : vector<1x16x128xf32>
    %c125_i32_151 = arith.constant 125 : i32
    %456 = tpu.dynamic_rotate %396 by %c125_i32_151 dim 2 : vector<1x16x128xf32>, i32 -> vector<1x16x128xf32>
    %c125_i32_152 = arith.constant 125 : i32
    %457 = tpu.dynamic_rotate %397 by %c125_i32_152 dim 2 : vector<1x16x128xf32>, i32 -> vector<1x16x128xf32>
    %c41 = arith.constant 41 : index
    %458 = memref.load %arg6[%c41] : memref<98xf32, #tpu.memory_space<smem>>
    %c90 = arith.constant 90 : index
    %459 = memref.load %arg6[%c90] : memref<98xf32, #tpu.memory_space<smem>>
    %460 = vector.broadcast %458 : f32 to vector<1x16x128xf32>
    %461 = arith.mulf %460, %456 : vector<1x16x128xf32>
    %462 = arith.addf %455, %461 : vector<1x16x128xf32>
    %463 = vector.broadcast %459 : f32 to vector<1x16x128xf32>
    %464 = arith.mulf %463, %457 : vector<1x16x128xf32>
    %465 = arith.addf %462, %464 : vector<1x16x128xf32>
    %c0_153 = arith.constant 0 : index
    %c6_154 = arith.constant 6 : index
    %c0_155 = arith.constant 0 : index
    %466 = vector.load %arg11[%c0_153, %c6_154, %c0_155] : memref<1x24x128xf32, #tpu.memory_space<vmem>>, vector<1x16x128xf32>
    %c0_156 = arith.constant 0 : index
    %c6_157 = arith.constant 6 : index
    %c0_158 = arith.constant 0 : index
    %467 = vector.load %arg12[%c0_156, %c6_157, %c0_158] : memref<1x24x128xf32, #tpu.memory_space<vmem>>, vector<1x16x128xf32>
    %c3_i32_159 = arith.constant 3 : i32
    %468 = tpu.dynamic_rotate %466 by %c3_i32_159 dim 2 : vector<1x16x128xf32>, i32 -> vector<1x16x128xf32>
    %c3_i32_160 = arith.constant 3 : i32
    %469 = tpu.dynamic_rotate %467 by %c3_i32_160 dim 2 : vector<1x16x128xf32>, i32 -> vector<1x16x128xf32>
    %c42 = arith.constant 42 : index
    %470 = memref.load %arg6[%c42] : memref<98xf32, #tpu.memory_space<smem>>
    %c91 = arith.constant 91 : index
    %471 = memref.load %arg6[%c91] : memref<98xf32, #tpu.memory_space<smem>>
    %472 = vector.broadcast %470 : f32 to vector<1x16x128xf32>
    %473 = arith.mulf %472, %468 : vector<1x16x128xf32>
    %474 = arith.addf %465, %473 : vector<1x16x128xf32>
    %475 = vector.broadcast %471 : f32 to vector<1x16x128xf32>
    %476 = arith.mulf %475, %469 : vector<1x16x128xf32>
    %477 = arith.addf %474, %476 : vector<1x16x128xf32>
    %c2_i32_161 = arith.constant 2 : i32
    %478 = tpu.dynamic_rotate %466 by %c2_i32_161 dim 2 : vector<1x16x128xf32>, i32 -> vector<1x16x128xf32>
    %c2_i32_162 = arith.constant 2 : i32
    %479 = tpu.dynamic_rotate %467 by %c2_i32_162 dim 2 : vector<1x16x128xf32>, i32 -> vector<1x16x128xf32>
    %c43 = arith.constant 43 : index
    %480 = memref.load %arg6[%c43] : memref<98xf32, #tpu.memory_space<smem>>
    %c92 = arith.constant 92 : index
    %481 = memref.load %arg6[%c92] : memref<98xf32, #tpu.memory_space<smem>>
    %482 = vector.broadcast %480 : f32 to vector<1x16x128xf32>
    %483 = arith.mulf %482, %478 : vector<1x16x128xf32>
    %484 = arith.addf %477, %483 : vector<1x16x128xf32>
    %485 = vector.broadcast %481 : f32 to vector<1x16x128xf32>
    %486 = arith.mulf %485, %479 : vector<1x16x128xf32>
    %487 = arith.addf %484, %486 : vector<1x16x128xf32>
    %c1_i32_163 = arith.constant 1 : i32
    %488 = tpu.dynamic_rotate %466 by %c1_i32_163 dim 2 : vector<1x16x128xf32>, i32 -> vector<1x16x128xf32>
    %c1_i32_164 = arith.constant 1 : i32
    %489 = tpu.dynamic_rotate %467 by %c1_i32_164 dim 2 : vector<1x16x128xf32>, i32 -> vector<1x16x128xf32>
    %c44 = arith.constant 44 : index
    %490 = memref.load %arg6[%c44] : memref<98xf32, #tpu.memory_space<smem>>
    %c93 = arith.constant 93 : index
    %491 = memref.load %arg6[%c93] : memref<98xf32, #tpu.memory_space<smem>>
    %492 = vector.broadcast %490 : f32 to vector<1x16x128xf32>
    %493 = arith.mulf %492, %488 : vector<1x16x128xf32>
    %494 = arith.addf %487, %493 : vector<1x16x128xf32>
    %495 = vector.broadcast %491 : f32 to vector<1x16x128xf32>
    %496 = arith.mulf %495, %489 : vector<1x16x128xf32>
    %497 = arith.addf %494, %496 : vector<1x16x128xf32>
    %c45 = arith.constant 45 : index
    %498 = memref.load %arg6[%c45] : memref<98xf32, #tpu.memory_space<smem>>
    %c94 = arith.constant 94 : index
    %499 = memref.load %arg6[%c94] : memref<98xf32, #tpu.memory_space<smem>>
    %500 = vector.broadcast %498 : f32 to vector<1x16x128xf32>
    %501 = arith.mulf %500, %466 : vector<1x16x128xf32>
    %502 = arith.addf %497, %501 : vector<1x16x128xf32>
    %503 = vector.broadcast %499 : f32 to vector<1x16x128xf32>
    %504 = arith.mulf %503, %467 : vector<1x16x128xf32>
    %505 = arith.addf %502, %504 : vector<1x16x128xf32>
    %c127_i32_165 = arith.constant 127 : i32
    %506 = tpu.dynamic_rotate %466 by %c127_i32_165 dim 2 : vector<1x16x128xf32>, i32 -> vector<1x16x128xf32>
    %c127_i32_166 = arith.constant 127 : i32
    %507 = tpu.dynamic_rotate %467 by %c127_i32_166 dim 2 : vector<1x16x128xf32>, i32 -> vector<1x16x128xf32>
    %c46 = arith.constant 46 : index
    %508 = memref.load %arg6[%c46] : memref<98xf32, #tpu.memory_space<smem>>
    %c95 = arith.constant 95 : index
    %509 = memref.load %arg6[%c95] : memref<98xf32, #tpu.memory_space<smem>>
    %510 = vector.broadcast %508 : f32 to vector<1x16x128xf32>
    %511 = arith.mulf %510, %506 : vector<1x16x128xf32>
    %512 = arith.addf %505, %511 : vector<1x16x128xf32>
    %513 = vector.broadcast %509 : f32 to vector<1x16x128xf32>
    %514 = arith.mulf %513, %507 : vector<1x16x128xf32>
    %515 = arith.addf %512, %514 : vector<1x16x128xf32>
    %c126_i32_167 = arith.constant 126 : i32
    %516 = tpu.dynamic_rotate %466 by %c126_i32_167 dim 2 : vector<1x16x128xf32>, i32 -> vector<1x16x128xf32>
    %c126_i32_168 = arith.constant 126 : i32
    %517 = tpu.dynamic_rotate %467 by %c126_i32_168 dim 2 : vector<1x16x128xf32>, i32 -> vector<1x16x128xf32>
    %c47 = arith.constant 47 : index
    %518 = memref.load %arg6[%c47] : memref<98xf32, #tpu.memory_space<smem>>
    %c96 = arith.constant 96 : index
    %519 = memref.load %arg6[%c96] : memref<98xf32, #tpu.memory_space<smem>>
    %520 = vector.broadcast %518 : f32 to vector<1x16x128xf32>
    %521 = arith.mulf %520, %516 : vector<1x16x128xf32>
    %522 = arith.addf %515, %521 : vector<1x16x128xf32>
    %523 = vector.broadcast %519 : f32 to vector<1x16x128xf32>
    %524 = arith.mulf %523, %517 : vector<1x16x128xf32>
    %525 = arith.addf %522, %524 : vector<1x16x128xf32>
    %c125_i32_169 = arith.constant 125 : i32
    %526 = tpu.dynamic_rotate %466 by %c125_i32_169 dim 2 : vector<1x16x128xf32>, i32 -> vector<1x16x128xf32>
    %c125_i32_170 = arith.constant 125 : i32
    %527 = tpu.dynamic_rotate %467 by %c125_i32_170 dim 2 : vector<1x16x128xf32>, i32 -> vector<1x16x128xf32>
    %c48 = arith.constant 48 : index
    %528 = memref.load %arg6[%c48] : memref<98xf32, #tpu.memory_space<smem>>
    %c97 = arith.constant 97 : index
    %529 = memref.load %arg6[%c97] : memref<98xf32, #tpu.memory_space<smem>>
    %530 = vector.broadcast %528 : f32 to vector<1x16x128xf32>
    %531 = arith.mulf %530, %526 : vector<1x16x128xf32>
    %532 = arith.addf %525, %531 : vector<1x16x128xf32>
    %533 = vector.broadcast %529 : f32 to vector<1x16x128xf32>
    %534 = arith.mulf %533, %527 : vector<1x16x128xf32>
    %535 = arith.addf %532, %534 : vector<1x16x128xf32>
    %536 = vector.extract_strided_slice %535 {offsets = [0, 0, 0], sizes = [1, 16, 16], strides = [1, 1, 1]} : vector<1x16x128xf32> to vector<1x16x16xf32>
    %cst_171 = arith.constant 0.000000e+00 : f32
    %537 = vector.broadcast %cst_171 : f32 to vector<1x16x16xf32>
    %538 = arith.subf %537, %536 : vector<1x16x16xf32>
    %539 = math.exp %538 : vector<1x16x16xf32>
    %cst_172 = arith.constant 1.000000e+00 : f32
    %540 = vector.broadcast %cst_172 : f32 to vector<1x16x16xf32>
    %541 = arith.addf %540, %539 : vector<1x16x16xf32>
    %cst_173 = arith.constant 1.000000e+00 : f32
    %542 = vector.broadcast %cst_173 : f32 to vector<1x16x16xf32>
    %543 = arith.divf %542, %541 : vector<1x16x16xf32>
    %544 = vector.shape_cast %543 : vector<1x16x16xf32> to vector<1x1x256xf32>
    %c0_174 = arith.constant 0 : index
    %c0_175 = arith.constant 0 : index
    %c0_176 = arith.constant 0 : index
    %545 = vector.load %arg8[%c0_174, %c0_175, %c0_176] : memref<1x1x256xf32, #tpu.memory_space<vmem>>, vector<1x1x256xf32>
    tpu.vector_store %arg8[%c0_174, %c0_175, %c0_176], %544 {strides = array<i32>} : memref<1x1x256xf32, #tpu.memory_space<vmem>>, vector<1x1x256xf32>,
    %c0_177 = arith.constant 0 : index
    %c0_178 = arith.constant 0 : index
    %c0_179 = arith.constant 0 : index
    %546 = vector.load %arg8[%c0_177, %c0_178, %c0_179] : memref<1x1x256xf32, #tpu.memory_space<vmem>>, vector<1x1x256xf32>
    %c0_180 = arith.constant 0 : index
    %c0_181 = arith.constant 0 : index
    %c0_182 = arith.constant 0 : index
    %547 = vector.load %arg7[%c0_180, %c0_181, %c0_182] : memref<1x32x256xf32, #tpu.memory_space<vmem>>, vector<1x32x256xf32>
    %548 = vector.broadcast %546 : vector<1x1x256xf32> to vector<1x32x256xf32>
    %549 = arith.mulf %547, %548 : vector<1x32x256xf32>
    %c0_183 = arith.constant 0 : index
    %c0_184 = arith.constant 0 : index
    %c0_185 = arith.constant 0 : index
    %550 = vector.load %arg7[%c0_183, %c0_184, %c0_185] : memref<1x32x256xf32, #tpu.memory_space<vmem>>, vector<1x32x256xf32>
    tpu.vector_store %arg7[%c0_183, %c0_184, %c0_185], %549 {strides = array<i32>} : memref<1x32x256xf32, #tpu.memory_space<vmem>>, vector<1x32x256xf32>,
    return
  }
  func.func @transform_0(%arg0: i32) -> (i32, i32, i32) {
    %c0_i32 = arith.constant 0 : i32
    %c0_i32_0 = arith.constant 0 : i32
    %c0_i32_1 = arith.constant 0 : i32
    return %arg0, %c0_i32, %c0_i32_0 : i32, i32, i32
  }
  func.func @transform_1(%arg0: i32) -> (i32, i32) {
    %c0_i32 = arith.constant 0 : i32
    %c0_i32_0 = arith.constant 0 : i32
    %c0_i32_1 = arith.constant 0 : i32
    return %c0_i32, %c0_i32_0 : i32, i32
  }
  func.func @transform_2(%arg0: i32) -> (i32, i32) {
    %c0_i32 = arith.constant 0 : i32
    %c0_i32_0 = arith.constant 0 : i32
    %c0_i32_1 = arith.constant 0 : i32
    return %c0_i32, %c0_i32_0 : i32, i32
  }
  func.func @transform_3(%arg0: i32) -> (i32, i32) {
    %c0_i32 = arith.constant 0 : i32
    %c0_i32_0 = arith.constant 0 : i32
    %c0_i32_1 = arith.constant 0 : i32
    return %c0_i32, %c0_i32_0 : i32, i32
  }
  func.func @transform_4(%arg0: i32) -> (i32, i32) {
    %c0_i32 = arith.constant 0 : i32
    %c0_i32_0 = arith.constant 0 : i32
    %c0_i32_1 = arith.constant 0 : i32
    return %c0_i32, %c0_i32_0 : i32, i32
  }
  func.func @transform_5(%arg0: i32) -> i32 {
    %c0_i32 = arith.constant 0 : i32
    %c0_i32_0 = arith.constant 0 : i32
    return %c0_i32 : i32
  }
  func.func @transform_6(%arg0: i32) -> (i32, i32, i32) {
    %c0_i32 = arith.constant 0 : i32
    %c0_i32_0 = arith.constant 0 : i32
    %c0_i32_1 = arith.constant 0 : i32
    return %arg0, %c0_i32, %c0_i32_0 : i32, i32, i32
  }
  func.func @transform_7(%arg0: i32) -> (i32, i32, i32) {
    %c0_i32 = arith.constant 0 : i32
    %c0_i32_0 = arith.constant 0 : i32
    %c0_i32_1 = arith.constant 0 : i32
    return %arg0, %c0_i32, %c0_i32_0 : i32, i32, i32
  }
}

</mosaic_0001>

<bundles_post_ra>
// kernel: tpu_custom_call.1
= control target key start
LH: loop header
LB: loop body
LE: loop exit
PB: predicated region body
PF: predicated region fallthrough
CT: control target
= control target key end

     0   :  { %s4123_s0 = inlined_call_operand.hbm [shape: f32[2,32,256], index: 0, kind: input, shape index: {}]   ;;  %s4124_s1 = inlined_call_operand.vmem [shape: f32[32,2], index: 1, kind: input, shape index: {}]   ;;  %s4125_s2 = inlined_call_operand.vmem [shape: f32[1,2], index: 2, kind: input, shape index: {}]   ;;  %s4126_s3 = inlined_call_operand.vmem [shape: f32[2,32], index: 3, kind: input, shape index: {}]   ;;  %s4127_s4 = inlined_call_operand.vmem [shape: f32[1,32], index: 4, kind: input, shape index: {}]   ;;  %s4128_s5 = inlined_call_operand.vmem [shape: f32[98], index: 5, kind: input, shape index: {}]   ;;  %s4129_s6 = inlined_call_operand.hbm [shape: f32[2,32,256], index: 6, kind: output, shape index: {0}]   ;;  %s4130_s7 = inlined_call_operand.hbm [shape: f32[2,1,256], index: 7, kind: output, shape index: {1}]  }
   0x1   :  { %4160 = sst [smem:[#allocation61_spill]] %s4128_s5 }
   0x2   :  { %13 = vsyncpa [#allocation7], 0 }
   0x3   :  { %15 = vsyncpa [#allocation7 + $0x1], 0 }
   0x4   :  { %16 = vsyncpa [#allocation9], 0 }
   0x5   :  { %17 = vsyncpa [#allocation8], 0 }
   0x6   :  { %19 = vsyncpa [#allocation8 + $0x1], 0 }
   0x7   :  { %20 = vsyncpa [#allocation13], 0 }
   0x8   :  { %22 = vsyncpa [#allocation13 + $0x1], 0  ;;  %s2745_s24 = smov 0   ;;  %s2747_s25 = smov 0  }
   0x9   :  { %s2749_s26 = smov 0   ;;  %s2751_s27 = smov 0  }
   0xa LB: > { %s2766_s28 = sadd.s32 4294967295, %s2677_s27   ;;  %s2273_s29 = sadd.s32 4294967294, %s2677_s27   ;;  %s2677_s27 = sphi %s2751_s27, %s4273_s27   ;;  %s2673_s26 = sphi %s2749_s26, %s4272_s26   ;;  %s2669_s25 = sphi %s2747_s25, %s4271_s25   ;;  %s2665_s24 = sphi %s2745_s24, %s4270_s24  }
   0xb   : > { %s2770_s30 = sadd.s32 1, %s2677_s27   ;;  %s35_s8 = sadd.s32 1, %s2673_s26 }
   0xc   : > { %s32_s9 = ssub.s32 %s2677_s27, %s2770_s30  ;;  %p42_p0 = scmp.ne.s32.totalorder %s2673_s26, %s2669_s25 }
   0xd   : > { %p33_p1 = scmp.eq.s32.totalorder %s32_s9, 0  ;;  %p43_p2 = scmp.eq.s32.totalorder %s2677_s27, 0 }
   0xe   : > { %p48_p3 = scmp.ne.s32.totalorder %s2669_s25, %s2665_s24  ;;  %p4132_p4 = scmp.eq.s32.totalorder %s2766_s28, 0 }
   0xf   : > { %s2782_s10 = scalar_select %p33_p1, %s2673_s26, %s35_s8  }
  0x10   : > { %p2784_p5 = por %p43_p2, %p42_p0  ;;  %p2790_p6 = por %p4132_p4, %p48_p3 }
  0x11   : > { %p177_p7 = scmp.eq.s32.totalorder %s2766_s28, 1  ;;  %p183_p8 = scmp.eq.s32.totalorder %s2273_s29, 1 }
  0x12   : > { %s4162_s12 = scalar_select %p2790_p6, 1, 0 }
  0x13   : > { %p2274_p9 = scmp.ge.s32.totalorder %s2677_s27, 1  ;;  %p216_p10 = scmp.lt.s32.totalorder %s2677_s27, 3 }
  0x14   : > { %p2797_p11 = por %p177_p7, %p42_p0  ;;  %p2801_p12 = por %p183_p8, %p48_p3 }
  0x15   : > { %p2805_p13 = pnand %p2274_p9, %p216_p10  ;;  %s4166_s5 = sld [smem:[#allocation61_spill]] }
  0x16   : > { %s4163_s13 = scalar_select %p2797_p11, 1, 0 }
  0x17   : > { %s4164_s14 = scalar_select %p2801_p12, 1, 0 }
  0x18   : > { %p2436_p1 = pneg %p2805_p13  ;;  %p2452_p2 = scmp.lt.s32.totalorder %s2677_s27, 2 }
  0x19   : > { %s252_s20 = sand.u32 1, %s2673_s26  }
  0x1a   : > { %p2818_p7 = pnand %p2436_p1, %p4132_p4  ;;  %p2825_p3 = pnand %p2452_p2, %p2784_p5 }
  0x1b   : > { %s241_s18 = sshll.u32 %s4166_s5, 4  ;;  %s2277_s22 = sshll.u32 %s252_s20, 6  ;;  %s242_s18 = int_to_ptr.vmem [resolvable:$true] %s241_s18 }
  0x1c   : > { %s2530_s23 = scalar_lea.vmem %s242_s18, 16  ;;  %p2532_p9 = pneg %p2818_p7 }
  0x1d   : > { %p2531_p8 = scmp.ne.s32.totalorder %s242_s18, %s2530_s23  ;;  %p2538_p12 = scmp.lt.s32.totalorder %s242_s18, %s242_s18 }
  0x1e   : > { %p2539_p11 = scmp.lt.s32.totalorder %s2530_s23, %s2530_s23 }
  0x1f   : > { %p2533_p10 = pnand %p2532_p9, %p2531_p8 }
  0x20   : > { %p2540_p1 = por %p2539_p11, %p2538_p12 }
  0x21   : > { %p2534_p0 = pneg %p2533_p10 }
  0x23   : > { %p2541_p4 = pnand %p2540_p1, %p2534_p0 }
  0x25   : > { %2544 = shalt.err (!%p2541_p4)
}
  0x26   : > { %s2679_s29 = smov [#allocation10]   ;;  %s2394_s8 = sshll.u32 %s2677_s27, 10 }
  0x27   : > { %2439 = dma.vmem_to_smem (!%p2818_p7), %s242_s18, 16, %s2679_s29, [#allocation9]  }
  0x28   : > { %s256_s9 = scalar_lea.vmem [#allocation6], %s2277_s22  ;;  %s2837_s5 = scalar_lea.hbm %s4123_s0, %s2394_s8 }
  0x29   : > { %s263_s11 = sshll.u32 %s256_s9, 4  ;;  %s2841_s23 = scalar_lea.sflag [#allocation7], %s252_s20  ;;  %s2839_s11 = int_to_ptr.vmem [resolvable:$true] %s263_s11 }
  0x2a   : > { %s2545_s19 = scalar_lea.hbm %s2837_s5, 1024  ;;  %p2547_p5 = pneg %p2825_p3 }
  0x2b   : > { %p2546_p4 = scmp.ne.s32.totalorder %s2837_s5, %s2545_s19  ;;  %s2550_s29 = scalar_lea.hbm %s4123_s0, 2048 }
  0x2c   : > { %p2551_p0 = scmp.lt.u32.totalorder %s2837_s5, %s4123_s0  ;;  %p2552_p2 = scmp.lt.u32.totalorder %s2550_s29, %s2545_s19 }
  0x2d   : > { %p2548_p11 = pnand %p2547_p5, %p2546_p4  ;;  %p2554_p8 = scmp.lt.u32.totalorder %s2545_s19, %s2837_s5 }
  0x2e   : > { %p2553_p7 = por %p2552_p2, %p2551_p0 }
  0x2f   : > { %p2549_p12 = pneg %p2548_p11 }
  0x30   : > { %p2555_p9 = por %p2554_p8, %p2553_p7 }
  0x32   : > { %p2556_p10 = pnand %p2555_p9, %p2549_p12 }
  0x34   : > { %2559 = shalt.err (!%p2556_p10)
}
  0x35   : > { %s2560_s20 = scalar_lea.vmem %s2839_s11, 1024  ;;  %s2680_s16 = smov [#allocation6]  }
  0x36   : > { %p2561_p1 = scmp.ne.s32.totalorder %s2839_s11, %s2560_s20  ;;  %s2565_s17 = sshll.u32 %s2680_s16, 4  ;;  %s2566_s17 = int_to_ptr.vmem [resolvable:$false] %s2565_s17 }
  0x37   : > { %s2567_s18 = scalar_lea.vmem %s2566_s17, 2048  ;;  %p2568_p6 = scmp.lt.s32.totalorder %s2839_s11, %s2566_s17 }
  0x38   : > { %p2563_p4 = pnand %p2561_p1, %p2547_p5  ;;  %p2569_p0 = scmp.lt.s32.totalorder %s2567_s18, %s2560_s20 }
  0x3a   : > { %p2564_p11 = pneg %p2563_p4  ;;  %p2570_p2 = por %p2569_p0, %p2568_p6 }
  0x3c   : > { %p2571_p7 = pnand %p2570_p2, %p2564_p11 }
  0x3e   : > { %2574 = shalt.err (!%p2571_p7)
}
  0x3f   : > { %s2681_s19 = smov 256   ;;  %s2682_s22 = smov 16  }
  0x40   : > { %2443 = dma.hbm_to_vmem [thread:$0]  (!%p2825_p3), %s2837_s5, 1024, %s2839_s11, %s2841_s23, %s2681_s19, %s2681_s19, %s2682_s22  }
  0x41   : > { %275 = sbr.rel (%p2805_p13) target bundleno = 1680 (0x690), region = 44 }
  0x48   : > { %s2872_s29 = sand.u32 1, %s2669_s25   ;;  %p4169_p6 = scmp.ne.s32.totalorder %s4162_s12, 0 }
  0x49   : > { %s2281_s8 = sshll.u32 %s2872_s29, 6  ;;  %s278_s9 = scalar_lea.sflag [#allocation7], %s2872_s29 }
  0x4a   : > { %s281_s20 = scalar_lea.vmem [#allocation6], %s2281_s8 }
  0x4b   : > { %2648 = dma.done.wait (%p4169_p6), %s278_s9, 1024  }
  0x4c   : > { %2650 = vsyncadd (%p4169_p6), %s278_s9, 4294966272  ;;  %p4170_p3 = scmp.eq.s32.totalorder %s2766_s28, 0 }
  0x4e   : > { %2652 = dma.done.wait (%p4170_p3), [#allocation9], 16   ;;  %p4171_p13 = pmov %p4170_p3 }
  0x50   : > { %2654 = vsyncadd (%p4171_p13), [#allocation9], 4294967280 }
  0x51   : > { %290 = sfence }
  0x52   : > { %v2886_v0 = vld [vmem:[%s281_s20] sm:$0xff]  ;;  %v2888_v1 = vld [vmem:[%s281_s20 + $0x8] sm:$0xff]  ;;  %v2896_v5 = vld [vmem:[%s281_s20 + $0x10] sm:$0xff]  ;;  %v2683_v15 = vmov 0.0|0.0   ;;  %vm2684_vm0 = vmmov 0   ;;  %v4135_v19 = vmov 0.0   ;;  %v4134_v20 = vlaneseq }
  0x53   : > { %v2890_v2 = vld [vmem:[%s281_s20 + $0x20] sm:$0xff]  ;;  %v330_v3 = vadd.f32 %v2888_v1, %v2886_v0  ;;  %v2894_v4 = vld [vmem:[%s281_s20 + $0x28] sm:$0xff]  ;;  %v2898_v6 = vld [vmem:[%s281_s20 + $0x18] sm:$0xff]  ;;  %2420 = vmatprep.subr.bf16.mxu0 %v2683_v15  ;;  %2412 = vmatprep.mubr.msk.f32.mxu0 %vm2684_vm0, %v4135_v19  ;;  %632 = vst [vmem:[#allocation4] sm:$0xff] %v4135_v19  ;;  %vm361_vm1 = vcmask 130112   ;;  %vm368_vm2 = vcmask 195712  }
  0x54   : > { %v336_v7 = vadd.f32 %v2894_v4, %v2890_v2  ;;  %v2902_v8 = vld [vmem:[%s281_s20 + $0x30] sm:$0xff]  ;;  %v2904_v9 = vld [vmem:[%s281_s20 + $0x38] sm:$0xff]  ;;  %v333_v10 = vadd.f32 %v2898_v6, %v2896_v5  ;;  %v384_v17 = vld [vmem:[%s4124_s1 + $0x18] sm:$0xff]  ;;  %633 = vst [vmem:[#allocation4 + $0x8] sm:$0xff] %v4135_v19  ;;  %2415 = vmatprep.subr.mxu1 %v4135_v19  ;;  %2417 = vmatprep.mubr.msk.f32.mxu1 %vm2684_vm0, %v4135_v19  ;;  %v351_v21 = vand.u32 127, %v4134_v20  ;;  %v2933_v22 = vshrl.u32 %v4134_v20, 7 }
  0x55   : > { %331 = vadd.xlane.f32.xlu0 %v330_v3  ;;  %v339_v11 = vadd.f32 %v2904_v9, %v2902_v8  ;;  %v381_v12 = vld [vmem:[%s4124_s1] sm:$0xff]  ;;  %v382_v13 = vld [vmem:[%s4124_s1 + $0x8] sm:$0xff]  ;;  %v383_v16 = vld [vmem:[%s4124_s1 + $0x10] sm:$0xff]  ;;  %634 = vst [vmem:[#allocation4 + $0x10] sm:$0x3f] %v4135_v19  ;;  %vm375_vm3 = vcmask 261312  }
  0x56   : > { %337 = vadd.xlane.f32.xlu1 %v336_v7  ;;  %v2421_v14 = vpack.c.bf16 %v382_v13, %v381_v12  ;;  %v2424_v18 = vpack.c.bf16 %v384_v17, %v383_v16  ;;  %635 = vst [vmem:[#allocation5] sm:$0xff] %v4135_v19  ;;  %636 = vst [vmem:[#allocation5 + $0x8] sm:$0xff] %v4135_v19  ;;  %v356_v23 = vadd.s32 4294967288, %v351_v21  ;;  %v363_v25 = vadd.s32 4294967280, %v351_v21  ;;  %v461_v46 = vld [vmem:[%s4126_s3] sm:$0x3] }
  0x57   : > { %637 = vst [vmem:[#allocation5 + $0x10] sm:$0x3f] %v4135_v19  ;;  %4172 = vst [vmem:[#allocation18_spill] sm:$0xff] %v2933_v22  ;;  %v370_v26 = vadd.s32 4294967272, %v351_v21  ;;  %v354_v28 = vsub.s32 %v351_v21, %v2933_v22  ;;  %vm378_vm4 = vcmask 253952   ;;  %vm386_vm5 = vcmask 261120  }
  0x58   : > { %2422 = vmatpush3.bf16.msra.mxu0 %v2421_v14  ;;  %v359_v30 = vsub.s32 %v356_v23, %v2933_v22  ;;  %v366_v31 = vsub.s32 %v363_v25, %v2933_v22  ;;  %vm467_vm6 = vcmask 1041408   ;;  %v385_v47 = vld [vmem:[%s4125_s2] sm:$0x1]  ;;  %vm463_vm7 = vcmask 15360   ;;  %s2957_s12 = scalar_lea.vmem [#allocation11], %s2281_s8  ;;  %s4145_s8 = smov 96  }
  0x59   : > { %334 = vadd.xlane.f32.xlu0 %v333_v10  ;;  %2423 = vmatprep.subr.bf16.mxu0 %v2683_v15  ;;  %v373_v34 = vsub.s32 %v370_v26, %v2933_v22  ;;  %v462_v52 = vld [vmem:[%s4127_s4] sm:$0x1]  ;;  %s4143_s15 = smov 112   ;;  %s4151_s21 = smov 64   ;;  %vm780_vm8 = vcmask 130048   ;;  %vm2047_vm9 = vcmask 392192  }
  0x5a   : > { %340 = vadd.xlane.f32.xlu1 %v339_v11  ;;  %2416 = vmatpush3.msk.msra.mxu1 %vm467_vm6, %v461_v46  ;;  %s4147_s11 = smov 80   ;;  %s4153_s23 = smov 32   ;;  %vm2049_vm10 = vcmask 523264   ;;  %vm2051_vm11 = vcmask 654336   ;;  %vm2053_vm12 = vcmask 785408   ;;  %vm2055_vm13 = vcmask 916480  }
  0x5b   : > { %s4149_s16 = smov 48   ;;  %s4155_s17 = smov 16  }
  0x5c   : > { %2425 = vmatpush3.bf16.msra.mxu0 %v2424_v18  ;;  %s2695_s18 = smov 3   ;;  %s2696_s19 = smov 2  }
  0x5d   : > { %s2697_s22 = smov 1   ;;  %s2698_s9 = smov 127  }
  0x5e   : > { %s2699_s20 = smov 126   ;;  %s2700_s5 = smov 125  }
  0x5f   : > { %p4267_p12 = scmp.ne.s32.totalorder %s4163_s13, 0 }
  0xe2   : > { %v332_v24 = vpop.xlane.xlu0 %331 }
  0xe3   : > { %v338_v27 = vpop.xlane.xlu1 %337  ;;  %v342_v29 = vmul.f32 0.00390625, %v332_v24 }
  0xe4   : > { %v344_v32 = vmul.f32 0.00390625, %v338_v27 }
  0xe5   : > { %v355_v38 = vrot.slane %v342_v29, %v354_v28 }
  0xe6   : > { %v335_v33 = vpop.xlane.xlu0 %334  ;;  %v367_v40 = vrot.slane %v344_v32, %v366_v31 }
  0xe7   : > { %v343_v35 = vmul.f32 0.00390625, %v335_v33  ;;  %v341_v36 = vpop.xlane.xlu1 %340 }
  0xe8   : > { %v345_v37 = vmul.f32 0.00390625, %v341_v36 }
  0xe9   : > { %v360_v39 = vrot.slane %v343_v35, %v359_v30 }
  0xea   : > { %v374_v41 = vrot.slane %v345_v37, %v373_v34 }
  0xeb   : > { %v362_v42 = vsel %vm361_vm1, %v360_v39, %v355_v38 }
  0xec   : > { %v369_v43 = vsel %vm368_vm2, %v367_v40, %v362_v42 }
  0xed   : > { %v376_v44 = vsel %vm375_vm3, %v374_v41, %v369_v43 }
  0xee   : > { %379 = vst.msk [vmem:[#allocation2] sm:$0x1] %vm378_vm4, %v376_v44 }
  0xf5   : > { %v380_v45 = vld [vmem:[#allocation2] sm:$0x1] }
  0xf6   : > { %2413 = vmatmul.mubr.msk.f32.vlgmr.msra.gmra.mrb[0].mxu0 %vm386_vm5, %v380_v45 }
 0x1c9   : > { %v456_v48 = vpop.f32.mrb[0].mxu0 }
 0x1ca   : > { %v457_v49 = vadd.f32 %v456_v48, %v385_v47  ;;  %v2414_v50 = vpop.f32.mrb[1].mxu0 }
 0x1cc   : > { %v460_v51 = vmax.f32 %v457_v49, 0.0 }
 0x1ce   : > { %2418 = vmatmul.mubr.msk.f32.vlgmr.msra.gmra.mrb[0].mxu1 %vm463_vm7, %v460_v51 }
 0x2a1   : > { %v537_v53 = vpop.f32.mrb[0].mxu1 }
 0x2a2   : > { %v538_v54 = vadd.f32 %v537_v53, %v462_v52  ;;  %v2419_v55 = vpop.f32.mrb[1].mxu1  ;;  %v2693_v53 = vmov 1983009808  }
 0x2a4   : > { %v541_v56 = vsub.f32 0.0, %v538_v54  ;;  %v684_v54 = vunpack.c.l.s4 %v2693_v53 }
 0x2a6   : > { %v542_v57 = vmul.f32 1.442695, %v541_v56 }
 0x2a8   : > { %2510 = vpow2.f32 %v542_v57  ;;  %v685_v57 = vunpack.c.0.s8 %v684_v54 }
 0x2b2   : > { %v2511_v58 = vpop.eup %2510 }
 0x2b3   : > { %v544_v59 = vadd.f32 1.0, %v2511_v58  ;;  %v2694_v58 = vmov 1934713408  }
 0x2b5   : > { %2512 = vrcp.f32 %v544_v59  ;;  %v716_v59 = vunpack.c.l.s4 %v2694_v58 }
 0x2bf   : > { %v2513_v60 = vpop.eup %2512 }
 0x2c0   : > { %547 = vst.msk [vmem:[#allocation3] sm:$0x1] %vm378_vm4, %v2513_v60 }
 0x2c7   : > { %v2288_v61 = vld [vmem:[#allocation3] ss:$0 sm:$0xff] }
 0x2c8   : > { %566 = vbcast.lane.b32.xlu1 %v2288_v61, 264  ;;  %562 = vbcast.lane.b32.xlu0 %v2288_v61, 256 }
 0x2cc   : > { %570 = vbcast.lane.b32.xlu1 %v2288_v61, 272 }
 0x2d0   : > { %574 = vbcast.lane.b32.xlu1 %v2288_v61, 280 }
 0x33a   : > { %v567_v62 = vpop.permute.xlu1 %566  ;;  %v563_v63 = vpop.permute.xlu0 %562 }
 0x33b   : > { %v578_v3 = vmul.f32 %v567_v62, %v2896_v5  ;;  %v579_v7 = vmul.f32 %v567_v62, %v2898_v6  ;;  %v576_v10 = vmul.f32 %v563_v63, %v2886_v0  ;;  %v577_v11 = vmul.f32 %v563_v63, %v2888_v1 }
 0x33c   : > { %v3036_v63 = vsub.s32 %v685_v57, %v2933_v22 }
 0x33d   : > { %586 = vst [vmem:[%s2957_s12 + $0x10] sm:$0xff] %v578_v3  ;;  %587 = vst [vmem:[%s2957_s12 + $0x18] sm:$0xff] %v579_v7  ;;  %v601_v33 = vadd.f32 %v579_v7, %v577_v11 }
 0x33e   : > { %584 = vst [vmem:[%s2957_s12] sm:$0xff] %v576_v10  ;;  %585 = vst [vmem:[%s2957_s12 + $0x8] sm:$0xff] %v577_v11  ;;  %v571_v5 = vpop.permute.xlu1 %570 }
 0x33f   : > { %v580_v0 = vmul.f32 %v571_v5, %v2890_v2  ;;  %v581_v1 = vmul.f32 %v571_v5, %v2894_v4  ;;  %v592_v4 = vadd.f32 %v578_v3, %v576_v10  ;;  %4173 = vst [vmem:[#allocation19_spill] sm:$0xff] %v3036_v63 }
 0x341   : > { %588 = vst [vmem:[%s2957_s12 + $0x20] sm:$0xff] %v580_v0  ;;  %589 = vst [vmem:[%s2957_s12 + $0x28] sm:$0xff] %v581_v1  ;;  %v612_v14 = vmax.f32 %v576_v10, %v580_v0  ;;  %v621_v15 = vmax.f32 %v577_v11, %v581_v1  ;;  %v593_v28 = vadd.f32 %v592_v4, %v580_v0 }
 0x342   : > { %v575_v6 = vpop.permute.xlu1 %574  ;;  %v602_v36 = vadd.f32 %v601_v33, %v581_v1 }
 0x343   : > { %v582_v12 = vmul.f32 %v575_v6, %v2902_v8  ;;  %v583_v13 = vmul.f32 %v575_v6, %v2904_v9 }
 0x345   : > { %590 = vst [vmem:[%s2957_s12 + $0x30] sm:$0xff] %v582_v12  ;;  %591 = vst [vmem:[%s2957_s12 + $0x38] sm:$0xff] %v583_v13  ;;  %v613_v16 = vmax.f32 %v578_v3, %v582_v12  ;;  %v622_v17 = vmax.f32 %v579_v7, %v583_v13  ;;  %v594_v8 = vadd.f32 %v593_v28, %v582_v12  ;;  %v717_v7 = vunpack.c.0.s8 %v716_v59 }
 0x346   : > { %v603_v38 = vadd.f32 %v602_v36, %v583_v13 }
 0x347   : > { %v614_v18 = vmax.f32 %v612_v14, %v613_v16  ;;  %v623_v21 = vmax.f32 %v621_v15, %v622_v17  ;;  %v595_v31 = vrot.slane %v594_v8, 4  ;;  %v3042_v12 = vsub.s32 %v717_v7, %v2933_v22 }
 0x348   : > { %v604_v41 = vrot.slane %v603_v38, 4 }
 0x349   : > { %v615_v23 = vrot.slane %v614_v18, 4  ;;  %v624_v2 = vrot.slane %v623_v21, 4  ;;  %v596_v34 = vadd.f32 %v595_v31, %v594_v8  ;;  %4174 = vst [vmem:[#allocation20_spill] sm:$0xff] %v3042_v12 }
 0x34a   : > { %v605_v43 = vadd.f32 %v604_v41, %v603_v38 }
 0x34b   : > { %v616_v24 = vmax.f32 %v614_v18, %v615_v23  ;;  %v625_v27 = vmax.f32 %v623_v21, %v624_v2  ;;  %v597_v37 = vrot.slane %v596_v34, 2 }
 0x34c   : > { %v606_v45 = vrot.slane %v605_v43, 2 }
 0x34d   : > { %v617_v25 = vrot.slane %v616_v24, 2  ;;  %v626_v9 = vrot.slane %v625_v27, 2  ;;  %v598_v40 = vadd.f32 %v597_v37, %v596_v34 }
 0x34e   : > { %v607_v46 = vadd.f32 %v606_v45, %v605_v43 }
 0x34f   : > { %v618_v26 = vmax.f32 %v616_v24, %v617_v25  ;;  %v627_v32 = vmax.f32 %v625_v27, %v626_v9  ;;  %v599_v42 = vrot.slane %v598_v40, 1 }
 0x350   : > { %v608_v48 = vrot.slane %v607_v46, 1 }
 0x351   : > { %v619_v29 = vrot.slane %v618_v26, 1  ;;  %v628_v35 = vrot.slane %v627_v32, 1  ;;  %v600_v44 = vadd.f32 %v599_v42, %v598_v40 }
 0x352   : > { %v609_v49 = vadd.f32 %v608_v48, %v607_v46 }
 0x353   : > { %v2971_v30 = vmax.f32 %v618_v26, %v619_v29  ;;  %v2985_v39 = vmax.f32 %v627_v32, %v628_v35  ;;  %v3003_v47 = vmul.f32 0.03125, %v600_v44 }
 0x354   : > { %v3017_v50 = vmul.f32 0.03125, %v609_v49 }
 0x355   : > { %787 = vrot.lane.b32.xlu1 %v2971_v30, %s4145_s8  ;;  %784 = vrot.lane.b32.xlu0 %v2971_v30, %s4143_s15 }
 0x359   : > { %793 = vrot.lane.b32.xlu1 %v2971_v30, %s4151_s21  ;;  %790 = vrot.lane.b32.xlu0 %v2971_v30, %s4147_s11 }
 0x35d   : > { %799 = vrot.lane.b32.xlu1 %v2971_v30, %s4153_s23  ;;  %796 = vrot.lane.b32.xlu0 %v2971_v30, %s4149_s16 }
 0x361   : > { %806 = vrot.lane.b32.xlu1 %v2985_v39, %s4143_s15  ;;  %802 = vrot.lane.b32.xlu0 %v2971_v30, %s4155_s17 }
 0x365   : > { %812 = vrot.lane.b32.xlu1 %v2985_v39, %s4147_s11  ;;  %809 = vrot.lane.b32.xlu0 %v2985_v39, %s4145_s8 }
 0x369   : > { %818 = vrot.lane.b32.xlu1 %v2985_v39, %s4149_s16  ;;  %815 = vrot.lane.b32.xlu0 %v2985_v39, %s4151_s21 }
 0x36d   : > { %824 = vrot.lane.b32.xlu1 %v2985_v39, %s4155_s17  ;;  %821 = vrot.lane.b32.xlu0 %v2985_v39, %s4153_s23 }
 0x371   : > { %642 = vrot.lane.b32.xlu1 %v3003_v47, %s4145_s8  ;;  %639 = vrot.lane.b32.xlu0 %v3003_v47, %s4143_s15 }
 0x375   : > { %648 = vrot.lane.b32.xlu1 %v3003_v47, %s4151_s21  ;;  %645 = vrot.lane.b32.xlu0 %v3003_v47, %s4147_s11 }
 0x379   : > { %654 = vrot.lane.b32.xlu1 %v3003_v47, %s4153_s23  ;;  %651 = vrot.lane.b32.xlu0 %v3003_v47, %s4149_s16 }
 0x37d   : > { %661 = vrot.lane.b32.xlu1 %v3017_v50, %s4143_s15  ;;  %657 = vrot.lane.b32.xlu0 %v3003_v47, %s4155_s17  ;;  %s3429_s15 = sld [smem:[#allocation10]] }
 0x381   : > { %667 = vrot.lane.b32.xlu1 %v3017_v50, %s4147_s11  ;;  %664 = vrot.lane.b32.xlu0 %v3017_v50, %s4145_s8  ;;  %s3431_s8 = sld [smem:[#allocation10 + $0x31]] }
 0x382   : > { %s3441_s11 = sld [smem:[#allocation10 + $0x1]] }
 0x385   : > { %673 = vrot.lane.b32.xlu1 %v3017_v50, %s4149_s16  ;;  %670 = vrot.lane.b32.xlu0 %v3017_v50, %s4151_s21  ;;  %s3443_s16 = sld [smem:[#allocation10 + $0x32]] }
 0x386   : > { %s3456_s21 = sld [smem:[#allocation10 + $0x2]] }
 0x389   : > { %679 = vrot.lane.b32.xlu1 %v3017_v50, %s4155_s17  ;;  %676 = vrot.lane.b32.xlu0 %v3017_v50, %s4153_s23  ;;  %s3459_s23 = sld [smem:[#allocation10 + $0x33]] }
 0x38a   : > { %s3468_s17 = sld [smem:[#allocation10 + $0x3]] }
 0x3c7   : > { %v788_v51 = vpop.permute.xlu1 %787  ;;  %v785_v52 = vpop.permute.xlu0 %784 }
 0x3c8   : > { %v827_v3 = vcombine.low %v2971_v30, %v788_v51 }
 0x3ca   : > { %v834_v1 = vrot.slane %v827_v3, %v3036_v63 }
 0x3cb   : > { %v794_v55 = vpop.permute.xlu1 %793  ;;  %v791_v56 = vpop.permute.xlu0 %790 }
 0x3cc   : > { %v835_v60 = vcombine.low %v785_v52, %v791_v56 }
 0x3ce   : > { %v842_v10 = vrot.slane %v835_v60, %v3036_v63 }
 0x3cf   : > { %v800_v61 = vpop.permute.xlu1 %799  ;;  %v797_v62 = vpop.permute.xlu0 %796 }
 0x3d0   : > { %v843_v11 = vcombine.low %v794_v55, %v800_v61  ;;  %v859_v13 = vcombine.low %v834_v1, %v842_v10 }
 0x3d2   : > { %v850_v14 = vrot.slane %v843_v11, %v3036_v63  ;;  %v866_v21 = vrot.slane %v859_v13, %v3042_v12 }
 0x3d3   : > { %v807_v5 = vpop.permute.xlu1 %806  ;;  %v803_v0 = vpop.permute.xlu0 %802 }
 0x3d4   : > { %v851_v6 = vcombine.low %v797_v62, %v803_v0 }
 0x3d6   : > { %v858_v15 = vrot.slane %v851_v6, %v3036_v63 }
 0x3d7   : > { %v813_v16 = vpop.permute.xlu1 %812  ;;  %v810_v17 = vpop.permute.xlu0 %809 }
 0x3d8   : > { %v867_v18 = vcombine.low %v850_v14, %v858_v15  ;;  %v884_v24 = vcombine.low %v807_v5, %v813_v16  ;;  %v876_v2 = vcombine.low %v2985_v39, %v810_v17 }
 0x3da   : > { %v874_v23 = vrot.slane %v867_v18, %v3042_v12  ;;  %v891_v27 = vrot.slane %v884_v24, %v3036_v63  ;;  %v883_v28 = vrot.slane %v876_v2, %v3036_v63 }
 0x3db   : > { %v819_v25 = vpop.permute.xlu1 %818  ;;  %v816_v4 = vpop.permute.xlu0 %815 }
 0x3dc   : > { %v875_v26 = vcombine.low %v866_v21, %v874_v23  ;;  %v908_v31 = vcombine.low %v883_v28, %v891_v27 }
 0x3de   : > { %925 = vst.msk [vmem:[#allocation5 + $0x3] sm:$0xff] %vm780_vm8, %v875_v26  ;;  %v915_v38 = vrot.slane %v908_v31, %v3042_v12 }
 0x3df   : > { %v825_v29 = vpop.permute.xlu1 %824  ;;  %v822_v8 = vpop.permute.xlu0 %821 }
 0x3e0   : > { %v900_v30 = vcombine.low %v819_v25, %v825_v29  ;;  %v892_v9 = vcombine.low %v816_v4, %v822_v8 }
 0x3e2   : > { %v907_v32 = vrot.slane %v900_v30, %v3036_v63  ;;  %v899_v33 = vrot.slane %v892_v9, %v3036_v63 }
 0x3e3   : > { %v643_v34 = vpop.permute.xlu1 %642  ;;  %v640_v35 = vpop.permute.xlu0 %639 }
 0x3e4   : > { %v916_v36 = vcombine.low %v899_v33, %v907_v32  ;;  %v682_v44 = vcombine.low %v3003_v47, %v643_v34 }
 0x3e5   : > { %v3054_v37 = vld [vmem:[#allocation5] sm:$0xff] }
 0x3e6   : > { %v923_v39 = vrot.slane %v916_v36, %v3042_v12  ;;  %935 = vrot.lane.b32.xlu0 %v3054_v37, %s2695_s18  ;;  %v689_v51 = vrot.slane %v682_v44, %v3036_v63  ;;  %v3090_v15 = vld [vmem:[#allocation5 + $0x1] sm:$0xff] }
 0x3e7   : > { %v649_v40 = vpop.permute.xlu1 %648  ;;  %v646_v41 = vpop.permute.xlu0 %645  ;;  %v3123_v4 = vld [vmem:[#allocation5 + $0x2] sm:$0xff] }
 0x3e8   : > { %v924_v42 = vcombine.low %v915_v38, %v923_v39  ;;  %v690_v43 = vcombine.low %v640_v35, %v646_v41  ;;  %v1337_v27 = vld [vmem:[#allocation5 + $0x3] sm:$0xff] }
 0x3ea   : > { %926 = vst.msk [vmem:[#allocation5 + $0xb] sm:$0xff] %vm780_vm8, %v924_v42  ;;  %955 = vrot.lane.b32.xlu0 %v3054_v37, %s2696_s19  ;;  %v697_v48 = vrot.slane %v690_v43, %v3036_v63 }
 0x3eb   : > { %v655_v45 = vpop.permute.xlu1 %654  ;;  %v652_v46 = vpop.permute.xlu0 %651 }
 0x3ec   : > { %v698_v49 = vcombine.low %v649_v40, %v655_v45  ;;  %v714_v55 = vcombine.low %v689_v51, %v697_v48 }
 0x3ee   : > { %975 = vrot.lane.b32.xlu0 %v3054_v37, %s2697_s22  ;;  %v705_v57 = vrot.slane %v698_v49, %v3036_v63  ;;  %v721_v61 = vrot.slane %v714_v55, %v3042_v12 }
 0x3ef   : > { %v662_v52 = vpop.permute.xlu1 %661  ;;  %v658_v53 = vpop.permute.xlu0 %657 }
 0x3f0   : > { %v706_v54 = vcombine.low %v652_v46, %v658_v53 }
 0x3f1   : > { %v3068_v56 = vld [vmem:[#allocation5 + $0x8] sm:$0xff] }
 0x3f2   : > { %v713_v47 = vrot.slane %v706_v54, %v3036_v63  ;;  %937 = vrot.lane.b32.xlu1 %v3068_v56, %s2695_s18  ;;  %1007 = vrot.lane.b32.xlu0 %v3054_v37, %s2698_s9  ;;  %v3109_v25 = vld [vmem:[#allocation5 + $0x9] sm:$0xff] }
 0x3f3   : > { %v668_v58 = vpop.permute.xlu1 %667  ;;  %v665_v59 = vpop.permute.xlu0 %664  ;;  %v3137_v26 = vld [vmem:[#allocation5 + $0xa] sm:$0xff] }
 0x3f4   : > { %v722_v60 = vcombine.low %v705_v57, %v713_v47  ;;  %v739_v3 = vcombine.low %v662_v52, %v668_v58  ;;  %v731_v7 = vcombine.low %v3017_v50, %v665_v59  ;;  %4175 = vst [vmem:[#allocation21_spill] sm:$0xff] %v3137_v26  ;;  %v1338_v28 = vld [vmem:[#allocation5 + $0xb] sm:$0xff] }
 0x3f5   : > { %v1473_v29 = vld [vmem:[#allocation5 + $0x4] sm:$0xff]  ;;  %v1474_v8 = vld [vmem:[#allocation5 + $0xc] sm:$0xff] }
 0x3f6   : > { %v729_v62 = vrot.slane %v722_v60, %v3042_v12  ;;  %957 = vrot.lane.b32.xlu1 %v3068_v56, %s2696_s19  ;;  %1027 = vrot.lane.b32.xlu0 %v3054_v37, %s2699_s20  ;;  %v746_v0 = vrot.slane %v739_v3, %v3036_v63  ;;  %v738_v1 = vrot.slane %v731_v7, %v3036_v63  ;;  %v1609_v31 = vld [vmem:[#allocation5 + $0x5] sm:$0xff]  ;;  %v1610_v38 = vld [vmem:[#allocation5 + $0xd] sm:$0xff] }
 0x3f7   : > { %v674_v10 = vpop.permute.xlu1 %673  ;;  %v671_v11 = vpop.permute.xlu0 %670 }
 0x3f8   : > { %v730_v5 = vcombine.low %v721_v61, %v729_v62  ;;  %v763_v16 = vcombine.low %v738_v1, %v746_v0 }
 0x3fa   : > { %781 = vst.msk [vmem:[#allocation4 + $0x3] sm:$0xff] %vm780_vm8, %v730_v5  ;;  %977 = vrot.lane.b32.xlu1 %v3068_v56, %s2697_s22  ;;  %1047 = vrot.lane.b32.xlu0 %v3054_v37, %s2700_s5  ;;  %v770_v23 = vrot.slane %v763_v16, %v3042_v12 }
 0x3fb   : > { %v680_v50 = vpop.permute.xlu1 %679  ;;  %v677_v6 = vpop.permute.xlu0 %676 }
 0x3fc   : > { %v755_v13 = vcombine.low %v674_v10, %v680_v50  ;;  %v747_v14 = vcombine.low %v671_v11, %v677_v6 }
 0x3fe   : > { %v762_v17 = vrot.slane %v755_v13, %v3036_v63  ;;  %v754_v18 = vrot.slane %v747_v14, %v3036_v63  ;;  %1009 = vrot.lane.b32.xlu1 %v3068_v56, %s2698_s9  ;;  %1071 = vrot.lane.b32.xlu0 %v3090_v15, %s2695_s18 }
 0x400   : > { %v771_v21 = vcombine.low %v754_v18, %v762_v17 }
 0x401   : > { %v3204_v41 = vld [vmem:[#allocation4] sm:$0xff] }
 0x402   : > { %v778_v24 = vrot.slane %v771_v21, %v3042_v12  ;;  %1029 = vrot.lane.b32.xlu1 %v3068_v56, %s2699_s20  ;;  %1091 = vrot.lane.b32.xlu0 %v3090_v15, %s2696_s19  ;;  %v3259_v59 = vld [vmem:[#allocation4 + $0x1] sm:$0xff] }
 0x403   : > { %v3317_v17 = vld [vmem:[#allocation4 + $0x2] sm:$0xff] }
 0x404   : > { %v779_v2 = vcombine.low %v770_v23, %v778_v24  ;;  %v3371_v12 = vld [vmem:[#allocation5 + $0xe] sm:$0xff] }
 0x406   : > { %782 = vst.msk [vmem:[#allocation4 + $0xb] sm:$0xff] %vm780_vm8, %v779_v2  ;;  %1049 = vrot.lane.b32.xlu1 %v3068_v56, %s2700_s5  ;;  %1111 = vrot.lane.b32.xlu0 %v3090_v15, %s2697_s22 }
 0x40a   : > { %1073 = vrot.lane.b32.xlu1 %v3109_v25, %s2695_s18  ;;  %1143 = vrot.lane.b32.xlu0 %v3090_v15, %s2698_s9 }
 0x40d   : > { %v3227_v49 = vld [vmem:[#allocation4 + $0x8] sm:$0xff] }
 0x40e   : > { %1093 = vrot.lane.b32.xlu1 %v3109_v25, %s2696_s19  ;;  %1163 = vrot.lane.b32.xlu0 %v3090_v15, %s2699_s20  ;;  %v3285_v11 = vld [vmem:[#allocation4 + $0x9] sm:$0xff] }
 0x412   : > { %1113 = vrot.lane.b32.xlu1 %v3109_v25, %s2697_s22  ;;  %1183 = vrot.lane.b32.xlu0 %v3090_v15, %s2700_s5 }
 0x416   : > { %1145 = vrot.lane.b32.xlu1 %v3109_v25, %s2698_s9  ;;  %1207 = vrot.lane.b32.xlu0 %v3123_v4, %s2695_s18 }
 0x41a   : > { %1165 = vrot.lane.b32.xlu1 %v3109_v25, %s2699_s20  ;;  %1227 = vrot.lane.b32.xlu0 %v3123_v4, %s2696_s19 }
 0x41e   : > { %1185 = vrot.lane.b32.xlu1 %v3109_v25, %s2700_s5  ;;  %1247 = vrot.lane.b32.xlu0 %v3123_v4, %s2697_s22 }
 0x422   : > { %1209 = vrot.lane.b32.xlu1 %v3137_v26, %s2695_s18  ;;  %1279 = vrot.lane.b32.xlu0 %v3123_v4, %s2698_s9 }
 0x426   : > { %1229 = vrot.lane.b32.xlu1 %v3137_v26, %s2696_s19  ;;  %1299 = vrot.lane.b32.xlu0 %v3123_v4, %s2699_s20 }
 0x42a   : > { %1249 = vrot.lane.b32.xlu1 %v3137_v26, %s2697_s22  ;;  %1319 = vrot.lane.b32.xlu0 %v3123_v4, %s2700_s5 }
 0x42e   : > { %1281 = vrot.lane.b32.xlu1 %v3137_v26, %s2698_s9  ;;  %1343 = vrot.lane.b32.xlu0 %v1337_v27, %s2695_s18 }
 0x432   : > { %1301 = vrot.lane.b32.xlu1 %v3137_v26, %s2699_s20  ;;  %1363 = vrot.lane.b32.xlu0 %v1337_v27, %s2696_s19 }
 0x436   : > { %1321 = vrot.lane.b32.xlu1 %v3137_v26, %s2700_s5  ;;  %1383 = vrot.lane.b32.xlu0 %v1337_v27, %s2697_s22 }
 0x43a   : > { %1345 = vrot.lane.b32.xlu1 %v1338_v28, %s2695_s18  ;;  %1415 = vrot.lane.b32.xlu0 %v1337_v27, %s2698_s9 }
 0x43e   : > { %1365 = vrot.lane.b32.xlu1 %v1338_v28, %s2696_s19  ;;  %1435 = vrot.lane.b32.xlu0 %v1337_v27, %s2699_s20 }
 0x442   : > { %1385 = vrot.lane.b32.xlu1 %v1338_v28, %s2697_s22  ;;  %1455 = vrot.lane.b32.xlu0 %v1337_v27, %s2700_s5 }
 0x446   : > { %1417 = vrot.lane.b32.xlu1 %v1338_v28, %s2698_s9  ;;  %1479 = vrot.lane.b32.xlu0 %v1473_v29, %s2695_s18 }
 0x44a   : > { %1437 = vrot.lane.b32.xlu1 %v1338_v28, %s2699_s20  ;;  %1499 = vrot.lane.b32.xlu0 %v1473_v29, %s2696_s19 }
 0x44e   : > { %1457 = vrot.lane.b32.xlu1 %v1338_v28, %s2700_s5  ;;  %1519 = vrot.lane.b32.xlu0 %v1473_v29, %s2697_s22  ;;  %v3343_v28 = vld [vmem:[#allocation4 + $0xa] sm:$0xff] }
 0x452   : > { %1481 = vrot.lane.b32.xlu1 %v1474_v8, %s2695_s18  ;;  %1551 = vrot.lane.b32.xlu0 %v1473_v29, %s2698_s9 }
 0x456   : > { %1501 = vrot.lane.b32.xlu1 %v1474_v8, %s2696_s19  ;;  %1571 = vrot.lane.b32.xlu0 %v1473_v29, %s2699_s20 }
 0x458   : > { %v3176_v30 = vpop.permute.xlu0 %935 }
 0x45a   : > { %1521 = vrot.lane.b32.xlu1 %v1474_v8, %s2697_s22  ;;  %1591 = vrot.lane.b32.xlu0 %v1473_v29, %s2700_s5  ;;  %v3345_v29 = vld [vmem:[#allocation5 + $0x6] sm:$0xff] }
 0x45c   : > { %v3180_v9 = vpop.permute.xlu0 %955 }
 0x45e   : > { %1553 = vrot.lane.b32.xlu1 %v1474_v8, %s2698_s9  ;;  %1615 = vrot.lane.b32.xlu0 %v1609_v31, %s2695_s18 }
 0x460   : > { %v3184_v32 = vpop.permute.xlu0 %975 }
 0x462   : > { %1573 = vrot.lane.b32.xlu1 %v1474_v8, %s2699_s20  ;;  %1635 = vrot.lane.b32.xlu0 %v1609_v31, %s2696_s19 }
 0x464   : > { %v3188_v33 = vpop.permute.xlu1 %937  ;;  %v3190_v34 = vpop.permute.xlu0 %1007 }
 0x466   : > { %1593 = vrot.lane.b32.xlu1 %v1474_v8, %s2700_s5  ;;  %1655 = vrot.lane.b32.xlu0 %v1609_v31, %s2697_s22 }
 0x468   : > { %v3194_v35 = vpop.permute.xlu1 %957  ;;  %v3196_v36 = vpop.permute.xlu0 %1027 }
 0x46a   : > { %1617 = vrot.lane.b32.xlu1 %v1610_v38, %s2695_s18  ;;  %1687 = vrot.lane.b32.xlu0 %v1609_v31, %s2698_s9 }
 0x46c   : > { %v3200_v39 = vpop.permute.xlu1 %977  ;;  %v3202_v40 = vpop.permute.xlu0 %1047 }
 0x46e   : > { %1637 = vrot.lane.b32.xlu1 %v1610_v38, %s2696_s19  ;;  %931 = vrot.lane.b32.xlu0 %v3204_v41, %s2695_s18 }
 0x470   : > { %v3209_v42 = vpop.permute.xlu1 %1009  ;;  %v3211_v43 = vpop.permute.xlu0 %1071 }
 0x472   : > { %1657 = vrot.lane.b32.xlu1 %v1610_v38, %s2697_s22  ;;  %951 = vrot.lane.b32.xlu0 %v3204_v41, %s2696_s19 }
 0x474   : > { %v3216_v44 = vpop.permute.xlu1 %1029  ;;  %v3218_v45 = vpop.permute.xlu0 %1091 }
 0x476   : > { %1689 = vrot.lane.b32.xlu1 %v1610_v38, %s2698_s9  ;;  %971 = vrot.lane.b32.xlu0 %v3204_v41, %s2697_s22 }
 0x478   : > { %v3223_v46 = vpop.permute.xlu1 %1049  ;;  %v3225_v48 = vpop.permute.xlu0 %1111 }
 0x47a   : > { %1707 = vrot.lane.b32.xlu0 %v1609_v31, %s2699_s20  ;;  %933 = vrot.lane.b32.xlu1 %v3227_v49, %s2695_s18 }
 0x47c   : > { %v3232_v51 = vpop.permute.xlu1 %1073  ;;  %v3234_v52 = vpop.permute.xlu0 %1143 }
 0x47e   : > { %1003 = vrot.lane.b32.xlu0 %v3204_v41, %s2698_s9  ;;  %953 = vrot.lane.b32.xlu1 %v3227_v49, %s2696_s19 }
 0x480   : > { %v3240_v53 = vpop.permute.xlu1 %1093  ;;  %v3242_v54 = vpop.permute.xlu0 %1163 }
 0x482   : > { %1023 = vrot.lane.b32.xlu0 %v3204_v41, %s2699_s20  ;;  %973 = vrot.lane.b32.xlu1 %v3227_v49, %s2697_s22 }
 0x484   : > { %v3248_v55 = vpop.permute.xlu1 %1113  ;;  %v3250_v57 = vpop.permute.xlu0 %1183 }
 0x486   : > { %1043 = vrot.lane.b32.xlu0 %v3204_v41, %s2700_s5  ;;  %1709 = vrot.lane.b32.xlu1 %v1610_v38, %s2699_s20 }
 0x488   : > { %v3255_v47 = vpop.permute.xlu1 %1145  ;;  %v3257_v58 = vpop.permute.xlu0 %1207 }
 0x48a   : > { %1067 = vrot.lane.b32.xlu0 %v3259_v59, %s2695_s18  ;;  %1005 = vrot.lane.b32.xlu1 %v3227_v49, %s2698_s9 }
 0x48c   : > { %v3265_v60 = vpop.permute.xlu1 %1165  ;;  %v3267_v61 = vpop.permute.xlu0 %1227 }
 0x48e   : > { %1087 = vrot.lane.b32.xlu0 %v3259_v59, %s2696_s19  ;;  %1025 = vrot.lane.b32.xlu1 %v3227_v49, %s2699_s20 }
 0x490   : > { %v3273_v62 = vpop.permute.xlu1 %1185  ;;  %v3275_v3 = vpop.permute.xlu0 %1247 }
 0x492   : > { %1107 = vrot.lane.b32.xlu0 %v3259_v59, %s2697_s22  ;;  %1045 = vrot.lane.b32.xlu1 %v3227_v49, %s2700_s5 }
 0x494   : > { %v3281_v7 = vpop.permute.xlu1 %1209  ;;  %v3283_v10 = vpop.permute.xlu0 %1279 }
 0x496   : > { %1727 = vrot.lane.b32.xlu0 %v1609_v31, %s2700_s5  ;;  %1069 = vrot.lane.b32.xlu1 %v3285_v11, %s2695_s18 }
 0x498   : > { %v3290_v5 = vpop.permute.xlu1 %1229  ;;  %v3292_v0 = vpop.permute.xlu0 %1299 }
 0x49a   : > { %1139 = vrot.lane.b32.xlu0 %v3259_v59, %s2698_s9  ;;  %1089 = vrot.lane.b32.xlu1 %v3285_v11, %s2696_s19 }
 0x49c   : > { %v3298_v1 = vpop.permute.xlu1 %1249  ;;  %v3300_v50 = vpop.permute.xlu0 %1319 }
 0x49d   : > { %4176 = vst [vmem:[#allocation22_spill] sm:$0xff] %v3300_v50 }
 0x49e   : > { %1159 = vrot.lane.b32.xlu0 %v3259_v59, %s2699_s20  ;;  %1109 = vrot.lane.b32.xlu1 %v3285_v11, %s2697_s22 }
 0x4a0   : > { %v3306_v6 = vpop.permute.xlu1 %1281  ;;  %v3308_v13 = vpop.permute.xlu0 %1343 }
 0x4a1   : > { %4177 = vst [vmem:[#allocation23_spill] sm:$0xff] %v3306_v6  ;;  %4178 = vst [vmem:[#allocation24_spill] sm:$0xff] %v3308_v13  ;;  %v3489_v13 = vld [vmem:[#allocation4 + $0xc] sm:$0xff] }
 0x4a2   : > { %1179 = vrot.lane.b32.xlu0 %v3259_v59, %s2700_s5  ;;  %1729 = vrot.lane.b32.xlu1 %v1610_v38, %s2700_s5 }
 0x4a4   : > { %v3313_v14 = vpop.permute.xlu1 %1301  ;;  %v3315_v16 = vpop.permute.xlu0 %1363 }
 0x4a5   : > { %4179 = vst [vmem:[#allocation25_spill] sm:$0xff] %v3313_v14  ;;  %4180 = vst [vmem:[#allocation26_spill] sm:$0xff] %v3315_v16 }
 0x4a6   : > { %1141 = vrot.lane.b32.xlu1 %v3285_v11, %s2698_s9  ;;  %1203 = vrot.lane.b32.xlu0 %v3317_v17, %s2695_s18 }
 0x4a8   : > { %v3323_v18 = vpop.permute.xlu1 %1321  ;;  %v3325_v21 = vpop.permute.xlu0 %1383 }
 0x4a9   : > { %4181 = vst [vmem:[#allocation27_spill] sm:$0xff] %v3323_v18  ;;  %4182 = vst [vmem:[#allocation28_spill] sm:$0xff] %v3325_v21  ;;  %v981_v18 = vstv %s3456_s21  ;;  %s3496_s21 = sld [smem:[#allocation10 + $0x5]] }
 0x4aa   : > { %1161 = vrot.lane.b32.xlu1 %v3285_v11, %s2699_s20  ;;  %1223 = vrot.lane.b32.xlu0 %v3317_v17, %s2696_s19 }
 0x4ac   : > { %v3331_v23 = vpop.permute.xlu1 %1345  ;;  %v3333_v24 = vpop.permute.xlu0 %1415 }
 0x4ad   : > { %4183 = vst [vmem:[#allocation29_spill] sm:$0xff] %v3331_v23  ;;  %4184 = vst [vmem:[#allocation30_spill] sm:$0xff] %v3333_v24  ;;  %v966_v23 = vstv %s3443_s16  ;;  %s3510_s16 = sld [smem:[#allocation10 + $0x6]] }
 0x4ae   : > { %1181 = vrot.lane.b32.xlu1 %v3285_v11, %s2700_s5  ;;  %1243 = vrot.lane.b32.xlu0 %v3317_v17, %s2697_s22 }
 0x4b0   : > { %v3339_v2 = vpop.permute.xlu1 %1365  ;;  %v3341_v27 = vpop.permute.xlu0 %1435 }
 0x4b1   : > { %4185 = vst [vmem:[#allocation31_spill] sm:$0xff] %v3339_v2  ;;  %4186 = vst [vmem:[#allocation32_spill] sm:$0xff] %v3341_v27  ;;  %v961_v2 = vstv %s3441_s11  ;;  %s3485_s11 = sld [smem:[#allocation10 + $0x35]] }
 0x4b2   : > { %1205 = vrot.lane.b32.xlu1 %v3343_v28, %s2695_s18  ;;  %1751 = vrot.lane.b32.xlu0 %v3345_v29, %s2695_s18 }
 0x4b4   : > { %v3351_v8 = vpop.permute.xlu1 %1385  ;;  %v3353_v31 = vpop.permute.xlu0 %1455 }
 0x4b5   : > { %4187 = vst [vmem:[#allocation33_spill] sm:$0xff] %v3351_v8  ;;  %4188 = vst [vmem:[#allocation34_spill] sm:$0xff] %v3353_v31  ;;  %v3449_v8 = vld [vmem:[#allocation4 + $0x4] sm:$0xff] }
 0x4b6   : > { %1225 = vrot.lane.b32.xlu1 %v3343_v28, %s2696_s19  ;;  %1275 = vrot.lane.b32.xlu0 %v3317_v17, %s2698_s9 }
 0x4b8   : > { %v3359_v38 = vpop.permute.xlu1 %1417  ;;  %v3361_v20 = vpop.permute.xlu0 %1479 }
 0x4b9   : > { %4189 = vst [vmem:[#allocation35_spill] sm:$0xff] %v3359_v38  ;;  %4190 = vst [vmem:[#allocation36_spill] sm:$0xff] %v3361_v20  ;;  %v3381_v38 = vld [vmem:[#allocation4 + $0x3] sm:$0xff] }
 0x4ba   : > { %1245 = vrot.lane.b32.xlu1 %v3343_v28, %s2697_s22  ;;  %1295 = vrot.lane.b32.xlu0 %v3317_v17, %s2699_s20  ;;  %4195 = vst [vmem:[#allocation41_spill] sm:$0xff] %v3381_v38 }
 0x4bc   : > { %v3367_v19 = vpop.permute.xlu1 %1437  ;;  %v3369_v22 = vpop.permute.xlu0 %1499 }
 0x4bd   : > { %4191 = vst [vmem:[#allocation37_spill] sm:$0xff] %v3367_v19  ;;  %4192 = vst [vmem:[#allocation38_spill] sm:$0xff] %v3369_v22 }
 0x4be   : > { %1753 = vrot.lane.b32.xlu1 %v3371_v12, %s2695_s18  ;;  %1315 = vrot.lane.b32.xlu0 %v3317_v17, %s2700_s5 }
 0x4c0   : > { %v3377_v63 = vpop.permute.xlu1 %1457  ;;  %v3379_v20 = vpop.permute.xlu0 %1519 }
 0x4c1   : > { %4193 = vst [vmem:[#allocation39_spill] sm:$0xff] %v3377_v63  ;;  %4194 = vst [vmem:[#allocation40_spill] sm:$0xff] %v3379_v20 }
 0x4c2   : > { %1277 = vrot.lane.b32.xlu1 %v3343_v28, %s2698_s9  ;;  %1339 = vrot.lane.b32.xlu0 %v3381_v38, %s2695_s18 }
 0x4c4   : > { %v3387_v22 = vpop.permute.xlu1 %1481  ;;  %v3389_v19 = vpop.permute.xlu0 %1551 }
 0x4c5   : > { %4196 = vst [vmem:[#allocation42_spill] sm:$0xff] %v3387_v22  ;;  %4197 = vst [vmem:[#allocation43_spill] sm:$0xff] %v3389_v19  ;;  %v3407_v19 = vld [vmem:[#allocation4 + $0xb] sm:$0xff] }
 0x4c6   : > { %1297 = vrot.lane.b32.xlu1 %v3343_v28, %s2699_s20  ;;  %1359 = vrot.lane.b32.xlu0 %v3381_v38, %s2696_s19  ;;  %4202 = vst [vmem:[#allocation48_spill] sm:$0xff] %v3407_v19 }
 0x4c8   : > { %v3395_v63 = vpop.permute.xlu1 %1501  ;;  %v3397_v20 = vpop.permute.xlu0 %1571 }
 0x4c9   : > { %4198 = vst [vmem:[#allocation44_spill] sm:$0xff] %v3395_v63  ;;  %4199 = vst [vmem:[#allocation45_spill] sm:$0xff] %v3397_v20 }
 0x4ca   : > { %1317 = vrot.lane.b32.xlu1 %v3343_v28, %s2700_s5  ;;  %1379 = vrot.lane.b32.xlu0 %v3381_v38, %s2697_s22 }
 0x4cc   : > { %v3403_v31 = vpop.permute.xlu1 %1521  ;;  %v3405_v22 = vpop.permute.xlu0 %1591 }
 0x4cd   : > { %4200 = vst [vmem:[#allocation46_spill] sm:$0xff] %v3403_v31  ;;  %4201 = vst [vmem:[#allocation47_spill] sm:$0xff] %v3405_v22 }
 0x4ce   : > { %1341 = vrot.lane.b32.xlu1 %v3407_v19, %s2695_s18  ;;  %1771 = vrot.lane.b32.xlu0 %v3345_v29, %s2696_s19 }
 0x4d0   : > { %v3413_v63 = vpop.permute.xlu1 %1553  ;;  %v3415_v20 = vpop.permute.xlu0 %1615 }
 0x4d1   : > { %4203 = vst [vmem:[#allocation49_spill] sm:$0xff] %v3413_v63  ;;  %4204 = vst [vmem:[#allocation50_spill] sm:$0xff] %v3415_v20 }
 0x4d2   : > { %1361 = vrot.lane.b32.xlu1 %v3407_v19, %s2696_s19  ;;  %1411 = vrot.lane.b32.xlu0 %v3381_v38, %s2698_s9 }
 0x4d4   : > { %v3421_v31 = vpop.permute.xlu1 %1573  ;;  %v3423_v22 = vpop.permute.xlu0 %1635 }
 0x4d5   : > { %4205 = vst [vmem:[#allocation51_spill] sm:$0xff] %v3421_v31  ;;  %4206 = vst [vmem:[#allocation52_spill] sm:$0xff] %v3423_v22 }
 0x4d6   : > { %1381 = vrot.lane.b32.xlu1 %v3407_v19, %s2697_s22  ;;  %1431 = vrot.lane.b32.xlu0 %v3381_v38, %s2699_s20 }
 0x4d8   : > { %v3433_v20 = vpop.permute.xlu1 %1593  ;;  %v3435_v63 = vpop.permute.xlu0 %1655 }
 0x4d9   : > { %4207 = vst [vmem:[#allocation53_spill] sm:$0xff] %v3433_v20  ;;  %4208 = vst [vmem:[#allocation54_spill] sm:$0xff] %v3435_v63  ;;  %v941_v63 = vstv %s3429_s15  ;;  %v946_v20 = vstv %s3431_s8  ;;  %s3474_s8 = sld [smem:[#allocation10 + $0x34]] }
 0x4da   : > { %1773 = vrot.lane.b32.xlu1 %v3371_v12, %s2696_s19  ;;  %1451 = vrot.lane.b32.xlu0 %v3381_v38, %s2700_s5  ;;  %v947_v24 = vmul.f32 %v946_v20, %v3176_v30  ;;  %s3481_s15 = sld [smem:[#allocation10 + $0x4]]  ;;  %v967_v30 = vmul.f32 %v966_v23, %v3180_v9 }
 0x4dc   : > { %v3445_v22 = vpop.permute.xlu1 %1617  ;;  %v3447_v31 = vpop.permute.xlu0 %1687 }
 0x4dd   : > { %4209 = vst [vmem:[#allocation55_spill] sm:$0xff] %v3445_v22  ;;  %4210 = vst [vmem:[#allocation56_spill] sm:$0xff] %v3447_v31 }
 0x4de   : > { %1413 = vrot.lane.b32.xlu1 %v3407_v19, %s2698_s9  ;;  %1475 = vrot.lane.b32.xlu0 %v3449_v8, %s2695_s18 }
 0x4e0   : > { %v3461_v27 = vpop.permute.xlu1 %1637  ;;  %v932_v22 = vpop.permute.xlu0 %931 }
 0x4e1   : > { %4211 = vst [vmem:[#allocation57_spill] sm:$0xff] %v3461_v27  ;;  %v942_v31 = vmul.f32 %v941_v63, %v932_v22 }
 0x4e2   : > { %1433 = vrot.lane.b32.xlu1 %v3407_v19, %s2699_s20  ;;  %1495 = vrot.lane.b32.xlu0 %v3449_v8, %s2696_s19 }
 0x4e3   : > { %v949_v22 = vadd.f32 %v947_v24, %v942_v31 }
 0x4e4   : > { %v3472_v38 = vpop.permute.xlu1 %1657  ;;  %v952_v21 = vpop.permute.xlu0 %951 }
 0x4e5   : > { %4212 = vst [vmem:[#allocation58_spill] sm:$0xff] %v3472_v38  ;;  %v962_v27 = vmul.f32 %v961_v2, %v952_v21  ;;  %v986_v38 = vstv %s3459_s23  ;;  %s3499_s23 = sld [smem:[#allocation10 + $0x36]] }
 0x4e6   : > { %1453 = vrot.lane.b32.xlu1 %v3407_v19, %s2700_s5  ;;  %1515 = vrot.lane.b32.xlu0 %v3449_v8, %s2697_s22  ;;  %v993_v19 = vstv %s3468_s17  ;;  %v987_v9 = vmul.f32 %v986_v38, %v3184_v32  ;;  %v1013_v32 = vstv %s3481_s15  ;;  %s3515_s17 = sld [smem:[#allocation10 + $0x37]]  ;;  %s3527_s15 = sld [smem:[#allocation10 + $0x38]] }
 0x4e7   : > { %v964_v16 = vadd.f32 %v962_v27, %v949_v22 }
 0x4e8   : > { %v3487_v14 = vpop.permute.xlu1 %1689  ;;  %v972_v24 = vpop.permute.xlu0 %971 }
 0x4e9   : > { %4213 = vst [vmem:[#allocation59_spill] sm:$0xff] %v3487_v14  ;;  %v969_v21 = vadd.f32 %v967_v30, %v964_v16  ;;  %v982_v31 = vmul.f32 %v981_v18, %v972_v24  ;;  %v998_v16 = vstv %s3474_s8  ;;  %v994_v24 = vmul.f32 %v993_v19, %v3204_v41  ;;  %s3522_s8 = sld [smem:[#allocation10 + $0x7]] }
 0x4ea   : > { %1477 = vrot.lane.b32.xlu1 %v3489_v13, %s2695_s18  ;;  %1791 = vrot.lane.b32.xlu0 %v3345_v29, %s2697_s22 }
 0x4eb   : > { %v984_v27 = vadd.f32 %v982_v31, %v969_v21  ;;  %v948_v21 = vmul.f32 %v946_v20, %v3188_v33  ;;  %v999_v31 = vmul.f32 %v998_v16, %v3054_v37  ;;  %v1033_v20 = vstv %s3496_s21  ;;  %s3539_s21 = sld [smem:[#allocation10 + $0x39]] }
 0x4ec   : > { %v934_v22 = vpop.permute.xlu1 %933  ;;  %v3502_v30 = vpop.permute.xlu0 %1707  ;;  %v968_v33 = vmul.f32 %v966_v23, %v3194_v35 }
 0x4ed   : > { %4214 = vst [vmem:[#allocation60_spill] sm:$0xff] %v3502_v30  ;;  %v989_v14 = vadd.f32 %v987_v9, %v984_v27  ;;  %v943_v6 = vmul.f32 %v941_v63, %v934_v22  ;;  %v1018_v30 = vstv %s3485_s11  ;;  %s3534_s11 = sld [smem:[#allocation10 + $0x8]] }
 0x4ee   : > { %1497 = vrot.lane.b32.xlu1 %v3489_v13, %s2696_s19  ;;  %1547 = vrot.lane.b32.xlu0 %v3449_v8, %s2698_s9  ;;  %v1019_v37 = vmul.f32 %v1018_v30, %v3190_v34  ;;  %v1053_v34 = vstv %s3510_s16  ;;  %s3556_s16 = sld [smem:[#allocation10 + $0x3a]] }
 0x4ef   : > { %v996_v26 = vadd.f32 %v994_v24, %v989_v14  ;;  %v950_v27 = vadd.f32 %v948_v21, %v943_v6 }
 0x4f0   : > { %v954_v63 = vpop.permute.xlu1 %953  ;;  %v1004_v41 = vpop.permute.xlu0 %1003 }
 0x4f1   : > { %v1001_v9 = vadd.f32 %v999_v31, %v996_v26  ;;  %v963_v22 = vmul.f32 %v961_v2, %v954_v63  ;;  %v1014_v50 = vmul.f32 %v1013_v32, %v1004_v41  ;;  %v1038_v26 = vstv %s3499_s23  ;;  %s3551_s23 = sld [smem:[#allocation10 + $0x9]] }
 0x4f2   : > { %1517 = vrot.lane.b32.xlu1 %v3489_v13, %s2697_s22  ;;  %1567 = vrot.lane.b32.xlu0 %v3449_v8, %s2699_s20  ;;  %v1039_v35 = vmul.f32 %v1038_v26, %v3196_v36  ;;  %v1077_v36 = vstv %s3522_s8  ;;  %s3568_s8 = sld [smem:[#allocation10 + $0x3b]] }
 0x4f3   : > { %v965_v14 = vadd.f32 %v963_v22, %v950_v27  ;;  %v1016_v24 = vadd.f32 %v1014_v50, %v1001_v9  ;;  %v988_v50 = vmul.f32 %v986_v38, %v3200_v39  ;;  %v1058_v27 = vstv %s3515_s17  ;;  %s3563_s17 = sld [smem:[#allocation10 + $0xa]] }
 0x4f4   : > { %v974_v6 = vpop.permute.xlu1 %973  ;;  %v1024_v2 = vpop.permute.xlu0 %1023  ;;  %v1059_v39 = vmul.f32 %v1058_v27, %v3202_v40  ;;  %v1000_v38 = vmul.f32 %v998_v16, %v3068_v56  ;;  %v1097_v40 = vstv %s3534_s11  ;;  %v1020_v56 = vmul.f32 %v1018_v30, %v3209_v42  ;;  %s3580_s11 = sld [smem:[#allocation10 + $0x3c]] }
 0x4f5   : > { %v970_v21 = vadd.f32 %v968_v33, %v965_v14  ;;  %v1021_v31 = vadd.f32 %v1019_v37, %v1016_v24  ;;  %v983_v63 = vmul.f32 %v981_v18, %v974_v6  ;;  %v1034_v41 = vmul.f32 %v1033_v20, %v1024_v2  ;;  %v3544_v6 = vld [vmem:[#allocation4 + $0x5] sm:$0xff] }
 0x4f6   : > { %1793 = vrot.lane.b32.xlu1 %v3371_v12, %s2697_s22  ;;  %1587 = vrot.lane.b32.xlu0 %v3449_v8, %s2700_s5  ;;  %v995_v33 = vmul.f32 %v993_v19, %v3227_v49  ;;  %v1082_v49 = vstv %s3527_s15  ;;  %s3575_s15 = sld [smem:[#allocation10 + $0xb]] }
 0x4f7   : > { %v985_v23 = vadd.f32 %v983_v63, %v970_v21  ;;  %v1036_v9 = vadd.f32 %v1034_v41, %v1021_v31  ;;  %v1083_v16 = vmul.f32 %v1082_v49, %v3211_v43  ;;  %v1117_v42 = vstv %s3551_s23  ;;  %s3593_s23 = sld [smem:[#allocation10 + $0x3d]] }
 0x4f8   : > { %v3541_v18 = vpop.permute.xlu1 %1709  ;;  %v1044_v22 = vpop.permute.xlu0 %1043  ;;  %v1040_v43 = vmul.f32 %v1038_v26, %v3216_v44  ;;  %v1060_v44 = vmul.f32 %v1058_v27, %v3223_v46 }
 0x4f9   : > { %v990_v37 = vadd.f32 %v988_v50, %v985_v23  ;;  %v1041_v14 = vadd.f32 %v1039_v35, %v1036_v9  ;;  %v1054_v24 = vmul.f32 %v1053_v34, %v1044_v22  ;;  %v1102_v22 = vstv %s3539_s21  ;;  %s3589_s21 = sld [smem:[#allocation10 + $0xc]] }
 0x4fa   : > { %1549 = vrot.lane.b32.xlu1 %v3489_v13, %s2698_s9  ;;  %1611 = vrot.lane.b32.xlu0 %v3544_v6, %s2695_s18  ;;  %v1103_v30 = vmul.f32 %v1102_v22, %v3218_v45 }
 0x4fb   : > { %v997_v2 = vadd.f32 %v995_v33, %v990_v37  ;;  %v1056_v19 = vadd.f32 %v1054_v24, %v1041_v14 }
 0x4fc   : > { %v1006_v21 = vpop.permute.xlu1 %1005  ;;  %v1068_v31 = vpop.permute.xlu0 %1067  ;;  %v1149_v46 = vstv %s3575_s15  ;;  %s3621_s15 = sld [smem:[#allocation10 + $0x3f]] }
 0x4fd   : > { %v1002_v63 = vadd.f32 %v1000_v38, %v997_v2  ;;  %v1061_v41 = vadd.f32 %v1059_v39, %v1056_v19  ;;  %v1015_v35 = vmul.f32 %v1013_v32, %v1006_v21  ;;  %v1078_v50 = vmul.f32 %v1077_v36, %v1068_v31 }
 0x4fe   : > { %1569 = vrot.lane.b32.xlu1 %v3489_v13, %s2699_s20  ;;  %1631 = vrot.lane.b32.xlu0 %v3544_v6, %s2696_s19  ;;  %v1122_v19 = vstv %s3556_s16  ;;  %s3604_s16 = sld [smem:[#allocation10 + $0xd]] }
 0x4ff   : > { %v1017_v23 = vadd.f32 %v1015_v35, %v1002_v63  ;;  %v1080_v9 = vadd.f32 %v1078_v50, %v1061_v41  ;;  %v3582_v50 = vld [vmem:[#allocation4 + $0xd] sm:$0xff]  ;;  %v1123_v45 = vmul.f32 %v1122_v19, %v3225_v48  ;;  %v1084_v48 = vmul.f32 %v1082_v49, %v3232_v51 }
 0x500   : > { %v1026_v32 = vpop.permute.xlu1 %1025  ;;  %v1088_v37 = vpop.permute.xlu0 %1087  ;;  %v1169_v51 = vstv %s3589_s21  ;;  %v1104_v49 = vmul.f32 %v1102_v22, %v3240_v53  ;;  %v1124_v22 = vmul.f32 %v1122_v19, %v3248_v55  ;;  %s3633_s21 = sld [smem:[#allocation10 + $0x40]] }
 0x501   : > { %v1022_v33 = vadd.f32 %v1020_v56, %v1017_v23  ;;  %v1085_v14 = vadd.f32 %v1083_v16, %v1080_v9  ;;  %v1035_v24 = vmul.f32 %v1033_v20, %v1026_v32  ;;  %v1098_v39 = vmul.f32 %v1097_v40, %v1088_v37 }
 0x502   : > { %1589 = vrot.lane.b32.xlu1 %v3489_v13, %s2700_s5  ;;  %1651 = vrot.lane.b32.xlu0 %v3544_v6, %s2697_s22  ;;  %v1129_v56 = vstv %s3563_s17  ;;  %s3609_s17 = sld [smem:[#allocation10 + $0x3e]] }
 0x503   : > { %v1037_v38 = vadd.f32 %v1035_v24, %v1022_v33  ;;  %v1100_v2 = vadd.f32 %v1098_v39, %v1085_v14  ;;  %v1130_v37 = vmul.f32 %v1129_v56, %v3259_v59 }
 0x504   : > { %v1046_v20 = vpop.permute.xlu1 %1045  ;;  %v1108_v21 = vpop.permute.xlu0 %1107 }
 0x505   : > { %v1042_v31 = vadd.f32 %v1040_v43, %v1037_v38  ;;  %v1105_v63 = vadd.f32 %v1103_v30, %v1100_v2  ;;  %v1055_v41 = vmul.f32 %v1053_v34, %v1046_v20  ;;  %v1118_v35 = vmul.f32 %v1117_v42, %v1108_v21 }
 0x506   : > { %1613 = vrot.lane.b32.xlu1 %v3582_v50, %s2695_s18  ;;  %1823 = vrot.lane.b32.xlu0 %v3345_v29, %s2698_s9  ;;  %v1134_v34 = vstv %s3568_s8  ;;  %v1154_v43 = vstv %s3580_s11  ;;  %s3616_s8 = sld [smem:[#allocation10 + $0xe]]  ;;  %s3628_s11 = sld [smem:[#allocation10 + $0xf]] }
 0x507   : > { %v1057_v26 = vadd.f32 %v1055_v41, %v1042_v31  ;;  %v1120_v16 = vadd.f32 %v1118_v35, %v1105_v63  ;;  %v1135_v27 = vmul.f32 %v1134_v34, %v3090_v15  ;;  %v1155_v15 = vmul.f32 %v1154_v43, %v3234_v52 }
 0x508   : > { %v1070_v23 = vpop.permute.xlu1 %1069  ;;  %v3596_v9 = vpop.permute.xlu0 %1727  ;;  %v1174_v63 = vstv %s3593_s23  ;;  %v1189_v52 = vstv %s3604_s16  ;;  %s3645_s23 = sld [smem:[#allocation10 + $0x10]]  ;;  %v1136_v19 = vmul.f32 %v1134_v34, %v3109_v25  ;;  %s3650_s16 = sld [smem:[#allocation10 + $0x41]]  ;;  %v1156_v25 = vmul.f32 %v1154_v43, %v3255_v47 }
 0x509   : > { %v1062_v32 = vadd.f32 %v1060_v44, %v1057_v26  ;;  %v1125_v33 = vadd.f32 %v1123_v45, %v1120_v16  ;;  %v1079_v14 = vmul.f32 %v1077_v36, %v1070_v23  ;;  %v1175_v53 = vmul.f32 %v1174_v63, %v3242_v54 }
 0x50a   : > { %1633 = vrot.lane.b32.xlu1 %v3582_v50, %s2696_s19  ;;  %1683 = vrot.lane.b32.xlu0 %v3544_v6, %s2698_s9 }
 0x50b   : > { %v1132_v24 = vadd.f32 %v1130_v37, %v1125_v33  ;;  %v1081_v39 = vadd.f32 %v1079_v14, %v1062_v32  ;;  %v1194_v32 = vstv %s3609_s17  ;;  %v1131_v33 = vmul.f32 %v1129_v56, %v3285_v11  ;;  %s3657_s17 = sld [smem:[#allocation10 + $0x11]] }
 0x50c   : > { %v1090_v59 = vpop.permute.xlu1 %1089  ;;  %v1140_v36 = vpop.permute.xlu0 %1139  ;;  %v1213_v54 = vstv %s3616_s8  ;;  %v1195_v55 = vmul.f32 %v1194_v32, %v3250_v57  ;;  %v1233_v57 = vstv %s3628_s11  ;;  %s3662_s8 = sld [smem:[#allocation10 + $0x42]]  ;;  %s3674_s11 = sld [smem:[#allocation10 + $0x43]] }
 0x50d   : > { %v1137_v30 = vadd.f32 %v1135_v27, %v1132_v24  ;;  %v1086_v38 = vadd.f32 %v1084_v48, %v1081_v39  ;;  %v1099_v2 = vmul.f32 %v1097_v40, %v1090_v59  ;;  %v1150_v20 = vmul.f32 %v1149_v46, %v1140_v36  ;;  %v3638_v24 = vld [vmem:[#allocation4 + $0x6] sm:$0xff] }
 0x50e   : > { %1653 = vrot.lane.b32.xlu1 %v3582_v50, %s2697_s22  ;;  %1703 = vrot.lane.b32.xlu0 %v3544_v6, %s2699_s20  ;;  %v1218_v39 = vstv %s3621_s15  ;;  %v1253_v47 = vstv %s3645_s23  ;;  %s3669_s15 = sld [smem:[#allocation10 + $0x12]]  ;;  %s3687_s23 = sld [smem:[#allocation10 + $0x44]] }
 0x50f   : > { %v1101_v21 = vadd.f32 %v1099_v2, %v1086_v38  ;;  %v1152_v31 = vadd.f32 %v1150_v20, %v1137_v30  ;;  %v1219_v34 = vmul.f32 %v1218_v39, %v3257_v58  ;;  %v1176_v58 = vmul.f32 %v1174_v63, %v3265_v60 }
 0x510   : > { %v1110_v40 = vpop.permute.xlu1 %1109  ;;  %v1160_v41 = vpop.permute.xlu0 %1159 }
 0x511   : > { %v1106_v35 = vadd.f32 %v1104_v49, %v1101_v21  ;;  %v1157_v44 = vadd.f32 %v1155_v15, %v1152_v31  ;;  %v1119_v45 = vmul.f32 %v1117_v42, %v1110_v40  ;;  %v1170_v26 = vmul.f32 %v1169_v51, %v1160_v41 }
 0x512   : > { %1825 = vrot.lane.b32.xlu1 %v3371_v12, %s2698_s9  ;;  %1723 = vrot.lane.b32.xlu0 %v3544_v6, %s2700_s5  ;;  %v1238_v21 = vstv %s3633_s21  ;;  %v1265_v60 = vstv %s3657_s17  ;;  %s3683_s21 = sld [smem:[#allocation10 + $0x13]]  ;;  %s3715_s17 = sld [smem:[#allocation10 + $0x46]] }
 0x513   : > { %v1121_v16 = vadd.f32 %v1119_v45, %v1106_v35  ;;  %v1172_v23 = vadd.f32 %v1170_v26, %v1157_v44  ;;  %v1239_v43 = vmul.f32 %v1238_v21, %v3267_v61  ;;  %v1196_v61 = vmul.f32 %v1194_v32, %v3273_v62 }
 0x514   : > { %v3635_v42 = vpop.permute.xlu1 %1729  ;;  %v1180_v37 = vpop.permute.xlu0 %1179  ;;  %v1285_v62 = vstv %s3669_s15  ;;  %s3737_s15 = sld [smem:[#allocation10 + $0x17]] }
 0x515   : > { %v1126_v14 = vadd.f32 %v1124_v22, %v1121_v16  ;;  %v1177_v48 = vadd.f32 %v1175_v53, %v1172_v23  ;;  %v1190_v27 = vmul.f32 %v1189_v52, %v1180_v37  ;;  %v1258_v53 = vstv %s3650_s16  ;;  %s3703_s16 = sld [smem:[#allocation10 + $0x45]] }
 0x516   : > { %1685 = vrot.lane.b32.xlu1 %v3582_v50, %s2698_s9  ;;  %1747 = vrot.lane.b32.xlu0 %v3638_v24, %s2695_s18  ;;  %v1259_v63 = vmul.f32 %v1258_v53, %v3275_v3  ;;  %v1220_v3 = vmul.f32 %v1218_v39, %v3281_v7  ;;  %v1240_v39 = vmul.f32 %v1238_v21, %v3290_v5 }
 0x517   : > { %v1133_v11 = vadd.f32 %v1131_v33, %v1126_v14  ;;  %v1192_v56 = vadd.f32 %v1190_v27, %v1177_v48  ;;  %v3676_v14 = vld [vmem:[#allocation4 + $0xe] sm:$0xff]  ;;  %v1260_v21 = vmul.f32 %v1258_v53, %v3298_v1 }
 0x518   : > { %v1142_v59 = vpop.permute.xlu1 %1141  ;;  %v1204_v36 = vpop.permute.xlu0 %1203  ;;  %v1305_v7 = vstv %s3683_s21  ;;  %v4215_v1 = vld [vmem:[#allocation22_spill] sm:$0xff]  ;;  %s3752_s21 = sld [smem:[#allocation10 + $0x49]] }
 0x519   : > { %v1138_v30 = vadd.f32 %v1136_v19, %v1133_v11  ;;  %v1197_v38 = vadd.f32 %v1195_v55, %v1192_v56  ;;  %v1151_v2 = vmul.f32 %v1149_v46, %v1142_v59  ;;  %v1214_v20 = vmul.f32 %v1213_v54, %v1204_v36 }
 0x51a   : > { %1705 = vrot.lane.b32.xlu1 %v3582_v50, %s2699_s20  ;;  %1767 = vrot.lane.b32.xlu0 %v3638_v24, %s2696_s19  ;;  %v1270_v19 = vstv %s3662_s8  ;;  %v1266_v36 = vmul.f32 %v1265_v60, %v3317_v17  ;;  %s3727_s8 = sld [smem:[#allocation10 + $0x47]] }
 0x51b   : > { %v1153_v15 = vadd.f32 %v1151_v2, %v1138_v30  ;;  %v1216_v49 = vadd.f32 %v1214_v20, %v1197_v38  ;;  %v1271_v38 = vmul.f32 %v1270_v19, %v3123_v4  ;;  %v1290_v2 = vstv %s3674_s11  ;;  %s3742_s11 = sld [smem:[#allocation10 + $0x48]] }
 0x51c   : > { %v1162_v46 = vpop.permute.xlu1 %1161  ;;  %v1224_v31 = vpop.permute.xlu0 %1223  ;;  %v1291_v4 = vmul.f32 %v1290_v2, %v3283_v10 }
 0x51d   : > { %v1158_v40 = vadd.f32 %v1156_v25, %v1153_v15  ;;  %v1221_v41 = vadd.f32 %v1219_v34, %v1216_v49  ;;  %v1171_v35 = vmul.f32 %v1169_v51, %v1162_v46  ;;  %v1234_v44 = vmul.f32 %v1233_v57, %v1224_v31 }
 0x51e   : > { %1725 = vrot.lane.b32.xlu1 %v3582_v50, %s2700_s5  ;;  %1787 = vrot.lane.b32.xlu0 %v3638_v24, %s2697_s22  ;;  %v1310_v31 = vstv %s3687_s23  ;;  %s3762_s23 = sld [smem:[#allocation10 + $0x4a]] }
 0x51f   : > { %v1173_v45 = vadd.f32 %v1171_v35, %v1158_v40  ;;  %v1236_v26 = vadd.f32 %v1234_v44, %v1221_v41  ;;  %v1311_v5 = vmul.f32 %v1310_v31, %v3292_v0 }
 0x520   : > { %v1182_v51 = vpop.permute.xlu1 %1181  ;;  %v1244_v22 = vpop.permute.xlu0 %1243 }
 0x521   : > { %v1178_v16 = vadd.f32 %v1176_v58, %v1173_v45  ;;  %v1191_v23 = vmul.f32 %v1189_v52, %v1182_v51  ;;  %v1241_v37 = vadd.f32 %v1239_v43, %v1236_v26  ;;  %v1254_v33 = vmul.f32 %v1253_v47, %v1244_v22 }
 0x522   : > { %1749 = vrot.lane.b32.xlu1 %v3676_v14, %s2695_s18  ;;  %1843 = vrot.lane.b32.xlu0 %v3345_v29, %s2699_s20  ;;  %s3698_s18 = sld [smem:[#allocation10 + $0x14]]  ;;  %v1330_v26 = vstv %s3703_s16  ;;  %s3771_s16 = sld [smem:[#allocation10 + $0x4b]] }
 0x523   : > { %v1193_v48 = vadd.f32 %v1191_v23, %v1178_v16  ;;  %v1256_v52 = vadd.f32 %v1254_v33, %v1241_v37  ;;  %v1267_v37 = vmul.f32 %v1265_v60, %v3343_v28  ;;  %v1331_v53 = vmul.f32 %v1330_v26, %v4215_v1 }
 0x524   : > { %v1206_v27 = vpop.permute.xlu1 %1205  ;;  %v3689_v55 = vpop.permute.xlu0 %1751  ;;  %v1406_v1 = vstv %s3752_s21  ;;  %s3811_s21 = sld [smem:[#allocation10 + $0x1f]] }
 0x525   : > { %v1198_v11 = vadd.f32 %v1196_v61, %v1193_v48  ;;  %v1261_v56 = vadd.f32 %v1259_v63, %v1256_v52  ;;  %v1215_v59 = vmul.f32 %v1213_v54, %v1206_v27  ;;  %v4216_v61 = vld [vmem:[#allocation21_spill] sm:$0xff]  ;;  %v1354_v52 = vstv %s3715_s17  ;;  %s3785_s17 = sld [smem:[#allocation10 + $0x1c]] }
 0x526   : > { %1769 = vrot.lane.b32.xlu1 %v3676_v14, %s2696_s19  ;;  %1819 = vrot.lane.b32.xlu0 %v3638_v24, %s2698_s9  ;;  %s3710_s19 = sld [smem:[#allocation10 + $0x15]]  ;;  %v1272_v63 = vmul.f32 %v1270_v19, %v4216_v61 }
 0x527   : > { %v1217_v32 = vadd.f32 %v1215_v59, %v1198_v11  ;;  %v1268_v30 = vadd.f32 %v1266_v36, %v1261_v56  ;;  %v4217_v36 = vld [vmem:[#allocation23_spill] sm:$0xff] }
 0x528   : > { %v1226_v17 = vpop.permute.xlu1 %1225  ;;  %v1276_v54 = vpop.permute.xlu0 %1275  ;;  %v1325_v10 = vstv %s3698_s18  ;;  %v1292_v19 = vmul.f32 %v1290_v2, %v4217_v36  ;;  %v4219_v2 = vld [vmem:[#allocation25_spill] sm:$0xff]  ;;  %s3767_s18 = sld [smem:[#allocation10 + $0x1a]] }
 0x529   : > { %v1222_v20 = vadd.f32 %v1220_v3, %v1217_v32  ;;  %v1235_v25 = vmul.f32 %v1233_v57, %v1226_v17  ;;  %v1273_v34 = vadd.f32 %v1271_v38, %v1268_v30  ;;  %v1286_v15 = vmul.f32 %v1285_v62, %v1276_v54  ;;  %v4218_v3 = vld [vmem:[#allocation24_spill] sm:$0xff] }
 0x52a   : > { %1789 = vrot.lane.b32.xlu1 %v3676_v14, %s2697_s22  ;;  %1839 = vrot.lane.b32.xlu0 %v3638_v24, %s2699_s20  ;;  %s3722_s22 = sld [smem:[#allocation10 + $0x16]]  ;;  %v1355_v32 = vmul.f32 %v1354_v52, %v4218_v3  ;;  %v1374_v17 = vstv %s3727_s8  ;;  %s3793_s8 = sld [smem:[#allocation10 + $0x1d]] }
 0x52b   : > { %v1237_v49 = vadd.f32 %v1235_v25, %v1222_v20  ;;  %v1288_v46 = vadd.f32 %v1286_v15, %v1273_v34 }
 0x52c   : > { %v1246_v57 = vpop.permute.xlu1 %1245  ;;  %v1296_v40 = vpop.permute.xlu0 %1295  ;;  %v1349_v0 = vstv %s3710_s19  ;;  %s3782_s19 = sld [smem:[#allocation10 + $0x4c]] }
 0x52d   : > { %v1242_v41 = vadd.f32 %v1240_v39, %v1237_v49  ;;  %v1255_v35 = vmul.f32 %v1253_v47, %v1246_v57  ;;  %v1293_v44 = vadd.f32 %v1291_v4, %v1288_v46  ;;  %v1306_v58 = vmul.f32 %v1305_v7, %v1296_v40  ;;  %v4220_v49 = vld [vmem:[#allocation26_spill] sm:$0xff] }
 0x52e   : > { %1845 = vrot.lane.b32.xlu1 %v3371_v12, %s2699_s20  ;;  %1859 = vrot.lane.b32.xlu0 %v3638_v24, %s2700_s5  ;;  %v1389_v4 = vstv %s3737_s15  ;;  %v1312_v39 = vmul.f32 %v1310_v31, %v4219_v2  ;;  %v1375_v46 = vmul.f32 %v1374_v17, %v4220_v49  ;;  %v4221_v31 = vld [vmem:[#allocation27_spill] sm:$0xff]  ;;  %s3798_s15 = sld [smem:[#allocation10 + $0x4e]] }
 0x52f   : > { %v1257_v43 = vadd.f32 %v1255_v35, %v1242_v41  ;;  %v1308_v45 = vadd.f32 %v1306_v58, %v1293_v44  ;;  %v1394_v41 = vstv %s3742_s11  ;;  %s3804_s11 = sld [smem:[#allocation10 + $0x1e]] }
 0x530   : > { %v3729_v47 = vpop.permute.xlu1 %1753  ;;  %v1316_v51 = vpop.permute.xlu0 %1315  ;;  %v1369_v59 = vstv %s3722_s22  ;;  %s3790_s22 = sld [smem:[#allocation10 + $0x4d]] }
 0x531   : > { %v1262_v22 = vadd.f32 %v1260_v21, %v1257_v43  ;;  %v1313_v16 = vadd.f32 %v1311_v5, %v1308_v45  ;;  %v1326_v23 = vmul.f32 %v1325_v10, %v1316_v51  ;;  %v1332_v45 = vmul.f32 %v1330_v26, %v4221_v31  ;;  %v4222_v51 = vld [vmem:[#allocation28_spill] sm:$0xff]  ;;  %v4224_v26 = vld [vmem:[#allocation29_spill] sm:$0xff] }
 0x532   : > { %1821 = vrot.lane.b32.xlu1 %v3676_v14, %s2698_s9  ;;  %1863 = vrot.lane.b32.xlu0 %v3345_v29, %s2700_s5  ;;  %s3747_s9 = sld [smem:[#allocation10 + $0x18]] }
 0x533   : > { %v1328_v33 = vadd.f32 %v1326_v23, %v1313_v16  ;;  %v1269_v48 = vadd.f32 %v1267_v37, %v1262_v22  ;;  %v1395_v22 = vmul.f32 %v1394_v41, %v4222_v51 }
 0x534   : > { %v1278_v28 = vpop.permute.xlu1 %1277  ;;  %v1340_v60 = vpop.permute.xlu0 %1339 }
 0x535   : > { %v1274_v27 = vadd.f32 %v1272_v63, %v1269_v48  ;;  %v1287_v11 = vmul.f32 %v1285_v62, %v1278_v28  ;;  %v1333_v56 = vadd.f32 %v1331_v53, %v1328_v33  ;;  %v1350_v29 = vmul.f32 %v1349_v0, %v1340_v60 }
 0x536   : > { %1841 = vrot.lane.b32.xlu1 %v3676_v14, %s2699_s20  ;;  %s3757_s20 = sld [smem:[#allocation10 + $0x19]]  ;;  %v1356_v28 = vmul.f32 %v1354_v52, %v4224_v26  ;;  %v1490_v26 = vstv %s3790_s22  ;;  %s3845_s22 = sld [smem:[#allocation10 + $0x23]] }
 0x537   : > { %v1289_v30 = vadd.f32 %v1287_v11, %v1274_v27  ;;  %v1352_v38 = vadd.f32 %v1350_v29, %v1333_v56  ;;  %v2522_v11 = vld [vmem:[#allocation5 + $0x3] sm:$0xff]  ;;  %v1426_v29 = vstv %s3762_s23  ;;  %s3819_s23 = sld [smem:[#allocation10 + $0x20]] }
 0x538   : > { %v1298_v54 = vpop.permute.xlu1 %1297  ;;  %v1360_v20 = vpop.permute.xlu0 %1359  ;;  %v1401_v43 = vstv %s3747_s9  ;;  %v1407_v56 = vmul.f32 %v2522_v11, %v1406_v1  ;;  %s3808_s9 = sld [smem:[#allocation10 + $0x4f]] }
 0x539   : > { %v1294_v62 = vadd.f32 %v1292_v19, %v1289_v30  ;;  %v1307_v25 = vmul.f32 %v1305_v7, %v1298_v54  ;;  %v1357_v34 = vadd.f32 %v1355_v32, %v1352_v38  ;;  %v1370_v15 = vmul.f32 %v1369_v59, %v1360_v20  ;;  %v4225_v54 = vld [vmem:[#allocation30_spill] sm:$0xff]  ;;  %v4226_v20 = vld [vmem:[#allocation31_spill] sm:$0xff] }
 0x53a   : > { %1861 = vrot.lane.b32.xlu1 %v3676_v14, %s2700_s5  ;;  %v1441_v38 = vstv %s3767_s18  ;;  %v1427_v52 = vmul.f32 %v1426_v29, %v4225_v54  ;;  %v1510_v54 = vstv %s3798_s15  ;;  %s3824_s18 = sld [smem:[#allocation10 + $0x51]]  ;;  %s3853_s15 = sld [smem:[#allocation10 + $0x24]] }
 0x53b   : > { %v1309_v57 = vadd.f32 %v1307_v25, %v1294_v62  ;;  %v1372_v40 = vadd.f32 %v1370_v15, %v1357_v34  ;;  %v1376_v62 = vmul.f32 %v1374_v17, %v4226_v20  ;;  %v1446_v15 = vstv %s3771_s16  ;;  %s3827_s16 = sld [smem:[#allocation10 + $0x21]] }
 0x53c   : > { %v1318_v35 = vpop.permute.xlu1 %1317  ;;  %v1380_v7 = vpop.permute.xlu0 %1379  ;;  %v1421_v48 = vstv %s3757_s20  ;;  %s3816_s20 = sld [smem:[#allocation10 + $0x50]] }
 0x53d   : > { %v1314_v44 = vadd.f32 %v1312_v39, %v1309_v57  ;;  %v1327_v58 = vmul.f32 %v1325_v10, %v1318_v35  ;;  %v1377_v5 = vadd.f32 %v1375_v46, %v1372_v40  ;;  %v1390_v21 = vmul.f32 %v1389_v4, %v1380_v7  ;;  %v4227_v35 = vld [vmem:[#allocation32_spill] sm:$0xff] }
 0x53e   : > { %1865 = vrot.lane.b32.xlu1 %v3371_v12, %s2700_s5  ;;  %v4223_v12 = vld [vmem:[#allocation41_spill] sm:$0xff]  ;;  %s3778_s5 = sld [smem:[#allocation10 + $0x1b]]  ;;  %v1447_v7 = vmul.f32 %v1446_v15, %v4227_v35  ;;  %v1530_v35 = vstv %s3808_s9  ;;  %s3864_s9 = sld [smem:[#allocation10 + $0x25]] }
 0x53f   : > { %v1329_v16 = vadd.f32 %v1327_v58, %v1314_v44  ;;  %v1392_v23 = vadd.f32 %v1390_v21, %v1377_v5  ;;  %v1402_v63 = vmul.f32 %v1401_v43, %v4223_v12  ;;  %v4228_v44 = vld [vmem:[#allocation33_spill] sm:$0xff]  ;;  %v1466_v21 = vstv %s3782_s19  ;;  %s3838_s19 = sld [smem:[#allocation10 + $0x22]] }
 0x540   : > { %v1342_v37 = vpop.permute.xlu1 %1341  ;;  %v3773_v10 = vpop.permute.xlu0 %1771  ;;  %v1396_v17 = vmul.f32 %v1394_v41, %v4228_v44 }
 0x541   : > { %v1397_v53 = vadd.f32 %v1395_v22, %v1392_v23  ;;  %v1334_v33 = vadd.f32 %v1332_v45, %v1329_v16  ;;  %v1351_v61 = vmul.f32 %v1349_v0, %v1342_v37  ;;  %v4229_v16 = vld [vmem:[#allocation48_spill] sm:$0xff]  ;;  %v1485_v37 = vstv %s3785_s17  ;;  %s3842_s17 = sld [smem:[#allocation10 + $0x53]] }
 0x542   : > { %v1403_v23 = vmul.f32 %v1401_v43, %v4229_v16 }
 0x543   : > { %v1353_v60 = vadd.f32 %v1351_v61, %v1334_v33  ;;  %v1404_v27 = vadd.f32 %v1402_v63, %v1397_v53  ;;  %v4230_v53 = vld [vmem:[#allocation34_spill] sm:$0xff]  ;;  %v2523_v61 = vld [vmem:[#allocation5 + $0xb] sm:$0xff] }
 0x544   : > { %v1362_v36 = vpop.permute.xlu1 %1361  ;;  %v1412_v19 = vpop.permute.xlu0 %1411  ;;  %v1461_v40 = vstv %s3778_s5  ;;  %v1467_v41 = vmul.f32 %v1466_v21, %v4230_v53  ;;  %v1408_v12 = vmul.f32 %v2523_v61, %v1406_v1  ;;  %s3831_s5 = sld [smem:[#allocation10 + $0x52]] }
 0x545   : > { %v1358_v3 = vadd.f32 %v1356_v28, %v1353_v60  ;;  %v1371_v0 = vmul.f32 %v1369_v59, %v1362_v36  ;;  %v1409_v32 = vadd.f32 %v1407_v56, %v1404_v27  ;;  %v1422_v30 = vmul.f32 %v1421_v48, %v1412_v19  ;;  %v4231_v19 = vld [vmem:[#allocation35_spill] sm:$0xff] }
 0x546   : > { %v1505_v36 = vstv %s3793_s8  ;;  %s3850_s8 = sld [smem:[#allocation10 + $0x54]] }
 0x547   : > { %v1373_v25 = vadd.f32 %v1371_v0, %v1358_v3  ;;  %v1424_v34 = vadd.f32 %v1422_v30, %v1409_v32  ;;  %v1428_v3 = vmul.f32 %v1426_v29, %v4231_v19  ;;  %v4232_v0 = vld [vmem:[#allocation36_spill] sm:$0xff]  ;;  %v1562_v19 = vstv %s3824_s18  ;;  %s3879_s18 = sld [smem:[#allocation10 + $0x27]] }
 0x548   : > { %v1382_v2 = vpop.permute.xlu1 %1381  ;;  %v1432_v39 = vpop.permute.xlu0 %1431  ;;  %v1491_v32 = vmul.f32 %v1490_v26, %v4232_v0 }
 0x549   : > { %v1378_v49 = vadd.f32 %v1376_v62, %v1373_v25  ;;  %v1391_v59 = vmul.f32 %v1389_v4, %v1382_v2  ;;  %v1429_v46 = vadd.f32 %v1427_v52, %v1424_v34  ;;  %v1442_v57 = vmul.f32 %v1441_v38, %v1432_v39  ;;  %v4233_v39 = vld [vmem:[#allocation37_spill] sm:$0xff] }
 0x54a   : > { %v1525_v2 = vstv %s3804_s11  ;;  %v1448_v29 = vmul.f32 %v1446_v15, %v4233_v39  ;;  %s3858_s11 = sld [smem:[#allocation10 + $0x55]] }
 0x54b   : > { %v1393_v58 = vadd.f32 %v1391_v59, %v1378_v49  ;;  %v1444_v5 = vadd.f32 %v1442_v57, %v1429_v46  ;;  %v4234_v49 = vld [vmem:[#allocation38_spill] sm:$0xff] }
 0x54c   : > { %v3800_v31 = vpop.permute.xlu1 %1773  ;;  %v1452_v45 = vpop.permute.xlu0 %1451  ;;  %v1511_v59 = vmul.f32 %v1510_v54, %v4234_v49 }
 0x54d   : > { %v1398_v4 = vadd.f32 %v1396_v17, %v1393_v58  ;;  %v1449_v51 = vadd.f32 %v1447_v7, %v1444_v5  ;;  %v1462_v22 = vmul.f32 %v1461_v40, %v1452_v45  ;;  %v1537_v45 = vstv %s3811_s21  ;;  %s3868_s21 = sld [smem:[#allocation10 + $0x56]] }
 0x54f   : > { %v1464_v33 = vadd.f32 %v1462_v22, %v1449_v51  ;;  %v1405_v63 = vadd.f32 %v1403_v23, %v1398_v4  ;;  %v4235_v4 = vld [vmem:[#allocation39_spill] sm:$0xff]  ;;  %v4236_v51 = vld [vmem:[#allocation40_spill] sm:$0xff] }
 0x550   : > { %v1414_v28 = vpop.permute.xlu1 %1413  ;;  %v1476_v60 = vpop.permute.xlu0 %1475  ;;  %v1468_v15 = vmul.f32 %v1466_v21, %v4235_v4  ;;  %v1531_v22 = vmul.f32 %v1530_v35, %v4236_v51  ;;  %v4237_v21 = vld [vmem:[#allocation42_spill] sm:$0xff] }
 0x551   : > { %v1410_v27 = vadd.f32 %v1408_v12, %v1405_v63  ;;  %v1423_v11 = vmul.f32 %v1421_v48, %v1414_v28  ;;  %v1469_v56 = vadd.f32 %v1467_v41, %v1464_v33  ;;  %v1486_v43 = vmul.f32 %v1485_v37, %v1476_v60 }
 0x552   : > { %v1542_v33 = vstv %s3816_s20  ;;  %v1538_v63 = vmul.f32 %v1537_v45, %v3449_v8  ;;  %v1557_v28 = vstv %s3819_s23  ;;  %v1492_v60 = vmul.f32 %v1490_v26, %v4237_v21  ;;  %s3871_s20 = sld [smem:[#allocation10 + $0x26]]  ;;  %s3876_s23 = sld [smem:[#allocation10 + $0x57]] }
 0x553   : > { %v1425_v1 = vadd.f32 %v1423_v11, %v1410_v27  ;;  %v1488_v30 = vadd.f32 %v1486_v43, %v1469_v56  ;;  %v2524_v56 = vld [vmem:[#allocation5 + $0x4] sm:$0xff]  ;;  %v1626_v21 = vstv %s3850_s8  ;;  %s3905_s8 = sld [smem:[#allocation10 + $0x2a]] }
 0x554   : > { %v1434_v52 = vpop.permute.xlu1 %1433  ;;  %v1496_v20 = vpop.permute.xlu0 %1495  ;;  %v1543_v43 = vmul.f32 %v2524_v56, %v1542_v33 }
 0x555   : > { %v1430_v62 = vadd.f32 %v1428_v3, %v1425_v1  ;;  %v1443_v48 = vmul.f32 %v1441_v38, %v1434_v52  ;;  %v1493_v25 = vadd.f32 %v1491_v32, %v1488_v30  ;;  %v1506_v34 = vmul.f32 %v1505_v36, %v1496_v20  ;;  %v4238_v52 = vld [vmem:[#allocation43_spill] sm:$0xff]  ;;  %v4239_v20 = vld [vmem:[#allocation44_spill] sm:$0xff] }
 0x556   : > { %v1577_v30 = vstv %s3827_s16  ;;  %v1563_v26 = vmul.f32 %v1562_v19, %v4238_v52  ;;  %s3884_s16 = sld [smem:[#allocation10 + $0x58]] }
 0x557   : > { %v1445_v46 = vadd.f32 %v1443_v48, %v1430_v62  ;;  %v1508_v57 = vadd.f32 %v1506_v34, %v1493_v25  ;;  %v1512_v62 = vmul.f32 %v1510_v54, %v4239_v20  ;;  %v1582_v34 = vstv %s3831_s5  ;;  %s3887_s5 = sld [smem:[#allocation10 + $0x28]] }
 0x558   : > { %v1454_v7 = vpop.permute.xlu1 %1453  ;;  %v1516_v44 = vpop.permute.xlu0 %1515 }
 0x559   : > { %v1450_v17 = vadd.f32 %v1448_v29, %v1445_v46  ;;  %v1463_v38 = vmul.f32 %v1461_v40, %v1454_v7  ;;  %v1513_v58 = vadd.f32 %v1511_v59, %v1508_v57  ;;  %v1526_v5 = vmul.f32 %v1525_v2, %v1516_v44  ;;  %v4240_v7 = vld [vmem:[#allocation45_spill] sm:$0xff] }
 0x55a   : > { %v1597_v57 = vstv %s3838_s19  ;;  %v1583_v44 = vmul.f32 %v1582_v34, %v4240_v7  ;;  %s3891_s19 = sld [smem:[#allocation10 + $0x59]] }
 0x55b   : > { %v1465_v16 = vadd.f32 %v1463_v38, %v1450_v17  ;;  %v1528_v23 = vadd.f32 %v1526_v5, %v1513_v58  ;;  %v4241_v17 = vld [vmem:[#allocation46_spill] sm:$0xff]  ;;  %v1602_v5 = vstv %s3842_s17  ;;  %s3898_s17 = sld [smem:[#allocation10 + $0x29]] }
 0x55c   : > { %v1478_v53 = vpop.permute.xlu1 %1477  ;;  %v3833_v41 = vpop.permute.xlu0 %1791  ;;  %v1532_v54 = vmul.f32 %v1530_v35, %v4241_v17 }
 0x55d   : > { %v1533_v40 = vadd.f32 %v1531_v22, %v1528_v23  ;;  %v1470_v61 = vadd.f32 %v1468_v15, %v1465_v16  ;;  %v1487_v12 = vmul.f32 %v1485_v37, %v1478_v53  ;;  %v1539_v16 = vmul.f32 %v1537_v45, %v3489_v13  ;;  %v4242_v53 = vld [vmem:[#allocation47_spill] sm:$0xff] }
 0x55e   : > { %v1621_v23 = vstv %s3845_s22  ;;  %v1603_v35 = vmul.f32 %v1602_v5, %v4242_v53  ;;  %v1641_v45 = vstv %s3853_s15  ;;  %s3902_s22 = sld [smem:[#allocation10 + $0x5a]]  ;;  %s3910_s15 = sld [smem:[#allocation10 + $0x5b]] }
 0x55f   : > { %v1489_v27 = vadd.f32 %v1487_v12, %v1470_v61  ;;  %v1540_v11 = vadd.f32 %v1538_v63, %v1533_v40  ;;  %v2525_v61 = vld [vmem:[#allocation5 + $0xc] sm:$0xff] }
 0x560   : > { %v1498_v3 = vpop.permute.xlu1 %1497  ;;  %v1548_v0 = vpop.permute.xlu0 %1547  ;;  %v1544_v12 = vmul.f32 %v2525_v61, %v1542_v33 }
 0x561   : > { %v1494_v32 = vadd.f32 %v1492_v60, %v1489_v27  ;;  %v1507_v37 = vmul.f32 %v1505_v36, %v1498_v3  ;;  %v1545_v1 = vadd.f32 %v1543_v43, %v1540_v11  ;;  %v1558_v8 = vmul.f32 %v1557_v28, %v1548_v0  ;;  %v4243_v3 = vld [vmem:[#allocation49_spill] sm:$0xff] }
 0x562   : > { %v1564_v0 = vmul.f32 %v1562_v19, %v4243_v3  ;;  %v1698_v3 = vstv %s3884_s16  ;;  %s3939_s16 = sld [smem:[#allocation10 + $0x2e]] }
 0x563   : > { %v1509_v48 = vadd.f32 %v1507_v37, %v1494_v32  ;;  %v1560_v25 = vadd.f32 %v1558_v8, %v1545_v1  ;;  %v4244_v32 = vld [vmem:[#allocation50_spill] sm:$0xff]  ;;  %v1646_v8 = vstv %s3858_s11  ;;  %s3913_s11 = sld [smem:[#allocation10 + $0x2b]] }
 0x564   : > { %v1518_v39 = vpop.permute.xlu1 %1517  ;;  %v1568_v29 = vpop.permute.xlu0 %1567  ;;  %v1627_v37 = vmul.f32 %v1626_v21, %v4244_v32 }
 0x565   : > { %v1514_v49 = vadd.f32 %v1512_v62, %v1509_v48  ;;  %v1527_v36 = vmul.f32 %v1525_v2, %v1518_v39  ;;  %v1565_v59 = vadd.f32 %v1563_v26, %v1560_v25  ;;  %v1578_v46 = vmul.f32 %v1577_v30, %v1568_v29  ;;  %v4245_v39 = vld [vmem:[#allocation51_spill] sm:$0xff]  ;;  %v4246_v29 = vld [vmem:[#allocation52_spill] sm:$0xff] }
 0x566   : > { %v1661_v25 = vstv %s3864_s9  ;;  %v1584_v19 = vmul.f32 %v1582_v34, %v4245_v39  ;;  %s3918_s9 = sld [smem:[#allocation10 + $0x5c]] }
 0x567   : > { %v1529_v38 = vadd.f32 %v1527_v36, %v1514_v49  ;;  %v1580_v58 = vadd.f32 %v1578_v46, %v1565_v59  ;;  %v1647_v49 = vmul.f32 %v1646_v8, %v4246_v29  ;;  %v1666_v46 = vstv %s3868_s21  ;;  %s3924_s21 = sld [smem:[#allocation10 + $0x2c]] }
 0x568   : > { %v3860_v4 = vpop.permute.xlu1 %1793  ;;  %v1588_v15 = vpop.permute.xlu0 %1587 }
 0x569   : > { %v1534_v2 = vadd.f32 %v1532_v54, %v1529_v38  ;;  %v1585_v51 = vadd.f32 %v1583_v44, %v1580_v58  ;;  %v1598_v22 = vmul.f32 %v1597_v57, %v1588_v15  ;;  %v1673_v58 = vstv %s3871_s20  ;;  %v4247_v15 = vld [vmem:[#allocation53_spill] sm:$0xff]  ;;  %s3928_s20 = sld [smem:[#allocation10 + $0x5d]] }
 0x56a   : > { %v1604_v34 = vmul.f32 %v1602_v5, %v4247_v15  ;;  %v4249_v5 = vld [vmem:[#allocation55_spill] sm:$0xff] }
 0x56b   : > { %v1600_v40 = vadd.f32 %v1598_v22, %v1585_v51  ;;  %v1541_v63 = vadd.f32 %v1539_v16, %v1534_v2  ;;  %v4248_v2 = vld [vmem:[#allocation54_spill] sm:$0xff] }
 0x56c   : > { %v1550_v60 = vpop.permute.xlu1 %1549  ;;  %v1612_v27 = vpop.permute.xlu0 %1611  ;;  %v1667_v51 = vmul.f32 %v1666_v46, %v4248_v2 }
 0x56d   : > { %v1546_v11 = vadd.f32 %v1544_v12, %v1541_v63  ;;  %v1559_v56 = vmul.f32 %v1557_v28, %v1550_v60  ;;  %v1605_v43 = vadd.f32 %v1603_v35, %v1600_v40  ;;  %v1622_v13 = vmul.f32 %v1621_v23, %v1612_v27 }
 0x56e   : > { %v1678_v40 = vstv %s3876_s23  ;;  %v1674_v63 = vmul.f32 %v1673_v58, %v3544_v6  ;;  %v1693_v60 = vstv %s3879_s18  ;;  %v1628_v27 = vmul.f32 %v1626_v21, %v4249_v5  ;;  %s3931_s23 = sld [smem:[#allocation10 + $0x2d]]  ;;  %s3936_s18 = sld [smem:[#allocation10 + $0x5e]] }
 0x56f   : > { %v1561_v33 = vadd.f32 %v1559_v56, %v1546_v11  ;;  %v1624_v1 = vadd.f32 %v1622_v13, %v1605_v43  ;;  %v2526_v43 = vld [vmem:[#allocation5 + $0x5] sm:$0xff] }
 0x570   : > { %v1570_v52 = vpop.permute.xlu1 %1569  ;;  %v1632_v26 = vpop.permute.xlu0 %1631  ;;  %v1679_v13 = vmul.f32 %v2526_v43, %v1678_v40 }
 0x571   : > { %v1566_v20 = vadd.f32 %v1564_v0, %v1561_v33  ;;  %v1579_v28 = vmul.f32 %v1577_v30, %v1570_v52  ;;  %v1629_v62 = vadd.f32 %v1627_v37, %v1624_v1  ;;  %v1642_v48 = vmul.f32 %v1641_v45, %v1632_v26  ;;  %v4250_v52 = vld [vmem:[#allocation56_spill] sm:$0xff]  ;;  %v4251_v26 = vld [vmem:[#allocation57_spill] sm:$0xff] }
 0x572   : > { %v1713_v1 = vstv %s3887_s5  ;;  %v1699_v21 = vmul.f32 %v1698_v3, %v4250_v52  ;;  %s3944_s5 = sld [smem:[#allocation10 + $0x5f]] }
 0x573   : > { %v1581_v36 = vadd.f32 %v1579_v28, %v1566_v20  ;;  %v1644_v59 = vadd.f32 %v1642_v48, %v1629_v62  ;;  %v1648_v20 = vmul.f32 %v1646_v8, %v4251_v26  ;;  %v1718_v48 = vstv %s3891_s19  ;;  %s3947_s19 = sld [smem:[#allocation10 + $0x2f]] }
 0x574   : > { %v1590_v7 = vpop.permute.xlu1 %1589  ;;  %v1652_v44 = vpop.permute.xlu0 %1651  ;;  %v1797_v26 = vstv %s3924_s21  ;;  %s4261_s21 = smov 48  }
 0x575   : > { %v1586_v17 = vadd.f32 %v1584_v19, %v1581_v36  ;;  %v1599_v30 = vmul.f32 %v1597_v57, %v1590_v7  ;;  %v1649_v54 = vadd.f32 %v1647_v49, %v1644_v59  ;;  %v1662_v38 = vmul.f32 %v1661_v25, %v1652_v44  ;;  %v4252_v7 = vld [vmem:[#allocation58_spill] sm:$0xff] }
 0x576   : > { %v1733_v59 = vstv %s3898_s17  ;;  %v1668_v44 = vmul.f32 %v1666_v46, %v4252_v7  ;;  %s3951_s17 = sld [smem:[#allocation10 + $0x60]] }
 0x577   : > { %v1601_v22 = vadd.f32 %v1599_v30, %v1586_v17  ;;  %v1664_v16 = vadd.f32 %v1662_v38, %v1649_v54  ;;  %v4253_v17 = vld [vmem:[#allocation60_spill] sm:$0xff]  ;;  %v1738_v38 = vstv %s3902_s22  ;;  %s3956_s22 = sld [smem:[#allocation10 + $0x30]] }
 0x578   : > { %v1614_v53 = vpop.permute.xlu1 %1613  ;;  %v3893_v35 = vpop.permute.xlu0 %1823  ;;  %v1719_v8 = vmul.f32 %v1718_v48, %v4253_v17  ;;  %v1739_v46 = vmul.f32 %v1738_v38, %v3596_v9 }
 0x579   : > { %v1669_v57 = vadd.f32 %v1667_v51, %v1664_v16  ;;  %v1606_v61 = vadd.f32 %v1604_v34, %v1601_v22  ;;  %v1623_v12 = vmul.f32 %v1621_v23, %v1614_v53  ;;  %v1675_v22 = vmul.f32 %v1673_v58, %v3582_v50 }
 0x57a   : > { %v1757_v16 = vstv %s3905_s8  ;;  %v1777_v58 = vstv %s3913_s11  ;;  %s3961_s8 = sld [smem:[#allocation10 + $0x61]]  ;;  %s4259_s11 = smov 32  }
 0x57b   : > { %v1625_v11 = vadd.f32 %v1623_v12, %v1606_v61  ;;  %v1676_v56 = vadd.f32 %v1674_v63, %v1669_v57  ;;  %v2527_v57 = vld [vmem:[#allocation5 + $0xd] sm:$0xff]  ;;  %v1762_v63 = vstv %s3910_s15  ;;  %s4258_s15 = smov 16  }
 0x57c   : > { %v1634_v0 = vpop.permute.xlu1 %1633  ;;  %v1684_v32 = vpop.permute.xlu0 %1683  ;;  %v1680_v61 = vmul.f32 %v2527_v57, %v1678_v40 }
 0x57d   : > { %v1630_v37 = vadd.f32 %v1628_v27, %v1625_v11  ;;  %v1643_v23 = vmul.f32 %v1641_v45, %v1634_v0  ;;  %v1681_v33 = vadd.f32 %v1679_v13, %v1676_v56  ;;  %v1694_v6 = vmul.f32 %v1693_v60, %v1684_v32  ;;  %v4254_v13 = vld [vmem:[#allocation59_spill] sm:$0xff] }
 0x57e   : > { %v1700_v9 = vmul.f32 %v1698_v3, %v4254_v13  ;;  %v1763_v0 = vmul.f32 %v1762_v63, %v3689_v55  ;;  %v1720_v3 = vmul.f32 %v1718_v48, %v3541_v18  ;;  %v1740_v18 = vmul.f32 %v1738_v38, %v3635_v42 }
 0x57f   : > { %v1645_v28 = vadd.f32 %v1643_v23, %v1630_v37  ;;  %v1696_v62 = vadd.f32 %v1694_v6, %v1681_v33  ;;  %v1782_v37 = vstv %s3918_s9  ;;  %v1764_v42 = vmul.f32 %v1762_v63, %v3729_v47  ;;  %s4260_s9 = smov 64  }
 0x580   : > { %v1654_v39 = vpop.permute.xlu1 %1653  ;;  %v1704_v19 = vpop.permute.xlu0 %1703  ;;  %v1783_v55 = vmul.f32 %v1782_v37, %v3773_v10 }
 0x581   : > { %v1650_v29 = vadd.f32 %v1648_v20, %v1645_v28  ;;  %v1663_v45 = vmul.f32 %v1661_v25, %v1654_v39  ;;  %v1701_v49 = vadd.f32 %v1699_v21, %v1696_v62  ;;  %v1714_v36 = vmul.f32 %v1713_v1, %v1704_v19 }
 0x582   : > { %v1802_v62 = vstv %s3928_s20  ;;  %s4262_s20 = smov 80  }
 0x583   : > { %v1665_v30 = vadd.f32 %v1663_v45, %v1650_v29  ;;  %v1716_v54 = vadd.f32 %v1714_v36, %v1701_v49  ;;  %v1809_v36 = vstv %s3931_s23  ;;  %v1803_v10 = vmul.f32 %v1802_v62, %v3833_v41  ;;  %s4263_s23 = smov 96  }
 0x584   : > { %v3920_v15 = vpop.permute.xlu1 %1825  ;;  %v1724_v34 = vpop.permute.xlu0 %1723 }
 0x585   : > { %v1670_v25 = vadd.f32 %v1668_v44, %v1665_v30  ;;  %v1721_v2 = vadd.f32 %v1719_v8, %v1716_v54  ;;  %v1734_v51 = vmul.f32 %v1733_v59, %v1724_v34  ;;  %v1814_v8 = vstv %s3936_s18  ;;  %s4264_s18 = smov 112  }
 0x586   : > { %v1810_v34 = vmul.f32 %v1809_v36, %v3638_v24  ;;  %v1784_v24 = vmul.f32 %v1782_v37, %v3800_v31 }
 0x587   : > { %v1736_v53 = vadd.f32 %v1734_v51, %v1721_v2  ;;  %v1677_v12 = vadd.f32 %v1675_v22, %v1670_v25  ;;  %v1829_v25 = vstv %s3939_s16  ;;  %v2528_v2 = vld [vmem:[#allocation5 + $0x6] sm:$0xff]  ;;  %v1834_v22 = vstv %s3944_s5  ;;  %s2284_s16 = sshll.u32 %s2872_s29, 1  ;;  %s2396_s5 = sshll.u32 %s2766_s28, 5 }
 0x588   : > { %v1686_v5 = vpop.permute.xlu1 %1685  ;;  %v1748_v27 = vpop.permute.xlu0 %1747  ;;  %v1815_v51 = vmul.f32 %v2528_v2, %v1814_v8  ;;  %v1835_v47 = vmul.f32 %v1834_v22, %v3893_v35 }
 0x589   : > { %v1682_v11 = vadd.f32 %v1680_v61, %v1677_v12  ;;  %v1695_v56 = vmul.f32 %v1693_v60, %v1686_v5  ;;  %v1741_v43 = vadd.f32 %v1739_v46, %v1736_v53  ;;  %v1758_v50 = vmul.f32 %v1757_v16, %v1748_v27 }
 0x58a   : > { %v1849_v5 = vstv %s3947_s19  ;;  %s4018_s19 = scalar_lea.vmem [#allocation12], %s2284_s16 }
 0x58b   : > { %v1697_v40 = vadd.f32 %v1695_v56, %v1682_v11  ;;  %v1760_v32 = vadd.f32 %v1758_v50, %v1741_v43  ;;  %v1854_v11 = vstv %s3951_s17  ;;  %s2159_s17 = sshll.u32 %s4018_s19, 4  ;;  %s4027_s17 = int_to_ptr.vmem [resolvable:$true] %s2159_s17 }
 0x58c   : > { %v1706_v23 = vpop.permute.xlu1 %1705  ;;  %v1768_v33 = vpop.permute.xlu0 %1767 }
 0x58d   : > { %v1702_v6 = vadd.f32 %v1700_v9, %v1697_v40  ;;  %v1715_v60 = vmul.f32 %v1713_v1, %v1706_v23  ;;  %v1765_v52 = vadd.f32 %v1763_v0, %v1760_v32  ;;  %v1778_v21 = vmul.f32 %v1777_v58, %v1768_v33 }
 0x58e   : > { %v1869_v0 = vstv %s3956_s22  ;;  %v1804_v40 = vmul.f32 %v1802_v62, %v3860_v4  ;;  %v1836_v62 = vmul.f32 %v1834_v22, %v3920_v15  ;;  %v4255_v22 = vld [vmem:[#allocation19_spill] sm:$0xff] }
 0x58f   : > { %v1717_v20 = vadd.f32 %v1715_v60, %v1702_v6  ;;  %v1780_v28 = vadd.f32 %v1778_v21, %v1765_v52  ;;  %v1811_v52 = vmul.f32 %v1809_v36, %v3676_v14  ;;  %v1874_v21 = vstv %s3961_s8 }
 0x590   : > { %v1726_v39 = vpop.permute.xlu1 %1725  ;;  %v1788_v19 = vpop.permute.xlu0 %1787 }
 0x591   : > { %v1722_v29 = vadd.f32 %v1720_v3, %v1717_v20  ;;  %v1735_v1 = vmul.f32 %v1733_v59, %v1726_v39  ;;  %v1785_v45 = vadd.f32 %v1783_v55, %v1780_v28  ;;  %v1798_v49 = vmul.f32 %v1797_v26, %v1788_v19  ;;  %v2529_v3 = vld [vmem:[#allocation5 + $0xe] sm:$0xff] }
 0x592   : > { %v1816_v55 = vmul.f32 %v2529_v3, %v1814_v8 }
 0x593   : > { %v1737_v48 = vadd.f32 %v1735_v1, %v1722_v29  ;;  %v1800_v7 = vadd.f32 %v1798_v49, %v1785_v45 }
 0x594   : > { %v1750_v44 = vpop.permute.xlu1 %1749  ;;  %v1844_v17 = vpop.permute.xlu0 %1843 }
 0x595   : > { %v1805_v30 = vadd.f32 %v1803_v10, %v1800_v7  ;;  %v1742_v59 = vadd.f32 %v1740_v18, %v1737_v48  ;;  %v1759_v54 = vmul.f32 %v1757_v16, %v1750_v44  ;;  %v1855_v32 = vmul.f32 %v1854_v11, %v1844_v17 }
 0x597   : > { %v1761_v41 = vadd.f32 %v1759_v54, %v1742_v59  ;;  %v1812_v38 = vadd.f32 %v1810_v34, %v1805_v30 }
 0x598   : > { %v1770_v46 = vpop.permute.xlu1 %1769  ;;  %v1820_v53 = vpop.permute.xlu0 %1819 }
 0x599   : > { %v1766_v57 = vadd.f32 %v1764_v42, %v1761_v41  ;;  %v1779_v61 = vmul.f32 %v1777_v58, %v1770_v46  ;;  %v1817_v16 = vadd.f32 %v1815_v51, %v1812_v38  ;;  %v1830_v12 = vmul.f32 %v1829_v25, %v1820_v53  ;;  %v4256_v53 = vld [vmem:[#allocation20_spill] sm:$0xff] }
 0x59b   : > { %v1781_v63 = vadd.f32 %v1779_v61, %v1766_v57  ;;  %v1832_v27 = vadd.f32 %v1830_v12, %v1817_v16  ;;  %v4257_v61 = vmov 0.0  }
 0x59c   : > { %v1790_v56 = vpop.permute.xlu1 %1789  ;;  %v1840_v43 = vpop.permute.xlu0 %1839 }
 0x59d   : > { %v1786_v50 = vadd.f32 %v1784_v24, %v1781_v63  ;;  %v1799_v13 = vmul.f32 %v1797_v26, %v1790_v56  ;;  %v1837_v9 = vadd.f32 %v1835_v47, %v1832_v27  ;;  %v1850_v58 = vmul.f32 %v1849_v5, %v1840_v43 }
 0x59f   : > { %v1801_v23 = vadd.f32 %v1799_v13, %v1786_v50  ;;  %v1852_v33 = vadd.f32 %v1850_v58, %v1837_v9 }
 0x5a0   : > { %v1846_v6 = vpop.permute.xlu1 %1845  ;;  %v1860_v31 = vpop.permute.xlu0 %1859 }
 0x5a1   : > { %v1806_v37 = vadd.f32 %v1804_v40, %v1801_v23  ;;  %v1857_v35 = vadd.f32 %v1855_v32, %v1852_v33  ;;  %v1870_v60 = vmul.f32 %v1869_v0, %v1860_v31  ;;  %v1856_v7 = vmul.f32 %v1854_v11, %v1846_v6 }
 0x5a3   : > { %v1813_v20 = vadd.f32 %v1811_v52, %v1806_v37  ;;  %v1872_v39 = vadd.f32 %v1870_v60, %v1857_v35 }
 0x5a4   : > { %v1822_v26 = vpop.permute.xlu1 %1821  ;;  %v1864_v28 = vpop.permute.xlu0 %1863 }
 0x5a5   : > { %v1818_v19 = vadd.f32 %v1816_v55, %v1813_v20  ;;  %v1831_v29 = vmul.f32 %v1829_v25, %v1822_v26  ;;  %v1875_v4 = vmul.f32 %v1874_v21, %v1864_v28 }
 0x5a7   : > { %v1833_v1 = vadd.f32 %v1831_v29, %v1818_v19  ;;  %v1877_v45 = vadd.f32 %v1875_v4, %v1872_v39 }
 0x5a8   : > { %v1842_v49 = vpop.permute.xlu1 %1841 }
 0x5a9   : > { %v1879_v18 = vsub.f32 0.0, %v1877_v45  ;;  %v1838_v10 = vadd.f32 %v1836_v62, %v1833_v1  ;;  %v1851_v48 = vmul.f32 %v1849_v5, %v1842_v49  ;;  %v2701_v1 = vmov 1966171168  }
 0x5aa   : > { %v2068_v45 = vunpack.c.l.s4 %v2701_v1 }
 0x5ab   : > { %v1881_v14 = vmul.f32 1.442695, %v1879_v18  ;;  %v1853_v36 = vadd.f32 %v1851_v48, %v1838_v10 }
 0x5ac   : > { %v1862_v44 = vpop.permute.xlu1 %1861 }
 0x5ad   : > { %2514 = vpow2.f32 %v1881_v14  ;;  %v1858_v17 = vadd.f32 %v1856_v7, %v1853_v36  ;;  %v1871_v8 = vmul.f32 %v1869_v0, %v1862_v44  ;;  %v2069_v44 = vunpack.c.0.s8 %v2068_v45 }
 0x5af   : > { %v1873_v59 = vadd.f32 %v1871_v8, %v1858_v17 }
 0x5b0   : > { %v1866_v30 = vpop.permute.xlu1 %1865 }
 0x5b1   : > { %v1876_v54 = vmul.f32 %v1874_v21, %v1866_v30 }
 0x5b3   : > { %v1878_v34 = vadd.f32 %v1876_v54, %v1873_v59 }
 0x5b5   : > { %v1880_v25 = vsub.f32 0.0, %v1878_v34 }
 0x5b7   : > { %v2515_v42 = vpop.eup %2514  ;;  %v1883_v15 = vmul.f32 1.442695, %v1880_v25 }
 0x5b8   : > { %v1885_v41 = vadd.f32 1.0, %v2515_v42  ;;  %v4265_v42 = vld [vmem:[#allocation18_spill] sm:$0xff] }
 0x5b9   : > { %2516 = vpow2.f32 %v1883_v15  ;;  %v2072_v15 = vsub.s32 %v2069_v44, %v4265_v42 }
 0x5ba   : > { %2518 = vrcp.f32 %v1885_v41 }
 0x5c3   : > { %v2517_v38 = vpop.eup %2516 }
 0x5c4   : > { %v2519_v2 = vpop.eup %2518  ;;  %v1886_v51 = vadd.f32 1.0, %v2517_v38 }
 0x5c5   : > { %v1898_v46 = vrot.slane %v2519_v2, %v4255_v22  ;;  %v1891_v5 = vcombine.high %v2519_v2, %v4257_v61 }
 0x5c6   : > { %2520 = vrcp.f32 %v1886_v51 }
 0x5c7   : > { %v1913_v57 = vrot.slane %v1898_v46, %v4256_v53  ;;  %v1906_v12 = vcombine.high %v1898_v46, %v4257_v61  ;;  %v1905_v47 = vrot.slane %v1891_v5, %v4255_v22  ;;  %v4266_v46 = vlaneseq }
 0x5c9   : > { %v1936_v16 = vcombine.high %v1913_v57, %v4257_v61  ;;  %v1920_v24 = vrot.slane %v1906_v12, %v4256_v53  ;;  %v1928_v27 = vrot.slane %v1905_v47, %v4256_v53  ;;  %v1921_v32 = vcombine.high %v1905_v47, %v4257_v61 }
 0x5ca   : > { %vm2084_vm14 = vcmp.lt.s32.totalorder %v4266_v46, 256 }
 0x5cb   : > { %1990 = vrot.lane.b32.xlu0 %v1936_v16, %s4258_s15  ;;  %v1937_v50 = vcombine.high %v1920_v24, %v4257_v61  ;;  %v1938_v0 = vcombine.high %v1928_v27, %v4257_v61  ;;  %v1935_v33 = vrot.slane %v1921_v32, %v4256_v53 }
 0x5cd   : > { %v1939_v31 = vcombine.high %v1935_v33, %v4257_v61 }
 0x5cf   : > { %1994 = vrot.lane.b32.xlu0 %v1920_v24, %s4259_s11 }
 0x5d0   : > { %v2521_v63 = vpop.eup %2520 }
 0x5d1   : > { %v1947_v11 = vrot.slane %v2521_v63, %v4255_v22  ;;  %v1940_v9 = vcombine.high %v2521_v63, %v4257_v61 }
 0x5d3   : > { %2002 = vrot.lane.b32.xlu0 %v1928_v27, %s4260_s9  ;;  %v1962_v56 = vrot.slane %v1947_v11, %v4256_v53  ;;  %v1955_v13 = vcombine.high %v1947_v11, %v4257_v61  ;;  %v1954_v40 = vrot.slane %v1940_v9, %v4255_v22 }
 0x5d5   : > { %v1985_v43 = vcombine.high %v1962_v56, %v4257_v61  ;;  %v1969_v58 = vrot.slane %v1955_v13, %v4256_v53  ;;  %v1977_v23 = vrot.slane %v1954_v40, %v4256_v53  ;;  %v1970_v35 = vcombine.high %v1954_v40, %v4257_v61 }
 0x5d7   : > { %2018 = vrot.lane.b32.xlu1 %v1985_v43, %s4258_s15  ;;  %1998 = vrot.lane.b32.xlu0 %v1937_v50, %s4261_s21  ;;  %v1986_v6 = vcombine.high %v1969_v58, %v4257_v61  ;;  %v1987_v37 = vcombine.high %v1977_v23, %v4257_v61  ;;  %v1984_v60 = vrot.slane %v1970_v35, %v4256_v53 }
 0x5d9   : > { %v1988_v52 = vcombine.high %v1984_v60, %v4257_v61 }
 0x5db   : > { %2022 = vrot.lane.b32.xlu1 %v1969_v58, %s4259_s11  ;;  %2006 = vrot.lane.b32.xlu0 %v1938_v0, %s4262_s20  ;;  %s4025_s11 = scalar_lea.hbm %s4130_s7, %s2396_s5 }
 0x5df   : > { %2030 = vrot.lane.b32.xlu1 %v1977_v23, %s4260_s9  ;;  %2010 = vrot.lane.b32.xlu0 %v1935_v33, %s4263_s23  ;;  %s2129_s9 = scalar_lea.sflag [#allocation13], %s2872_s29 }
 0x5e3   : > { %2026 = vrot.lane.b32.xlu1 %v1986_v6, %s4261_s21  ;;  %2014 = vrot.lane.b32.xlu0 %v1939_v31, %s4264_s18  ;;  %s2575_s21 = scalar_lea.vmem %s4027_s17, 32 }
 0x5e4   : > { %p2576_p5 = scmp.ne.s32.totalorder %s4027_s17, %s2575_s21 }
 0x5e6   : > { %p2577_p8 = pnand %p2576_p5, %p4267_p12 }
 0x5e7   : > { %2034 = vrot.lane.b32.xlu1 %v1987_v37, %s4262_s20  ;;  %s2702_s20 = smov [#allocation12]  }
 0x5e8   : > { %p2578_p9 = pneg %p2577_p8 }
 0x5eb   : > { %2038 = vrot.lane.b32.xlu1 %v1984_v60, %s4263_s23  ;;  %s2579_s23 = sshll.u32 %s2702_s20, 4  ;;  %s2580_s23 = int_to_ptr.vmem [resolvable:$false] %s2579_s23 }
 0x5ec   : > { %p2582_p10 = scmp.lt.s32.totalorder %s4027_s17, %s2580_s23 }
 0x5ef   : > { %2042 = vrot.lane.b32.xlu1 %v1988_v52, %s4264_s18  ;;  %s2581_s18 = scalar_lea.vmem %s2580_s23, 64 }
 0x5f0   : > { %p2583_p1 = scmp.lt.s32.totalorder %s2581_s18, %s2575_s21 }
 0x5f2   : > { %p2584_p4 = por %p2583_p1, %p2582_p10 }
 0x5f4   : > { %p2585_p11 = pnand %p2584_p4, %p2578_p9 }
 0x63d   : > { %v1991_v21 = vpop.permute.xlu0 %1990 }
 0x63e   : > { %v2045_v49 = vsel %vm780_vm8, %v1913_v57, %v1991_v21 }
 0x641   : > { %v1995_v3 = vpop.permute.xlu0 %1994 }
 0x642   : > { %v2046_v10 = vsel %vm386_vm5, %v2045_v49, %v1995_v3 }
 0x645   : > { %v2003_v55 = vpop.permute.xlu0 %2002 }
 0x649   : > { %v2019_v20 = vpop.permute.xlu1 %2018  ;;  %v1999_v26 = vpop.permute.xlu0 %1998 }
 0x64a   : > { %v2057_v18 = vsel %vm780_vm8, %v1962_v56, %v2019_v20  ;;  %v2048_v7 = vsel %vm2047_vm9, %v2046_v10, %v1999_v26 }
 0x64b   : > { %v2050_v17 = vsel %vm2049_vm10, %v2048_v7, %v2003_v55 }
 0x64d   : > { %v2023_v28 = vpop.permute.xlu1 %2022  ;;  %v2007_v19 = vpop.permute.xlu0 %2006 }
 0x64e   : > { %v2058_v48 = vsel %vm386_vm5, %v2057_v18, %v2023_v28  ;;  %v2052_v59 = vsel %vm2051_vm11, %v2050_v17, %v2007_v19 }
 0x651   : > { %v2031_v39 = vpop.permute.xlu1 %2030  ;;  %v2011_v4 = vpop.permute.xlu0 %2010 }
 0x652   : > { %v2054_v34 = vsel %vm2053_vm12, %v2052_v59, %v2011_v4 }
 0x655   : > { %v2027_v29 = vpop.permute.xlu1 %2026  ;;  %v2015_v8 = vpop.permute.xlu0 %2014 }
 0x656   : > { %v2059_v14 = vsel %vm2047_vm9, %v2058_v48, %v2027_v29  ;;  %v2056_v38 = vsel %vm2055_vm13, %v2054_v34, %v2015_v8 }
 0x657   : > { %v2060_v30 = vsel %vm2049_vm10, %v2059_v14, %v2031_v39 }
 0x659   : > { %v2035_v62 = vpop.permute.xlu1 %2034 }
 0x65a   : > { %v2061_v54 = vsel %vm2051_vm11, %v2060_v30, %v2035_v62 }
 0x65d   : > { %v2039_v36 = vpop.permute.xlu1 %2038 }
 0x65e   : > { %v2062_v25 = vsel %vm2053_vm12, %v2061_v54, %v2039_v36 }
 0x661   : > { %v2043_v41 = vpop.permute.xlu1 %2042 }
 0x662   : > { %v2063_v2 = vsel %vm2055_vm13, %v2062_v25, %v2043_v41 }
 0x663   : > { %v2066_v51 = vcombine.low %v2056_v38, %v2063_v2 }
 0x665   : > { %v2073_v22 = vrot.slane %v2066_v51, %v2072_v15 }
 0x667   : > { %v2080_v53 = vrot.slane %v2073_v22, %v2072_v15 }
 0x669   : > { %2086 = vst.msk [vmem:[%s4018_s19] sm:$0x3] %vm2084_vm14, %v2080_v53 }
 0x66a   : > { %2588 = shalt.err (!%p2585_p11)
}
 0x66b   : > { %s2589_s16 = scalar_lea.hbm %s4025_s11, 32  ;;  %s2593_s8 = scalar_lea.hbm %s4130_s7, 64 }
 0x66c   : > { %p2590_p0 = scmp.ne.s32.totalorder %s4025_s11, %s2589_s16  ;;  %p2594_p6 = scmp.lt.u32.totalorder %s4025_s11, %s4130_s7 }
 0x66d   : > { %p2595_p3 = scmp.lt.u32.totalorder %s2593_s8, %s2589_s16  ;;  %p2597_p5 = scmp.lt.u32.totalorder %s2589_s16, %s4025_s11 }
 0x66e   : > { %p2591_p2 = pnand %p2590_p0, %p4267_p12 }
 0x66f   : > { %p2596_p13 = por %p2595_p3, %p2594_p6 }
 0x670   : > { %p2592_p7 = pneg %p2591_p2 }
 0x671   : > { %p2598_p8 = por %p2597_p5, %p2596_p13 }
 0x673   : > { %p2599_p9 = pnand %p2598_p8, %p2592_p7 }
 0x675   : > { %2602 = shalt.err (!%p2599_p9)
}
 0x676   : > { %2433 = dma.vmem_to_hbm [thread:$0]  (%p4267_p12), %s4027_s17, 32, %s4025_s11, %s2129_s9   ;;  %v2099_v57 = vsub.s32 0, %v4265_v42  ;;  %v2103_v61 = vsub.s32 1, %v4265_v42  ;;  %v2087_v16 = vld [vmem:[%s4018_s19] sm:$0x3]  ;;  %v2089_v5 = vld [vmem:[%s2957_s12 + $0x8] sm:$0xff] }
 0x677   : > { %s2395_s21 = sshll.u32 %s2766_s28, 10  ;;  %v2088_v12 = vld [vmem:[%s2957_s12] sm:$0xff]  ;;  %s2142_s18 = sshll.u32 %s2957_s12, 4  ;;  %v2090_v63 = vld [vmem:[%s2957_s12 + $0x10] sm:$0xff]  ;;  %v2091_v27 = vld [vmem:[%s2957_s12 + $0x18] sm:$0xff]  ;;  %s4070_s18 = int_to_ptr.vmem [resolvable:$true] %s2142_s18 }
 0x678   : > { %v2100_v24 = vrot.slane %v2087_v16, %v2099_v57  ;;  %v2104_v47 = vrot.slane %v2087_v16, %v2103_v61  ;;  %v2092_v11 = vld [vmem:[%s2957_s12 + $0x20] sm:$0xff]  ;;  %v2093_v56 = vld [vmem:[%s2957_s12 + $0x28] sm:$0xff]  ;;  %v2094_v43 = vld [vmem:[%s2957_s12 + $0x30] sm:$0xff]  ;;  %s4068_s17 = scalar_lea.hbm %s4129_s6, %s2395_s21  ;;  %s2124_s11 = scalar_lea.sflag [#allocation8], %s2872_s29 }
 0x679   : > { %v2095_v50 = vld [vmem:[%s2957_s12 + $0x38] sm:$0xff]  ;;  %s2603_s9 = scalar_lea.vmem %s4070_s18, 1024  ;;  %s2703_s16 = smov [#allocation11]  }
 0x67a   : > { %v2107_v13 = vmul.f32 %v2100_v24, %v2088_v12  ;;  %v2108_v9 = vmul.f32 %v2104_v47, %v2089_v5  ;;  %v2109_v58 = vmul.f32 %v2100_v24, %v2090_v63  ;;  %v2110_v0 = vmul.f32 %v2104_v47, %v2091_v27  ;;  %p2604_p10 = scmp.ne.s32.totalorder %s4070_s18, %s2603_s9  ;;  %s2607_s5 = sshll.u32 %s2703_s16, 4  ;;  %s2608_s5 = int_to_ptr.vmem [resolvable:$false] %s2607_s5 }
 0x67b   : > { %v2111_v40 = vmul.f32 %v2100_v24, %v2092_v11  ;;  %v2112_v32 = vmul.f32 %v2104_v47, %v2093_v56  ;;  %v2113_v23 = vmul.f32 %v2100_v24, %v2094_v43  ;;  %v2114_v33 = vmul.f32 %v2104_v47, %v2095_v50  ;;  %s2609_s22 = scalar_lea.vmem %s2608_s5, 2048  ;;  %p2610_p11 = scmp.lt.s32.totalorder %s4070_s18, %s2608_s5 }
 0x67c   : > { %2115 = vst [vmem:[%s2957_s12] sm:$0xff] %v2107_v13  ;;  %2116 = vst [vmem:[%s2957_s12 + $0x8] sm:$0xff] %v2108_v9  ;;  %p2605_p1 = pnand %p2604_p10, %p4267_p12  ;;  %p2611_p0 = scmp.lt.s32.totalorder %s2609_s22, %s2603_s9 }
 0x67d   : > { %2117 = vst [vmem:[%s2957_s12 + $0x10] sm:$0xff] %v2109_v58  ;;  %2118 = vst [vmem:[%s2957_s12 + $0x18] sm:$0xff] %v2110_v0 }
 0x67e   : > { %2119 = vst [vmem:[%s2957_s12 + $0x20] sm:$0xff] %v2111_v40  ;;  %2120 = vst [vmem:[%s2957_s12 + $0x28] sm:$0xff] %v2112_v32  ;;  %p2606_p4 = pneg %p2605_p1  ;;  %p2612_p2 = por %p2611_p0, %p2610_p11 }
 0x67f   : > { %2121 = vst [vmem:[%s2957_s12 + $0x30] sm:$0xff] %v2113_v23  ;;  %2122 = vst [vmem:[%s2957_s12 + $0x38] sm:$0xff] %v2114_v33 }
 0x680   : > { %p2613_p7 = pnand %p2612_p2, %p2606_p4 }
 0x682   : > { %2616 = shalt.err (!%p2613_p7)
}
 0x683   : > { %s2617_s12 = scalar_lea.hbm %s4068_s17, 1024  ;;  %s2621_s23 = scalar_lea.hbm %s4129_s6, 2048 }
 0x684   : > { %p2618_p6 = scmp.ne.s32.totalorder %s4068_s17, %s2617_s12  ;;  %p2622_p5 = scmp.lt.u32.totalorder %s4068_s17, %s4129_s6 }
 0x685   : > { %p2623_p8 = scmp.lt.u32.totalorder %s2621_s23, %s2617_s12  ;;  %p2625_p10 = scmp.lt.u32.totalorder %s2617_s12, %s4068_s17 }
 0x686   : > { %p2619_p3 = pnand %p2618_p6, %p4267_p12 }
 0x687   : > { %p2624_p9 = por %p2623_p8, %p2622_p5 }
 0x688   : > { %p2620_p13 = pneg %p2619_p3 }
 0x689   : > { %p2626_p1 = por %p2625_p10, %p2624_p9 }
 0x68b   : > { %p2627_p4 = pnand %p2626_p1, %p2620_p13 }
 0x68d   : > { %2630 = shalt.err (!%p2627_p4)
}
 0x68e   : > { %s2704_s19 = smov 256  }
 0x68f   : > { %2432 = dma.vmem_to_hbm [thread:$0]  (%p4267_p12), %s4070_s18, 1024, %s4068_s17, %s2124_s11, %s2704_s19, %s2704_s19, %s4258_s15  }
 0x690 PF: > { %s2171_s9 = sand.u32 1, %s2665_s24   ;;  %p4268_p11 = scmp.ne.s32.totalorder %s4164_s14, 0 }
 0x691   : > { %p4269_p0 = scmp.ge.s32.totalorder %s2677_s27, 2  ;;  %s2172_s16 = scalar_lea.sflag [#allocation8], %s2171_s9 }
 0x693   : > { %p2445_p2 = pnand %p4269_p0, %p4268_p11 }
 0x695   : > { %2656 = dma.done.wait (!%p2445_p2), %s2172_s16, 1024  }
 0x696   : > { %2658 = vsyncadd (!%p2445_p2), %s2172_s16, 4294966272  ;;  %s2181_s5 = scalar_lea.sflag [#allocation13], %s2171_s9 }
 0x697   : > { %2660 = dma.done.wait (!%p2445_p2), %s2181_s5, 32  }
 0x698   : > { %2662 = vsyncadd (!%p2445_p2), %s2181_s5, 4294967264  ;;  %p25_p12 = scmp.ge.s32.totalorder %s2770_s30, 4   ;;  %s4270_s24 = smov %s2669_s25 }
 0x699   : > { %s4271_s25 = smov %s2673_s26  ;;  %s4272_s26 = smov %s2782_s10 }
 0x69a   : > { %s4273_s27 = smov %s2770_s30  ;;  %27 = sbr.rel (!%p25_p12) target bundleno = 10 (0xa), region = 111 }
 0x6a1   :  { %2186 = vsyncpa [#allocation7], 1 }
 0x6a2   :  { %2188 = vsyncpa [#allocation7 + $0x1], 1 }
 0x6a3   :  { %2189 = vsyncpa [#allocation8], 1 }
 0x6a4   :  { %2191 = vsyncpa [#allocation8 + $0x1], 1 }
 0x6a5   :  { %2192 = vsyncpa [#allocation13], 1 }
 0x6a6   :  { %2194 = vsyncpa [#allocation13 + $0x1], 1 }
 0x6a7   :  { %2195 = vsyncpa [#allocation9], 1 }
 0x6a8   :  { %2197 = vsyncpa [#allocation9 + $0x1], 1 }

</bundles_post_ra>
